<compile_context>
chip_gen: v7x
topology: tpu7x:2x2x1
jax: 0.10.0
libtpu: 0.0.40
codegen_flags: <defaults>
</compile_context>

<pallas_src>
import math

import jax
import jax.numpy as jnp
from jax import lax
from jax.experimental import pallas as pl
from jax.experimental.pallas import tpu as pltpu

# ----------------------------- model config ---------------------------------
VOCAB = 64
MAX_POS = 16
D_MODEL = 32
N_HEAD = 4
D_HEAD = D_MODEL // N_HEAD
D_FF = 4 * D_MODEL
N_LAYER = 2
PAD_IDX = 0
LN_EPS = 1e-5


# ----------------------------- in-kernel helpers -----------------------------
def _layer_norm(x, g, b):
    mu = jnp.mean(x, axis=-1, keepdims=True)
    xc = x - mu
    var = jnp.mean(xc * xc, axis=-1, keepdims=True)
    return xc * lax.rsqrt(var + LN_EPS) * g + b


def _gelu_new(y):
    # GPT-2 "gelu_new" (tanh approximation)
    c = 0.7978845608028654  # sqrt(2/pi)
    return 0.5 * y * (1.0 + jnp.tanh(c * (y + 0.044715 * y * y * y)))


# ------------------------------ fused kernel ---------------------------------
def build_fused_kernel(n_layer, batch, seq):
    n_tok = batch * seq
    scale = 1.0 / math.sqrt(D_HEAD)

    def kernel(*refs):
        # inputs
        (ids_ref, pos_ref, mask_ref, labels_ref,
         wte_ref, wpe_ref, lnf_g_ref, lnf_b_ref) = refs[:8]
        layer_refs = refs[8:8 + 12 * n_layer]
        # output, then scratch
        loss_ref = refs[8 + 12 * n_layer]
        attn_scratch = refs[8 + 12 * n_layer + 1]      # (N, d) VMEM

        # ---- embeddings (one-hot matmul gather; cheap at V=64) ----
        ids = ids_ref[...]                              # (N, 1) int32
        pos = pos_ref[...]                              # (N, 1) int32
        col_v = lax.broadcasted_iota(jnp.int32, (n_tok, VOCAB), 1)
        col_p = lax.broadcasted_iota(jnp.int32, (n_tok, MAX_POS), 1)
        oh_tok = (col_v == ids).astype(jnp.float32)
        oh_pos = (col_p == pos).astype(jnp.float32)
        wte = wte_ref[...]                              # reused by lm_head (tied)
        h = (jnp.dot(oh_tok, wte, preferred_element_type=jnp.float32)
             + jnp.dot(oh_pos, wpe_ref[...], preferred_element_type=jnp.float32))

        # ---- masks, hoisted once (reused by every layer / head) ----
        m_all = mask_ref[...]                           # (B, S) f32; 1 = keep
        row_i = lax.broadcasted_iota(jnp.int32, (seq, seq), 0)
        col_i = lax.broadcasted_iota(jnp.int32, (seq, seq), 1)
        causal_keep = col_i <= row_i

        # ---- transformer blocks (statically unrolled) ----
        for l in range(n_layer):
            (ln1_g, ln1_b, attn_w, attn_b, proj_w, proj_b,
             ln2_g, ln2_b, fc_w, fc_b, fc2_w, fc2_b) = layer_refs[12 * l:12 * (l + 1)]

            x = _layer_norm(h, ln1_g[...], ln1_b[...])
            qkv = (jnp.dot(x, attn_w[...], preferred_element_type=jnp.float32)
                   + attn_b[...])                       # (N, 3d)
            q = qkv[:, 0 * D_MODEL:1 * D_MODEL]
            k = qkv[:, 1 * D_MODEL:2 * D_MODEL]
            v = qkv[:, 2 * D_MODEL:3 * D_MODEL]
            proj_w_v = proj_w[...]

            for bi in range(batch):
                q_b = q[bi * seq:(bi + 1) * seq, :]     # (S, d)
                k_b = k[bi * seq:(bi + 1) * seq, :]
                v_b = v[bi * seq:(bi + 1) * seq, :]
                key_bias = (m_all[bi:bi + 1, :] - 1.0) * 1e9   # (1, S) padding mask
                acc = jnp.zeros((seq, D_MODEL), jnp.float32)
                for hh in range(N_HEAD):
                    lo = hh * D_HEAD
                    qh = q_b[:, lo:lo + D_HEAD]
                    kh = k_b[:, lo:lo + D_HEAD]
                    vh = v_b[:, lo:lo + D_HEAD]
                    sc = lax.dot_general(
                        qh, kh, (((1,), (1,)), ((), ())),
                        preferred_element_type=jnp.float32) * scale     # (S, S)
                    sc = jnp.where(causal_keep, sc, jnp.float32(-1e9)) + key_bias
                    mx = jnp.max(sc, axis=-1, keepdims=True)
                    e = jnp.exp(sc - mx)
                    p = e * pl.reciprocal(jnp.sum(e, axis=-1, keepdims=True),
                                          approx=True)
                    out_h = jnp.dot(p, vh, preferred_element_type=jnp.float32)
                    # fold head output straight into the output projection
                    acc = acc + jnp.dot(out_h, proj_w_v[lo:lo + D_HEAD, :],
                                        preferred_element_type=jnp.float32)
                attn_scratch[pl.ds(bi * seq, seq), :] = acc

            h = h + attn_scratch[...] + proj_b[...]     # residual 1

            x = _layer_norm(h, ln2_g[...], ln2_b[...])
            x = jnp.dot(x, fc_w[...], preferred_element_type=jnp.float32) + fc_b[...]
            x = _gelu_new(x)
            x = jnp.dot(x, fc2_w[...], preferred_element_type=jnp.float32) + fc2_b[...]
            h = h + x                                   # residual 2

        # ---- final LN + tied lm_head (contract against wte, no transpose) ----
        hf = _layer_norm(h, lnf_g_ref[...], lnf_b_ref[...])
        logits = lax.dot_general(hf, wte, (((1,), (1,)), ((), ())),
                                 preferred_element_type=jnp.float32)    # (N, V)

        # ---- shifted masked cross entropy (labels pre-shifted on host) ----
        labels = labels_ref[...]                        # (N, 1) int32, -100 = ignore
        mx = jnp.max(logits, axis=-1, keepdims=True)
        lse = jnp.log(jnp.sum(jnp.exp(logits - mx), axis=-1, keepdims=True)) + mx
        safe = jnp.where(labels == -100, 0, labels)
        onehot = (col_v == safe).astype(jnp.float32)
        true_logit = jnp.sum(logits * onehot, axis=-1, keepdims=True)
        valid = (labels != -100).astype(jnp.float32)
        total = jnp.sum((lse - true_logit) * valid)
        count = jnp.maximum(jnp.sum(valid), 1.0)        # guard 0/0
        loss_ref[...] = jnp.reshape(total / count, (1, 1))

    return kernel


# ------------------------------- parameters ----------------------------------
def init_params(key):
    std = 0.02
    keys = jax.random.split(key, 2 + 6 * N_LAYER)
    params = {
        "wte": std * jax.random.normal(keys[0], (VOCAB, D_MODEL), jnp.float32),
        "wpe": std * jax.random.normal(keys[1], (MAX_POS, D_MODEL), jnp.float32),
        "lnf_g": jnp.ones((D_MODEL,), jnp.float32),
        "lnf_b": jnp.zeros((D_MODEL,), jnp.float32),
        "layers": [],
    }
    for l in range(N_LAYER):
        k = keys[2 + 6 * l: 2 + 6 * (l + 1)]
        params["layers"].append(
            {
                "ln1_g": jnp.ones((D_MODEL,), jnp.float32),
                "ln1_b": jnp.zeros((D_MODEL,), jnp.float32),
                "attn_w": std * jax.random.normal(k[0], (D_MODEL, 3 * D_MODEL), jnp.float32),
                "attn_b": jnp.zeros((3 * D_MODEL,), jnp.float32),
                "proj_w": std * jax.random.normal(k[1], (D_MODEL, D_MODEL), jnp.float32),
                "proj_b": jnp.zeros((D_MODEL,), jnp.float32),
                "ln2_g": jnp.ones((D_MODEL,), jnp.float32),
                "ln2_b": jnp.zeros((D_MODEL,), jnp.float32),
                "fc_w": std * jax.random.normal(k[2], (D_MODEL, D_FF), jnp.float32),
                "fc_b": jnp.zeros((D_FF,), jnp.float32),
                "fc2_w": std * jax.random.normal(k[3], (D_FF, D_MODEL), jnp.float32),
                "fc2_b": jnp.zeros((D_MODEL,), jnp.float32),
            }
        )
    return params


# --------------------------------- forward -----------------------------------
def gpt2_translation_loss(params, src, tgt):
    # mirrors GPT2TranslationModel.forward
    input_ids = jnp.concatenate([src, tgt[:, :-1]], axis=1).astype(jnp.int32)  # (B, S)
    labels = jnp.concatenate([jnp.full_like(src, -100), tgt[:, 1:]], axis=1)   # (B, S)
    b, s = input_ids.shape
    n = b * s

    # HF GPT2LMHeadModel shift folded into the label layout: position t is paired
    # with labels[:, t+1]; last position of each row gets ignore_index (-100).
    shifted = jnp.concatenate(
        [labels[:, 1:], jnp.full((b, 1), -100, labels.dtype)], axis=1)

    attn_mask = (input_ids != PAD_IDX).astype(jnp.float32)                      # (B, S)
    pos = jnp.broadcast_to(jnp.arange(s, dtype=jnp.int32), (b, s))

    flat = []
    for lyr in params["layers"]:
        flat += [
            lyr["ln1_g"].reshape(1, -1), lyr["ln1_b"].reshape(1, -1),
            lyr["attn_w"], lyr["attn_b"].reshape(1, -1),
            lyr["proj_w"], lyr["proj_b"].reshape(1, -1),
            lyr["ln2_g"].reshape(1, -1), lyr["ln2_b"].reshape(1, -1),
            lyr["fc_w"], lyr["fc_b"].reshape(1, -1),
            lyr["fc2_w"], lyr["fc2_b"].reshape(1, -1),
        ]

    kernel = build_fused_kernel(N_LAYER, b, s)
    loss = pl.pallas_call(
        kernel,
        out_shape=jax.ShapeDtypeStruct((1, 1), jnp.float32),
        scratch_shapes=[pltpu.VMEM((n, D_MODEL), jnp.float32)],
    )(
        input_ids.reshape(n, 1),
        pos.reshape(n, 1),
        attn_mask,
        shifted.reshape(n, 1).astype(jnp.int32),
        params["wte"], params["wpe"],
        params["lnf_g"].reshape(1, -1), params["lnf_b"].reshape(1, -1),
        *flat,
    )
    return loss[0, 0]


# ----------------------------------- main -------------------------------------
if __name__ == "__main__":
    key = jax.random.PRNGKey(0)
    kp, ks, kt = jax.random.split(key, 3)
    params = init_params(kp)

    B, S_SRC, S_TGT = 2, 5, 4          # combined seq = 5 + (4-1) = 8
    src = jax.random.randint(ks, (B, S_SRC), 1, VOCAB, dtype=jnp.int32)
    src = src.at[:, -1].set(PAD_IDX)   # include some padding to exercise the mask
    tgt = jax.random.randint(kt, (B, S_TGT), 1, VOCAB, dtype=jnp.int32)

    loss = jax.jit(gpt2_translation_loss)(params, src, tgt)
    loss = jax.block_until_ready(loss)
    assert loss.shape == () or loss.size == 1
    assert bool(jnp.isfinite(loss))
    print("KERNEL_OK")
</pallas_src>

<mosaic_0001>
module attributes {stable_mosaic.version = 11 : i64} {
  func.func @kernel(%arg0: memref<16x1xi32, #tpu.memory_space<vmem>>, %arg1: memref<16x1xi32, #tpu.memory_space<vmem>>, %arg2: memref<2x8xf32, #tpu.memory_space<vmem>>, %arg3: memref<16x1xi32, #tpu.memory_space<vmem>>, %arg4: memref<64x32xf32, #tpu.memory_space<vmem>>, %arg5: memref<16x32xf32, #tpu.memory_space<vmem>>, %arg6: memref<1x32xf32, #tpu.memory_space<vmem>>, %arg7: memref<1x32xf32, #tpu.memory_space<vmem>>, %arg8: memref<1x32xf32, #tpu.memory_space<vmem>>, %arg9: memref<1x32xf32, #tpu.memory_space<vmem>>, %arg10: memref<32x96xf32, #tpu.memory_space<vmem>>, %arg11: memref<1x96xf32, #tpu.memory_space<vmem>>, %arg12: memref<32x32xf32, #tpu.memory_space<vmem>>, %arg13: memref<1x32xf32, #tpu.memory_space<vmem>>, %arg14: memref<1x32xf32, #tpu.memory_space<vmem>>, %arg15: memref<1x32xf32, #tpu.memory_space<vmem>>, %arg16: memref<32x128xf32, #tpu.memory_space<vmem>>, %arg17: memref<1x128xf32, #tpu.memory_space<vmem>>, %arg18: memref<128x32xf32, #tpu.memory_space<vmem>>, %arg19: memref<1x32xf32, #tpu.memory_space<vmem>>, %arg20: memref<1x32xf32, #tpu.memory_space<vmem>>, %arg21: memref<1x32xf32, #tpu.memory_space<vmem>>, %arg22: memref<32x96xf32, #tpu.memory_space<vmem>>, %arg23: memref<1x96xf32, #tpu.memory_space<vmem>>, %arg24: memref<32x32xf32, #tpu.memory_space<vmem>>, %arg25: memref<1x32xf32, #tpu.memory_space<vmem>>, %arg26: memref<1x32xf32, #tpu.memory_space<vmem>>, %arg27: memref<1x32xf32, #tpu.memory_space<vmem>>, %arg28: memref<32x128xf32, #tpu.memory_space<vmem>>, %arg29: memref<1x128xf32, #tpu.memory_space<vmem>>, %arg30: memref<128x32xf32, #tpu.memory_space<vmem>>, %arg31: memref<1x32xf32, #tpu.memory_space<vmem>>, %arg32: memref<1x1xf32, #tpu.memory_space<vmem>>, %arg33: memref<16x32xf32, #tpu.memory_space<vmem>>) attributes {dimension_semantics = [], scalar_prefetch = 0 : i64, scratch_operands = 1 : i64, tpu.core_type = #tpu.core_type<tc>} {
    %c0 = arith.constant 0 : index
    %c0_0 = arith.constant 0 : index
    %0 = vector.load %arg0[%c0, %c0_0] : memref<16x1xi32, #tpu.memory_space<vmem>>, vector<16x1xi32>
    %c0_1 = arith.constant 0 : index
    %c0_2 = arith.constant 0 : index
    %1 = vector.load %arg1[%c0_1, %c0_2] : memref<16x1xi32, #tpu.memory_space<vmem>>, vector<16x1xi32>
    %2 = tpu.iota {dimensions = array<i32: 1>} : vector<16x64xi32>
    %3 = tpu.iota {dimensions = array<i32: 1>} : vector<16x16xi32>
    %4 = vector.broadcast %0 : vector<16x1xi32> to vector<16x64xi32>
    %5 = arith.cmpi eq, %2, %4 : vector<16x64xi32>
    %6 = arith.extui %5 : vector<16x64xi1> to vector<16x64xi32>
    %7 = arith.sitofp %6 : vector<16x64xi32> to vector<16x64xf32>
    %8 = vector.broadcast %1 : vector<16x1xi32> to vector<16x16xi32>
    %9 = arith.cmpi eq, %3, %8 : vector<16x16xi32>
    %10 = arith.extui %9 : vector<16x16xi1> to vector<16x16xi32>
    %11 = arith.sitofp %10 : vector<16x16xi32> to vector<16x16xf32>
    %c0_3 = arith.constant 0 : index
    %c0_4 = arith.constant 0 : index
    %12 = vector.load %arg4[%c0_3, %c0_4] : memref<64x32xf32, #tpu.memory_space<vmem>>, vector<64x32xf32>
    %cst = arith.constant dense<0.000000e+00> : vector<16x32xf32>
    %13 = tpu.matmul %7, %12, %cst {dimension_numbers = #tpu.dot_dimension_numbers<[1], [0], [0], [1], [0, 0, 1, 1], [], []>} : vector<16x64xf32>, vector<64x32xf32>, vector<16x32xf32> -> vector<16x32xf32>
    %c0_5 = arith.constant 0 : index
    %c0_6 = arith.constant 0 : index
    %14 = vector.load %arg5[%c0_5, %c0_6] : memref<16x32xf32, #tpu.memory_space<vmem>>, vector<16x32xf32>
    %cst_7 = arith.constant dense<0.000000e+00> : vector<16x32xf32>
    %15 = tpu.matmul %11, %14, %cst_7 {dimension_numbers = #tpu.dot_dimension_numbers<[1], [0], [0], [1], [0, 0, 1, 1], [], []>} : vector<16x16xf32>, vector<16x32xf32>, vector<16x32xf32> -> vector<16x32xf32>
    %16 = arith.addf %13, %15 : vector<16x32xf32>
    %c0_8 = arith.constant 0 : index
    %c0_9 = arith.constant 0 : index
    %17 = vector.load %arg2[%c0_8, %c0_9] : memref<2x8xf32, #tpu.memory_space<vmem>>, vector<2x8xf32>
    %18 = tpu.iota {dimensions = array<i32: 0>} : vector<8x8xi32>
    %19 = tpu.iota {dimensions = array<i32: 1>} : vector<8x8xi32>
    %20 = arith.cmpi sle, %19, %18 : vector<8x8xi32>
    %c0_10 = arith.constant 0 : index
    %c0_11 = arith.constant 0 : index
    %21 = vector.load %arg8[%c0_10, %c0_11] : memref<1x32xf32, #tpu.memory_space<vmem>>, vector<1x32xf32>
    %c0_12 = arith.constant 0 : index
    %c0_13 = arith.constant 0 : index
    %22 = vector.load %arg9[%c0_12, %c0_13] : memref<1x32xf32, #tpu.memory_space<vmem>>, vector<1x32xf32>
    %cst_14 = arith.constant dense<0.000000e+00> : vector<16xf32>
    %23 = vector.multi_reduction <add>, %16, %cst_14 [1] : vector<16x32xf32> to vector<16xf32>
    %24 = vector.shape_cast %23 : vector<16xf32> to vector<16x1xf32>
    %cst_15 = arith.constant 3.200000e+01 : f32
    %25 = vector.broadcast %cst_15 : f32 to vector<16x1xf32>
    %26 = arith.divf %24, %25 : vector<16x1xf32>
    %27 = vector.broadcast %26 : vector<16x1xf32> to vector<16x32xf32>
    %28 = arith.subf %16, %27 : vector<16x32xf32>
    %29 = arith.mulf %28, %28 : vector<16x32xf32>
    %cst_16 = arith.constant dense<0.000000e+00> : vector<16xf32>
    %30 = vector.multi_reduction <add>, %29, %cst_16 [1] : vector<16x32xf32> to vector<16xf32>
    %31 = vector.shape_cast %30 : vector<16xf32> to vector<16x1xf32>
    %cst_17 = arith.constant 3.200000e+01 : f32
    %32 = vector.broadcast %cst_17 : f32 to vector<16x1xf32>
    %33 = arith.divf %31, %32 : vector<16x1xf32>
    %cst_18 = arith.constant 9.99999974E-6 : f32
    %34 = vector.broadcast %cst_18 : f32 to vector<16x1xf32>
    %35 = arith.addf %33, %34 : vector<16x1xf32>
    %36 = math.rsqrt %35 : vector<16x1xf32>
    %37 = vector.broadcast %36 : vector<16x1xf32> to vector<16x32xf32>
    %38 = arith.mulf %28, %37 : vector<16x32xf32>
    %39 = vector.broadcast %21 : vector<1x32xf32> to vector<16x32xf32>
    %40 = arith.mulf %38, %39 : vector<16x32xf32>
    %41 = vector.broadcast %22 : vector<1x32xf32> to vector<16x32xf32>
    %42 = arith.addf %40, %41 : vector<16x32xf32>
    %c0_19 = arith.constant 0 : index
    %c0_20 = arith.constant 0 : index
    %43 = vector.load %arg10[%c0_19, %c0_20] : memref<32x96xf32, #tpu.memory_space<vmem>>, vector<32x96xf32>
    %cst_21 = arith.constant dense<0.000000e+00> : vector<16x96xf32>
    %44 = tpu.matmul %42, %43, %cst_21 {dimension_numbers = #tpu.dot_dimension_numbers<[1], [0], [0], [1], [0, 0, 1, 1], [], []>} : vector<16x32xf32>, vector<32x96xf32>, vector<16x96xf32> -> vector<16x96xf32>
    %c0_22 = arith.constant 0 : index
    %c0_23 = arith.constant 0 : index
    %45 = vector.load %arg11[%c0_22, %c0_23] : memref<1x96xf32, #tpu.memory_space<vmem>>, vector<1x96xf32>
    %46 = vector.broadcast %45 : vector<1x96xf32> to vector<16x96xf32>
    %47 = arith.addf %44, %46 : vector<16x96xf32>
    %48 = vector.extract_strided_slice %47 {offsets = [0, 0], sizes = [16, 32], strides = [1, 1]} : vector<16x96xf32> to vector<16x32xf32>
    %49 = vector.extract_strided_slice %47 {offsets = [0, 32], sizes = [16, 32], strides = [1, 1]} : vector<16x96xf32> to vector<16x32xf32>
    %50 = vector.extract_strided_slice %47 {offsets = [0, 64], sizes = [16, 32], strides = [1, 1]} : vector<16x96xf32> to vector<16x32xf32>
    %c0_24 = arith.constant 0 : index
    %c0_25 = arith.constant 0 : index
    %51 = vector.load %arg12[%c0_24, %c0_25] : memref<32x32xf32, #tpu.memory_space<vmem>>, vector<32x32xf32>
    %52 = vector.extract_strided_slice %48 {offsets = [0, 0], sizes = [8, 32], strides = [1, 1]} : vector<16x32xf32> to vector<8x32xf32>
    %53 = vector.extract_strided_slice %49 {offsets = [0, 0], sizes = [8, 32], strides = [1, 1]} : vector<16x32xf32> to vector<8x32xf32>
    %54 = vector.extract_strided_slice %50 {offsets = [0, 0], sizes = [8, 32], strides = [1, 1]} : vector<16x32xf32> to vector<8x32xf32>
    %55 = vector.extract_strided_slice %17 {offsets = [0, 0], sizes = [1, 8], strides = [1, 1]} : vector<2x8xf32> to vector<1x8xf32>
    %cst_26 = arith.constant 1.000000e+00 : f32
    %56 = vector.broadcast %cst_26 : f32 to vector<1x8xf32>
    %57 = arith.subf %55, %56 : vector<1x8xf32>
    %cst_27 = arith.constant 1.000000e+09 : f32
    %58 = vector.broadcast %cst_27 : f32 to vector<1x8xf32>
    %59 = arith.mulf %57, %58 : vector<1x8xf32>
    %cst_28 = arith.constant 0.000000e+00 : f32
    %60 = vector.broadcast %cst_28 : f32 to vector<8x32xf32>
    %61 = vector.extract_strided_slice %52 {offsets = [0, 0], sizes = [8, 8], strides = [1, 1]} : vector<8x32xf32> to vector<8x8xf32>
    %62 = vector.extract_strided_slice %53 {offsets = [0, 0], sizes = [8, 8], strides = [1, 1]} : vector<8x32xf32> to vector<8x8xf32>
    %63 = vector.extract_strided_slice %54 {offsets = [0, 0], sizes = [8, 8], strides = [1, 1]} : vector<8x32xf32> to vector<8x8xf32>
    %cst_29 = arith.constant dense<0.000000e+00> : vector<8x8xf32>
    %64 = tpu.matmul %61, %62, %cst_29 {dimension_numbers = #tpu.dot_dimension_numbers<[1], [1], [0], [0], [0, 0, 1, 0], [], []>} : vector<8x8xf32>, vector<8x8xf32>, vector<8x8xf32> -> vector<8x8xf32>
    %cst_30 = arith.constant 0.353553385 : f32
    %65 = vector.broadcast %cst_30 : f32 to vector<8x8xf32>
    %66 = arith.mulf %64, %65 : vector<8x8xf32>
    %cst_31 = arith.constant -1.000000e+09 : f32
    %67 = vector.broadcast %cst_31 : f32 to vector<8x8xf32>
    %68 = arith.select %20, %66, %67 : vector<8x8xi1>, vector<8x8xf32>
    %69 = vector.broadcast %59 : vector<1x8xf32> to vector<8x8xf32>
    %70 = arith.addf %68, %69 : vector<8x8xf32>
    %cst_32 = arith.constant dense<0xFF800000> : vector<8xf32>
    %71 = vector.multi_reduction <maximumf>, %70, %cst_32 [1] : vector<8x8xf32> to vector<8xf32>
    %72 = vector.shape_cast %71 : vector<8xf32> to vector<8x1xf32>
    %73 = vector.broadcast %72 : vector<8x1xf32> to vector<8x8xf32>
    %74 = arith.subf %70, %73 : vector<8x8xf32>
    %75 = math.exp %74 : vector<8x8xf32>
    %cst_33 = arith.constant dense<0.000000e+00> : vector<8xf32>
    %76 = vector.multi_reduction <add>, %75, %cst_33 [1] : vector<8x8xf32> to vector<8xf32>
    %77 = vector.shape_cast %76 : vector<8xf32> to vector<8x1xf32>
    %78 = tpu.reciprocal %77 {approx = true} : vector<8x1xf32> -> vector<8x1xf32>
    %79 = vector.broadcast %78 : vector<8x1xf32> to vector<8x8xf32>
    %80 = arith.mulf %75, %79 : vector<8x8xf32>
    %cst_34 = arith.constant dense<0.000000e+00> : vector<8x8xf32>
    %81 = tpu.matmul %80, %63, %cst_34 {dimension_numbers = #tpu.dot_dimension_numbers<[1], [0], [0], [1], [0, 0, 1, 1], [], []>} : vector<8x8xf32>, vector<8x8xf32>, vector<8x8xf32> -> vector<8x8xf32>
    %82 = vector.extract_strided_slice %51 {offsets = [0, 0], sizes = [8, 32], strides = [1, 1]} : vector<32x32xf32> to vector<8x32xf32>
    %cst_35 = arith.constant dense<0.000000e+00> : vector<8x32xf32>
    %83 = tpu.matmul %81, %82, %cst_35 {dimension_numbers = #tpu.dot_dimension_numbers<[1], [0], [0], [1], [0, 0, 1, 1], [], []>} : vector<8x8xf32>, vector<8x32xf32>, vector<8x32xf32> -> vector<8x32xf32>
    %84 = arith.addf %60, %83 : vector<8x32xf32>
    %85 = vector.extract_strided_slice %52 {offsets = [0, 8], sizes = [8, 8], strides = [1, 1]} : vector<8x32xf32> to vector<8x8xf32>
    %86 = vector.extract_strided_slice %53 {offsets = [0, 8], sizes = [8, 8], strides = [1, 1]} : vector<8x32xf32> to vector<8x8xf32>
    %87 = vector.extract_strided_slice %54 {offsets = [0, 8], sizes = [8, 8], strides = [1, 1]} : vector<8x32xf32> to vector<8x8xf32>
    %cst_36 = arith.constant dense<0.000000e+00> : vector<8x8xf32>
    %88 = tpu.matmul %85, %86, %cst_36 {dimension_numbers = #tpu.dot_dimension_numbers<[1], [1], [0], [0], [0, 0, 1, 0], [], []>} : vector<8x8xf32>, vector<8x8xf32>, vector<8x8xf32> -> vector<8x8xf32>
    %cst_37 = arith.constant 0.353553385 : f32
    %89 = vector.broadcast %cst_37 : f32 to vector<8x8xf32>
    %90 = arith.mulf %88, %89 : vector<8x8xf32>
    %cst_38 = arith.constant -1.000000e+09 : f32
    %91 = vector.broadcast %cst_38 : f32 to vector<8x8xf32>
    %92 = arith.select %20, %90, %91 : vector<8x8xi1>, vector<8x8xf32>
    %93 = vector.broadcast %59 : vector<1x8xf32> to vector<8x8xf32>
    %94 = arith.addf %92, %93 : vector<8x8xf32>
    %cst_39 = arith.constant dense<0xFF800000> : vector<8xf32>
    %95 = vector.multi_reduction <maximumf>, %94, %cst_39 [1] : vector<8x8xf32> to vector<8xf32>
    %96 = vector.shape_cast %95 : vector<8xf32> to vector<8x1xf32>
    %97 = vector.broadcast %96 : vector<8x1xf32> to vector<8x8xf32>
    %98 = arith.subf %94, %97 : vector<8x8xf32>
    %99 = math.exp %98 : vector<8x8xf32>
    %cst_40 = arith.constant dense<0.000000e+00> : vector<8xf32>
    %100 = vector.multi_reduction <add>, %99, %cst_40 [1] : vector<8x8xf32> to vector<8xf32>
    %101 = vector.shape_cast %100 : vector<8xf32> to vector<8x1xf32>
    %102 = tpu.reciprocal %101 {approx = true} : vector<8x1xf32> -> vector<8x1xf32>
    %103 = vector.broadcast %102 : vector<8x1xf32> to vector<8x8xf32>
    %104 = arith.mulf %99, %103 : vector<8x8xf32>
    %cst_41 = arith.constant dense<0.000000e+00> : vector<8x8xf32>
    %105 = tpu.matmul %104, %87, %cst_41 {dimension_numbers = #tpu.dot_dimension_numbers<[1], [0], [0], [1], [0, 0, 1, 1], [], []>} : vector<8x8xf32>, vector<8x8xf32>, vector<8x8xf32> -> vector<8x8xf32>
    %106 = vector.extract_strided_slice %51 {offsets = [8, 0], sizes = [8, 32], strides = [1, 1]} : vector<32x32xf32> to vector<8x32xf32>
    %cst_42 = arith.constant dense<0.000000e+00> : vector<8x32xf32>
    %107 = tpu.matmul %105, %106, %cst_42 {dimension_numbers = #tpu.dot_dimension_numbers<[1], [0], [0], [1], [0, 0, 1, 1], [], []>} : vector<8x8xf32>, vector<8x32xf32>, vector<8x32xf32> -> vector<8x32xf32>
    %108 = arith.addf %84, %107 : vector<8x32xf32>
    %109 = vector.extract_strided_slice %52 {offsets = [0, 16], sizes = [8, 8], strides = [1, 1]} : vector<8x32xf32> to vector<8x8xf32>
    %110 = vector.extract_strided_slice %53 {offsets = [0, 16], sizes = [8, 8], strides = [1, 1]} : vector<8x32xf32> to vector<8x8xf32>
    %111 = vector.extract_strided_slice %54 {offsets = [0, 16], sizes = [8, 8], strides = [1, 1]} : vector<8x32xf32> to vector<8x8xf32>
    %cst_43 = arith.constant dense<0.000000e+00> : vector<8x8xf32>
    %112 = tpu.matmul %109, %110, %cst_43 {dimension_numbers = #tpu.dot_dimension_numbers<[1], [1], [0], [0], [0, 0, 1, 0], [], []>} : vector<8x8xf32>, vector<8x8xf32>, vector<8x8xf32> -> vector<8x8xf32>
    %cst_44 = arith.constant 0.353553385 : f32
    %113 = vector.broadcast %cst_44 : f32 to vector<8x8xf32>
    %114 = arith.mulf %112, %113 : vector<8x8xf32>
    %cst_45 = arith.constant -1.000000e+09 : f32
    %115 = vector.broadcast %cst_45 : f32 to vector<8x8xf32>
    %116 = arith.select %20, %114, %115 : vector<8x8xi1>, vector<8x8xf32>
    %117 = vector.broadcast %59 : vector<1x8xf32> to vector<8x8xf32>
    %118 = arith.addf %116, %117 : vector<8x8xf32>
    %cst_46 = arith.constant dense<0xFF800000> : vector<8xf32>
    %119 = vector.multi_reduction <maximumf>, %118, %cst_46 [1] : vector<8x8xf32> to vector<8xf32>
    %120 = vector.shape_cast %119 : vector<8xf32> to vector<8x1xf32>
    %121 = vector.broadcast %120 : vector<8x1xf32> to vector<8x8xf32>
    %122 = arith.subf %118, %121 : vector<8x8xf32>
    %123 = math.exp %122 : vector<8x8xf32>
    %cst_47 = arith.constant dense<0.000000e+00> : vector<8xf32>
    %124 = vector.multi_reduction <add>, %123, %cst_47 [1] : vector<8x8xf32> to vector<8xf32>
    %125 = vector.shape_cast %124 : vector<8xf32> to vector<8x1xf32>
    %126 = tpu.reciprocal %125 {approx = true} : vector<8x1xf32> -> vector<8x1xf32>
    %127 = vector.broadcast %126 : vector<8x1xf32> to vector<8x8xf32>
    %128 = arith.mulf %123, %127 : vector<8x8xf32>
    %cst_48 = arith.constant dense<0.000000e+00> : vector<8x8xf32>
    %129 = tpu.matmul %128, %111, %cst_48 {dimension_numbers = #tpu.dot_dimension_numbers<[1], [0], [0], [1], [0, 0, 1, 1], [], []>} : vector<8x8xf32>, vector<8x8xf32>, vector<8x8xf32> -> vector<8x8xf32>
    %130 = vector.extract_strided_slice %51 {offsets = [16, 0], sizes = [8, 32], strides = [1, 1]} : vector<32x32xf32> to vector<8x32xf32>
    %cst_49 = arith.constant dense<0.000000e+00> : vector<8x32xf32>
    %131 = tpu.matmul %129, %130, %cst_49 {dimension_numbers = #tpu.dot_dimension_numbers<[1], [0], [0], [1], [0, 0, 1, 1], [], []>} : vector<8x8xf32>, vector<8x32xf32>, vector<8x32xf32> -> vector<8x32xf32>
    %132 = arith.addf %108, %131 : vector<8x32xf32>
    %133 = vector.extract_strided_slice %52 {offsets = [0, 24], sizes = [8, 8], strides = [1, 1]} : vector<8x32xf32> to vector<8x8xf32>
    %134 = vector.extract_strided_slice %53 {offsets = [0, 24], sizes = [8, 8], strides = [1, 1]} : vector<8x32xf32> to vector<8x8xf32>
    %135 = vector.extract_strided_slice %54 {offsets = [0, 24], sizes = [8, 8], strides = [1, 1]} : vector<8x32xf32> to vector<8x8xf32>
    %cst_50 = arith.constant dense<0.000000e+00> : vector<8x8xf32>
    %136 = tpu.matmul %133, %134, %cst_50 {dimension_numbers = #tpu.dot_dimension_numbers<[1], [1], [0], [0], [0, 0, 1, 0], [], []>} : vector<8x8xf32>, vector<8x8xf32>, vector<8x8xf32> -> vector<8x8xf32>
    %cst_51 = arith.constant 0.353553385 : f32
    %137 = vector.broadcast %cst_51 : f32 to vector<8x8xf32>
    %138 = arith.mulf %136, %137 : vector<8x8xf32>
    %cst_52 = arith.constant -1.000000e+09 : f32
    %139 = vector.broadcast %cst_52 : f32 to vector<8x8xf32>
    %140 = arith.select %20, %138, %139 : vector<8x8xi1>, vector<8x8xf32>
    %141 = vector.broadcast %59 : vector<1x8xf32> to vector<8x8xf32>
    %142 = arith.addf %140, %141 : vector<8x8xf32>
    %cst_53 = arith.constant dense<0xFF800000> : vector<8xf32>
    %143 = vector.multi_reduction <maximumf>, %142, %cst_53 [1] : vector<8x8xf32> to vector<8xf32>
    %144 = vector.shape_cast %143 : vector<8xf32> to vector<8x1xf32>
    %145 = vector.broadcast %144 : vector<8x1xf32> to vector<8x8xf32>
    %146 = arith.subf %142, %145 : vector<8x8xf32>
    %147 = math.exp %146 : vector<8x8xf32>
    %cst_54 = arith.constant dense<0.000000e+00> : vector<8xf32>
    %148 = vector.multi_reduction <add>, %147, %cst_54 [1] : vector<8x8xf32> to vector<8xf32>
    %149 = vector.shape_cast %148 : vector<8xf32> to vector<8x1xf32>
    %150 = tpu.reciprocal %149 {approx = true} : vector<8x1xf32> -> vector<8x1xf32>
    %151 = vector.broadcast %150 : vector<8x1xf32> to vector<8x8xf32>
    %152 = arith.mulf %147, %151 : vector<8x8xf32>
    %cst_55 = arith.constant dense<0.000000e+00> : vector<8x8xf32>
    %153 = tpu.matmul %152, %135, %cst_55 {dimension_numbers = #tpu.dot_dimension_numbers<[1], [0], [0], [1], [0, 0, 1, 1], [], []>} : vector<8x8xf32>, vector<8x8xf32>, vector<8x8xf32> -> vector<8x8xf32>
    %154 = vector.extract_strided_slice %51 {offsets = [24, 0], sizes = [8, 32], strides = [1, 1]} : vector<32x32xf32> to vector<8x32xf32>
    %cst_56 = arith.constant dense<0.000000e+00> : vector<8x32xf32>
    %155 = tpu.matmul %153, %154, %cst_56 {dimension_numbers = #tpu.dot_dimension_numbers<[1], [0], [0], [1], [0, 0, 1, 1], [], []>} : vector<8x8xf32>, vector<8x32xf32>, vector<8x32xf32> -> vector<8x32xf32>
    %156 = arith.addf %132, %155 : vector<8x32xf32>
    %c0_57 = arith.constant 0 : index
    %c0_58 = arith.constant 0 : index
    %157 = vector.load %arg33[%c0_57, %c0_58] : memref<16x32xf32, #tpu.memory_space<vmem>>, vector<8x32xf32>
    tpu.vector_store %arg33[%c0_57, %c0_58], %156 {strides = array<i32>} : memref<16x32xf32, #tpu.memory_space<vmem>>, vector<8x32xf32>,
    %158 = vector.extract_strided_slice %48 {offsets = [8, 0], sizes = [8, 32], strides = [1, 1]} : vector<16x32xf32> to vector<8x32xf32>
    %159 = vector.extract_strided_slice %49 {offsets = [8, 0], sizes = [8, 32], strides = [1, 1]} : vector<16x32xf32> to vector<8x32xf32>
    %160 = vector.extract_strided_slice %50 {offsets = [8, 0], sizes = [8, 32], strides = [1, 1]} : vector<16x32xf32> to vector<8x32xf32>
    %161 = vector.extract_strided_slice %17 {offsets = [1, 0], sizes = [1, 8], strides = [1, 1]} : vector<2x8xf32> to vector<1x8xf32>
    %cst_59 = arith.constant 1.000000e+00 : f32
    %162 = vector.broadcast %cst_59 : f32 to vector<1x8xf32>
    %163 = arith.subf %161, %162 : vector<1x8xf32>
    %cst_60 = arith.constant 1.000000e+09 : f32
    %164 = vector.broadcast %cst_60 : f32 to vector<1x8xf32>
    %165 = arith.mulf %163, %164 : vector<1x8xf32>
    %cst_61 = arith.constant 0.000000e+00 : f32
    %166 = vector.broadcast %cst_61 : f32 to vector<8x32xf32>
    %167 = vector.extract_strided_slice %158 {offsets = [0, 0], sizes = [8, 8], strides = [1, 1]} : vector<8x32xf32> to vector<8x8xf32>
    %168 = vector.extract_strided_slice %159 {offsets = [0, 0], sizes = [8, 8], strides = [1, 1]} : vector<8x32xf32> to vector<8x8xf32>
    %169 = vector.extract_strided_slice %160 {offsets = [0, 0], sizes = [8, 8], strides = [1, 1]} : vector<8x32xf32> to vector<8x8xf32>
    %cst_62 = arith.constant dense<0.000000e+00> : vector<8x8xf32>
    %170 = tpu.matmul %167, %168, %cst_62 {dimension_numbers = #tpu.dot_dimension_numbers<[1], [1], [0], [0], [0, 0, 1, 0], [], []>} : vector<8x8xf32>, vector<8x8xf32>, vector<8x8xf32> -> vector<8x8xf32>
    %cst_63 = arith.constant 0.353553385 : f32
    %171 = vector.broadcast %cst_63 : f32 to vector<8x8xf32>
    %172 = arith.mulf %170, %171 : vector<8x8xf32>
    %cst_64 = arith.constant -1.000000e+09 : f32
    %173 = vector.broadcast %cst_64 : f32 to vector<8x8xf32>
    %174 = arith.select %20, %172, %173 : vector<8x8xi1>, vector<8x8xf32>
    %175 = vector.broadcast %165 : vector<1x8xf32> to vector<8x8xf32>
    %176 = arith.addf %174, %175 : vector<8x8xf32>
    %cst_65 = arith.constant dense<0xFF800000> : vector<8xf32>
    %177 = vector.multi_reduction <maximumf>, %176, %cst_65 [1] : vector<8x8xf32> to vector<8xf32>
    %178 = vector.shape_cast %177 : vector<8xf32> to vector<8x1xf32>
    %179 = vector.broadcast %178 : vector<8x1xf32> to vector<8x8xf32>
    %180 = arith.subf %176, %179 : vector<8x8xf32>
    %181 = math.exp %180 : vector<8x8xf32>
    %cst_66 = arith.constant dense<0.000000e+00> : vector<8xf32>
    %182 = vector.multi_reduction <add>, %181, %cst_66 [1] : vector<8x8xf32> to vector<8xf32>
    %183 = vector.shape_cast %182 : vector<8xf32> to vector<8x1xf32>
    %184 = tpu.reciprocal %183 {approx = true} : vector<8x1xf32> -> vector<8x1xf32>
    %185 = vector.broadcast %184 : vector<8x1xf32> to vector<8x8xf32>
    %186 = arith.mulf %181, %185 : vector<8x8xf32>
    %cst_67 = arith.constant dense<0.000000e+00> : vector<8x8xf32>
    %187 = tpu.matmul %186, %169, %cst_67 {dimension_numbers = #tpu.dot_dimension_numbers<[1], [0], [0], [1], [0, 0, 1, 1], [], []>} : vector<8x8xf32>, vector<8x8xf32>, vector<8x8xf32> -> vector<8x8xf32>
    %188 = vector.extract_strided_slice %51 {offsets = [0, 0], sizes = [8, 32], strides = [1, 1]} : vector<32x32xf32> to vector<8x32xf32>
    %cst_68 = arith.constant dense<0.000000e+00> : vector<8x32xf32>
    %189 = tpu.matmul %187, %188, %cst_68 {dimension_numbers = #tpu.dot_dimension_numbers<[1], [0], [0], [1], [0, 0, 1, 1], [], []>} : vector<8x8xf32>, vector<8x32xf32>, vector<8x32xf32> -> vector<8x32xf32>
    %190 = arith.addf %166, %189 : vector<8x32xf32>
    %191 = vector.extract_strided_slice %158 {offsets = [0, 8], sizes = [8, 8], strides = [1, 1]} : vector<8x32xf32> to vector<8x8xf32>
    %192 = vector.extract_strided_slice %159 {offsets = [0, 8], sizes = [8, 8], strides = [1, 1]} : vector<8x32xf32> to vector<8x8xf32>
    %193 = vector.extract_strided_slice %160 {offsets = [0, 8], sizes = [8, 8], strides = [1, 1]} : vector<8x32xf32> to vector<8x8xf32>
    %cst_69 = arith.constant dense<0.000000e+00> : vector<8x8xf32>
    %194 = tpu.matmul %191, %192, %cst_69 {dimension_numbers = #tpu.dot_dimension_numbers<[1], [1], [0], [0], [0, 0, 1, 0], [], []>} : vector<8x8xf32>, vector<8x8xf32>, vector<8x8xf32> -> vector<8x8xf32>
    %cst_70 = arith.constant 0.353553385 : f32
    %195 = vector.broadcast %cst_70 : f32 to vector<8x8xf32>
    %196 = arith.mulf %194, %195 : vector<8x8xf32>
    %cst_71 = arith.constant -1.000000e+09 : f32
    %197 = vector.broadcast %cst_71 : f32 to vector<8x8xf32>
    %198 = arith.select %20, %196, %197 : vector<8x8xi1>, vector<8x8xf32>
    %199 = vector.broadcast %165 : vector<1x8xf32> to vector<8x8xf32>
    %200 = arith.addf %198, %199 : vector<8x8xf32>
    %cst_72 = arith.constant dense<0xFF800000> : vector<8xf32>
    %201 = vector.multi_reduction <maximumf>, %200, %cst_72 [1] : vector<8x8xf32> to vector<8xf32>
    %202 = vector.shape_cast %201 : vector<8xf32> to vector<8x1xf32>
    %203 = vector.broadcast %202 : vector<8x1xf32> to vector<8x8xf32>
    %204 = arith.subf %200, %203 : vector<8x8xf32>
    %205 = math.exp %204 : vector<8x8xf32>
    %cst_73 = arith.constant dense<0.000000e+00> : vector<8xf32>
    %206 = vector.multi_reduction <add>, %205, %cst_73 [1] : vector<8x8xf32> to vector<8xf32>
    %207 = vector.shape_cast %206 : vector<8xf32> to vector<8x1xf32>
    %208 = tpu.reciprocal %207 {approx = true} : vector<8x1xf32> -> vector<8x1xf32>
    %209 = vector.broadcast %208 : vector<8x1xf32> to vector<8x8xf32>
    %210 = arith.mulf %205, %209 : vector<8x8xf32>
    %cst_74 = arith.constant dense<0.000000e+00> : vector<8x8xf32>
    %211 = tpu.matmul %210, %193, %cst_74 {dimension_numbers = #tpu.dot_dimension_numbers<[1], [0], [0], [1], [0, 0, 1, 1], [], []>} : vector<8x8xf32>, vector<8x8xf32>, vector<8x8xf32> -> vector<8x8xf32>
    %212 = vector.extract_strided_slice %51 {offsets = [8, 0], sizes = [8, 32], strides = [1, 1]} : vector<32x32xf32> to vector<8x32xf32>
    %cst_75 = arith.constant dense<0.000000e+00> : vector<8x32xf32>
    %213 = tpu.matmul %211, %212, %cst_75 {dimension_numbers = #tpu.dot_dimension_numbers<[1], [0], [0], [1], [0, 0, 1, 1], [], []>} : vector<8x8xf32>, vector<8x32xf32>, vector<8x32xf32> -> vector<8x32xf32>
    %214 = arith.addf %190, %213 : vector<8x32xf32>
    %215 = vector.extract_strided_slice %158 {offsets = [0, 16], sizes = [8, 8], strides = [1, 1]} : vector<8x32xf32> to vector<8x8xf32>
    %216 = vector.extract_strided_slice %159 {offsets = [0, 16], sizes = [8, 8], strides = [1, 1]} : vector<8x32xf32> to vector<8x8xf32>
    %217 = vector.extract_strided_slice %160 {offsets = [0, 16], sizes = [8, 8], strides = [1, 1]} : vector<8x32xf32> to vector<8x8xf32>
    %cst_76 = arith.constant dense<0.000000e+00> : vector<8x8xf32>
    %218 = tpu.matmul %215, %216, %cst_76 {dimension_numbers = #tpu.dot_dimension_numbers<[1], [1], [0], [0], [0, 0, 1, 0], [], []>} : vector<8x8xf32>, vector<8x8xf32>, vector<8x8xf32> -> vector<8x8xf32>
    %cst_77 = arith.constant 0.353553385 : f32
    %219 = vector.broadcast %cst_77 : f32 to vector<8x8xf32>
    %220 = arith.mulf %218, %219 : vector<8x8xf32>
    %cst_78 = arith.constant -1.000000e+09 : f32
    %221 = vector.broadcast %cst_78 : f32 to vector<8x8xf32>
    %222 = arith.select %20, %220, %221 : vector<8x8xi1>, vector<8x8xf32>
    %223 = vector.broadcast %165 : vector<1x8xf32> to vector<8x8xf32>
    %224 = arith.addf %222, %223 : vector<8x8xf32>
    %cst_79 = arith.constant dense<0xFF800000> : vector<8xf32>
    %225 = vector.multi_reduction <maximumf>, %224, %cst_79 [1] : vector<8x8xf32> to vector<8xf32>
    %226 = vector.shape_cast %225 : vector<8xf32> to vector<8x1xf32>
    %227 = vector.broadcast %226 : vector<8x1xf32> to vector<8x8xf32>
    %228 = arith.subf %224, %227 : vector<8x8xf32>
    %229 = math.exp %228 : vector<8x8xf32>
    %cst_80 = arith.constant dense<0.000000e+00> : vector<8xf32>
    %230 = vector.multi_reduction <add>, %229, %cst_80 [1] : vector<8x8xf32> to vector<8xf32>
    %231 = vector.shape_cast %230 : vector<8xf32> to vector<8x1xf32>
    %232 = tpu.reciprocal %231 {approx = true} : vector<8x1xf32> -> vector<8x1xf32>
    %233 = vector.broadcast %232 : vector<8x1xf32> to vector<8x8xf32>
    %234 = arith.mulf %229, %233 : vector<8x8xf32>
    %cst_81 = arith.constant dense<0.000000e+00> : vector<8x8xf32>
    %235 = tpu.matmul %234, %217, %cst_81 {dimension_numbers = #tpu.dot_dimension_numbers<[1], [0], [0], [1], [0, 0, 1, 1], [], []>} : vector<8x8xf32>, vector<8x8xf32>, vector<8x8xf32> -> vector<8x8xf32>
    %236 = vector.extract_strided_slice %51 {offsets = [16, 0], sizes = [8, 32], strides = [1, 1]} : vector<32x32xf32> to vector<8x32xf32>
    %cst_82 = arith.constant dense<0.000000e+00> : vector<8x32xf32>
    %237 = tpu.matmul %235, %236, %cst_82 {dimension_numbers = #tpu.dot_dimension_numbers<[1], [0], [0], [1], [0, 0, 1, 1], [], []>} : vector<8x8xf32>, vector<8x32xf32>, vector<8x32xf32> -> vector<8x32xf32>
    %238 = arith.addf %214, %237 : vector<8x32xf32>
    %239 = vector.extract_strided_slice %158 {offsets = [0, 24], sizes = [8, 8], strides = [1, 1]} : vector<8x32xf32> to vector<8x8xf32>
    %240 = vector.extract_strided_slice %159 {offsets = [0, 24], sizes = [8, 8], strides = [1, 1]} : vector<8x32xf32> to vector<8x8xf32>
    %241 = vector.extract_strided_slice %160 {offsets = [0, 24], sizes = [8, 8], strides = [1, 1]} : vector<8x32xf32> to vector<8x8xf32>
    %cst_83 = arith.constant dense<0.000000e+00> : vector<8x8xf32>
    %242 = tpu.matmul %239, %240, %cst_83 {dimension_numbers = #tpu.dot_dimension_numbers<[1], [1], [0], [0], [0, 0, 1, 0], [], []>} : vector<8x8xf32>, vector<8x8xf32>, vector<8x8xf32> -> vector<8x8xf32>
    %cst_84 = arith.constant 0.353553385 : f32
    %243 = vector.broadcast %cst_84 : f32 to vector<8x8xf32>
    %244 = arith.mulf %242, %243 : vector<8x8xf32>
    %cst_85 = arith.constant -1.000000e+09 : f32
    %245 = vector.broadcast %cst_85 : f32 to vector<8x8xf32>
    %246 = arith.select %20, %244, %245 : vector<8x8xi1>, vector<8x8xf32>
    %247 = vector.broadcast %165 : vector<1x8xf32> to vector<8x8xf32>
    %248 = arith.addf %246, %247 : vector<8x8xf32>
    %cst_86 = arith.constant dense<0xFF800000> : vector<8xf32>
    %249 = vector.multi_reduction <maximumf>, %248, %cst_86 [1] : vector<8x8xf32> to vector<8xf32>
    %250 = vector.shape_cast %249 : vector<8xf32> to vector<8x1xf32>
    %251 = vector.broadcast %250 : vector<8x1xf32> to vector<8x8xf32>
    %252 = arith.subf %248, %251 : vector<8x8xf32>
    %253 = math.exp %252 : vector<8x8xf32>
    %cst_87 = arith.constant dense<0.000000e+00> : vector<8xf32>
    %254 = vector.multi_reduction <add>, %253, %cst_87 [1] : vector<8x8xf32> to vector<8xf32>
    %255 = vector.shape_cast %254 : vector<8xf32> to vector<8x1xf32>
    %256 = tpu.reciprocal %255 {approx = true} : vector<8x1xf32> -> vector<8x1xf32>
    %257 = vector.broadcast %256 : vector<8x1xf32> to vector<8x8xf32>
    %258 = arith.mulf %253, %257 : vector<8x8xf32>
    %cst_88 = arith.constant dense<0.000000e+00> : vector<8x8xf32>
    %259 = tpu.matmul %258, %241, %cst_88 {dimension_numbers = #tpu.dot_dimension_numbers<[1], [0], [0], [1], [0, 0, 1, 1], [], []>} : vector<8x8xf32>, vector<8x8xf32>, vector<8x8xf32> -> vector<8x8xf32>
    %260 = vector.extract_strided_slice %51 {offsets = [24, 0], sizes = [8, 32], strides = [1, 1]} : vector<32x32xf32> to vector<8x32xf32>
    %cst_89 = arith.constant dense<0.000000e+00> : vector<8x32xf32>
    %261 = tpu.matmul %259, %260, %cst_89 {dimension_numbers = #tpu.dot_dimension_numbers<[1], [0], [0], [1], [0, 0, 1, 1], [], []>} : vector<8x8xf32>, vector<8x32xf32>, vector<8x32xf32> -> vector<8x32xf32>
    %262 = arith.addf %238, %261 : vector<8x32xf32>
    %c8 = arith.constant 8 : index
    %c0_90 = arith.constant 0 : index
    %263 = vector.load %arg33[%c8, %c0_90] : memref<16x32xf32, #tpu.memory_space<vmem>>, vector<8x32xf32>
    tpu.vector_store %arg33[%c8, %c0_90], %262 {strides = array<i32>} : memref<16x32xf32, #tpu.memory_space<vmem>>, vector<8x32xf32>,
    %c0_91 = arith.constant 0 : index
    %c0_92 = arith.constant 0 : index
    %264 = vector.load %arg33[%c0_91, %c0_92] : memref<16x32xf32, #tpu.memory_space<vmem>>, vector<16x32xf32>
    %265 = arith.addf %16, %264 : vector<16x32xf32>
    %c0_93 = arith.constant 0 : index
    %c0_94 = arith.constant 0 : index
    %266 = vector.load %arg13[%c0_93, %c0_94] : memref<1x32xf32, #tpu.memory_space<vmem>>, vector<1x32xf32>
    %267 = vector.broadcast %266 : vector<1x32xf32> to vector<16x32xf32>
    %268 = arith.addf %265, %267 : vector<16x32xf32>
    %c0_95 = arith.constant 0 : index
    %c0_96 = arith.constant 0 : index
    %269 = vector.load %arg14[%c0_95, %c0_96] : memref<1x32xf32, #tpu.memory_space<vmem>>, vector<1x32xf32>
    %c0_97 = arith.constant 0 : index
    %c0_98 = arith.constant 0 : index
    %270 = vector.load %arg15[%c0_97, %c0_98] : memref<1x32xf32, #tpu.memory_space<vmem>>, vector<1x32xf32>
    %cst_99 = arith.constant dense<0.000000e+00> : vector<16xf32>
    %271 = vector.multi_reduction <add>, %268, %cst_99 [1] : vector<16x32xf32> to vector<16xf32>
    %272 = vector.shape_cast %271 : vector<16xf32> to vector<16x1xf32>
    %cst_100 = arith.constant 3.200000e+01 : f32
    %273 = vector.broadcast %cst_100 : f32 to vector<16x1xf32>
    %274 = arith.divf %272, %273 : vector<16x1xf32>
    %275 = vector.broadcast %274 : vector<16x1xf32> to vector<16x32xf32>
    %276 = arith.subf %268, %275 : vector<16x32xf32>
    %277 = arith.mulf %276, %276 : vector<16x32xf32>
    %cst_101 = arith.constant dense<0.000000e+00> : vector<16xf32>
    %278 = vector.multi_reduction <add>, %277, %cst_101 [1] : vector<16x32xf32> to vector<16xf32>
    %279 = vector.shape_cast %278 : vector<16xf32> to vector<16x1xf32>
    %cst_102 = arith.constant 3.200000e+01 : f32
    %280 = vector.broadcast %cst_102 : f32 to vector<16x1xf32>
    %281 = arith.divf %279, %280 : vector<16x1xf32>
    %cst_103 = arith.constant 9.99999974E-6 : f32
    %282 = vector.broadcast %cst_103 : f32 to vector<16x1xf32>
    %283 = arith.addf %281, %282 : vector<16x1xf32>
    %284 = math.rsqrt %283 : vector<16x1xf32>
    %285 = vector.broadcast %284 : vector<16x1xf32> to vector<16x32xf32>
    %286 = arith.mulf %276, %285 : vector<16x32xf32>
    %287 = vector.broadcast %269 : vector<1x32xf32> to vector<16x32xf32>
    %288 = arith.mulf %286, %287 : vector<16x32xf32>
    %289 = vector.broadcast %270 : vector<1x32xf32> to vector<16x32xf32>
    %290 = arith.addf %288, %289 : vector<16x32xf32>
    %c0_104 = arith.constant 0 : index
    %c0_105 = arith.constant 0 : index
    %291 = vector.load %arg16[%c0_104, %c0_105] : memref<32x128xf32, #tpu.memory_space<vmem>>, vector<32x128xf32>
    %cst_106 = arith.constant dense<0.000000e+00> : vector<16x128xf32>
    %292 = tpu.matmul %290, %291, %cst_106 {dimension_numbers = #tpu.dot_dimension_numbers<[1], [0], [0], [1], [0, 0, 1, 1], [], []>} : vector<16x32xf32>, vector<32x128xf32>, vector<16x128xf32> -> vector<16x128xf32>
    %c0_107 = arith.constant 0 : index
    %c0_108 = arith.constant 0 : index
    %293 = vector.load %arg17[%c0_107, %c0_108] : memref<1x128xf32, #tpu.memory_space<vmem>>, vector<1x128xf32>
    %294 = vector.broadcast %293 : vector<1x128xf32> to vector<16x128xf32>
    %295 = arith.addf %292, %294 : vector<16x128xf32>
    %cst_109 = arith.constant 5.000000e-01 : f32
    %296 = vector.broadcast %cst_109 : f32 to vector<16x128xf32>
    %297 = arith.mulf %296, %295 : vector<16x128xf32>
    %cst_110 = arith.constant 4.471500e-02 : f32
    %298 = vector.broadcast %cst_110 : f32 to vector<16x128xf32>
    %299 = arith.mulf %298, %295 : vector<16x128xf32>
    %300 = arith.mulf %299, %295 : vector<16x128xf32>
    %301 = arith.mulf %300, %295 : vector<16x128xf32>
    %302 = arith.addf %295, %301 : vector<16x128xf32>
    %cst_111 = arith.constant 0.797884583 : f32
    %303 = vector.broadcast %cst_111 : f32 to vector<16x128xf32>
    %304 = arith.mulf %303, %302 : vector<16x128xf32>
    %305 = math.tanh %304 : vector<16x128xf32>
    %cst_112 = arith.constant 1.000000e+00 : f32
    %306 = vector.broadcast %cst_112 : f32 to vector<16x128xf32>
    %307 = arith.addf %306, %305 : vector<16x128xf32>
    %308 = arith.mulf %297, %307 : vector<16x128xf32>
    %c0_113 = arith.constant 0 : index
    %c0_114 = arith.constant 0 : index
    %309 = vector.load %arg18[%c0_113, %c0_114] : memref<128x32xf32, #tpu.memory_space<vmem>>, vector<128x32xf32>
    %cst_115 = arith.constant dense<0.000000e+00> : vector<16x32xf32>
    %310 = tpu.matmul %308, %309, %cst_115 {dimension_numbers = #tpu.dot_dimension_numbers<[1], [0], [0], [1], [0, 0, 1, 1], [], []>} : vector<16x128xf32>, vector<128x32xf32>, vector<16x32xf32> -> vector<16x32xf32>
    %c0_116 = arith.constant 0 : index
    %c0_117 = arith.constant 0 : index
    %311 = vector.load %arg19[%c0_116, %c0_117] : memref<1x32xf32, #tpu.memory_space<vmem>>, vector<1x32xf32>
    %312 = vector.broadcast %311 : vector<1x32xf32> to vector<16x32xf32>
    %313 = arith.addf %310, %312 : vector<16x32xf32>
    %314 = arith.addf %268, %313 : vector<16x32xf32>
    %c0_118 = arith.constant 0 : index
    %c0_119 = arith.constant 0 : index
    %315 = vector.load %arg20[%c0_118, %c0_119] : memref<1x32xf32, #tpu.memory_space<vmem>>, vector<1x32xf32>
    %c0_120 = arith.constant 0 : index
    %c0_121 = arith.constant 0 : index
    %316 = vector.load %arg21[%c0_120, %c0_121] : memref<1x32xf32, #tpu.memory_space<vmem>>, vector<1x32xf32>
    %cst_122 = arith.constant dense<0.000000e+00> : vector<16xf32>
    %317 = vector.multi_reduction <add>, %314, %cst_122 [1] : vector<16x32xf32> to vector<16xf32>
    %318 = vector.shape_cast %317 : vector<16xf32> to vector<16x1xf32>
    %cst_123 = arith.constant 3.200000e+01 : f32
    %319 = vector.broadcast %cst_123 : f32 to vector<16x1xf32>
    %320 = arith.divf %318, %319 : vector<16x1xf32>
    %321 = vector.broadcast %320 : vector<16x1xf32> to vector<16x32xf32>
    %322 = arith.subf %314, %321 : vector<16x32xf32>
    %323 = arith.mulf %322, %322 : vector<16x32xf32>
    %cst_124 = arith.constant dense<0.000000e+00> : vector<16xf32>
    %324 = vector.multi_reduction <add>, %323, %cst_124 [1] : vector<16x32xf32> to vector<16xf32>
    %325 = vector.shape_cast %324 : vector<16xf32> to vector<16x1xf32>
    %cst_125 = arith.constant 3.200000e+01 : f32
    %326 = vector.broadcast %cst_125 : f32 to vector<16x1xf32>
    %327 = arith.divf %325, %326 : vector<16x1xf32>
    %cst_126 = arith.constant 9.99999974E-6 : f32
    %328 = vector.broadcast %cst_126 : f32 to vector<16x1xf32>
    %329 = arith.addf %327, %328 : vector<16x1xf32>
    %330 = math.rsqrt %329 : vector<16x1xf32>
    %331 = vector.broadcast %330 : vector<16x1xf32> to vector<16x32xf32>
    %332 = arith.mulf %322, %331 : vector<16x32xf32>
    %333 = vector.broadcast %315 : vector<1x32xf32> to vector<16x32xf32>
    %334 = arith.mulf %332, %333 : vector<16x32xf32>
    %335 = vector.broadcast %316 : vector<1x32xf32> to vector<16x32xf32>
    %336 = arith.addf %334, %335 : vector<16x32xf32>
    %c0_127 = arith.constant 0 : index
    %c0_128 = arith.constant 0 : index
    %337 = vector.load %arg22[%c0_127, %c0_128] : memref<32x96xf32, #tpu.memory_space<vmem>>, vector<32x96xf32>
    %cst_129 = arith.constant dense<0.000000e+00> : vector<16x96xf32>
    %338 = tpu.matmul %336, %337, %cst_129 {dimension_numbers = #tpu.dot_dimension_numbers<[1], [0], [0], [1], [0, 0, 1, 1], [], []>} : vector<16x32xf32>, vector<32x96xf32>, vector<16x96xf32> -> vector<16x96xf32>
    %c0_130 = arith.constant 0 : index
    %c0_131 = arith.constant 0 : index
    %339 = vector.load %arg23[%c0_130, %c0_131] : memref<1x96xf32, #tpu.memory_space<vmem>>, vector<1x96xf32>
    %340 = vector.broadcast %339 : vector<1x96xf32> to vector<16x96xf32>
    %341 = arith.addf %338, %340 : vector<16x96xf32>
    %342 = vector.extract_strided_slice %341 {offsets = [0, 0], sizes = [16, 32], strides = [1, 1]} : vector<16x96xf32> to vector<16x32xf32>
    %343 = vector.extract_strided_slice %341 {offsets = [0, 32], sizes = [16, 32], strides = [1, 1]} : vector<16x96xf32> to vector<16x32xf32>
    %344 = vector.extract_strided_slice %341 {offsets = [0, 64], sizes = [16, 32], strides = [1, 1]} : vector<16x96xf32> to vector<16x32xf32>
    %c0_132 = arith.constant 0 : index
    %c0_133 = arith.constant 0 : index
    %345 = vector.load %arg24[%c0_132, %c0_133] : memref<32x32xf32, #tpu.memory_space<vmem>>, vector<32x32xf32>
    %346 = vector.extract_strided_slice %342 {offsets = [0, 0], sizes = [8, 32], strides = [1, 1]} : vector<16x32xf32> to vector<8x32xf32>
    %347 = vector.extract_strided_slice %343 {offsets = [0, 0], sizes = [8, 32], strides = [1, 1]} : vector<16x32xf32> to vector<8x32xf32>
    %348 = vector.extract_strided_slice %344 {offsets = [0, 0], sizes = [8, 32], strides = [1, 1]} : vector<16x32xf32> to vector<8x32xf32>
    %349 = vector.extract_strided_slice %17 {offsets = [0, 0], sizes = [1, 8], strides = [1, 1]} : vector<2x8xf32> to vector<1x8xf32>
    %cst_134 = arith.constant 1.000000e+00 : f32
    %350 = vector.broadcast %cst_134 : f32 to vector<1x8xf32>
    %351 = arith.subf %349, %350 : vector<1x8xf32>
    %cst_135 = arith.constant 1.000000e+09 : f32
    %352 = vector.broadcast %cst_135 : f32 to vector<1x8xf32>
    %353 = arith.mulf %351, %352 : vector<1x8xf32>
    %cst_136 = arith.constant 0.000000e+00 : f32
    %354 = vector.broadcast %cst_136 : f32 to vector<8x32xf32>
    %355 = vector.extract_strided_slice %346 {offsets = [0, 0], sizes = [8, 8], strides = [1, 1]} : vector<8x32xf32> to vector<8x8xf32>
    %356 = vector.extract_strided_slice %347 {offsets = [0, 0], sizes = [8, 8], strides = [1, 1]} : vector<8x32xf32> to vector<8x8xf32>
    %357 = vector.extract_strided_slice %348 {offsets = [0, 0], sizes = [8, 8], strides = [1, 1]} : vector<8x32xf32> to vector<8x8xf32>
    %cst_137 = arith.constant dense<0.000000e+00> : vector<8x8xf32>
    %358 = tpu.matmul %355, %356, %cst_137 {dimension_numbers = #tpu.dot_dimension_numbers<[1], [1], [0], [0], [0, 0, 1, 0], [], []>} : vector<8x8xf32>, vector<8x8xf32>, vector<8x8xf32> -> vector<8x8xf32>
    %cst_138 = arith.constant 0.353553385 : f32
    %359 = vector.broadcast %cst_138 : f32 to vector<8x8xf32>
    %360 = arith.mulf %358, %359 : vector<8x8xf32>
    %cst_139 = arith.constant -1.000000e+09 : f32
    %361 = vector.broadcast %cst_139 : f32 to vector<8x8xf32>
    %362 = arith.select %20, %360, %361 : vector<8x8xi1>, vector<8x8xf32>
    %363 = vector.broadcast %353 : vector<1x8xf32> to vector<8x8xf32>
    %364 = arith.addf %362, %363 : vector<8x8xf32>
    %cst_140 = arith.constant dense<0xFF800000> : vector<8xf32>
    %365 = vector.multi_reduction <maximumf>, %364, %cst_140 [1] : vector<8x8xf32> to vector<8xf32>
    %366 = vector.shape_cast %365 : vector<8xf32> to vector<8x1xf32>
    %367 = vector.broadcast %366 : vector<8x1xf32> to vector<8x8xf32>
    %368 = arith.subf %364, %367 : vector<8x8xf32>
    %369 = math.exp %368 : vector<8x8xf32>
    %cst_141 = arith.constant dense<0.000000e+00> : vector<8xf32>
    %370 = vector.multi_reduction <add>, %369, %cst_141 [1] : vector<8x8xf32> to vector<8xf32>
    %371 = vector.shape_cast %370 : vector<8xf32> to vector<8x1xf32>
    %372 = tpu.reciprocal %371 {approx = true} : vector<8x1xf32> -> vector<8x1xf32>
    %373 = vector.broadcast %372 : vector<8x1xf32> to vector<8x8xf32>
    %374 = arith.mulf %369, %373 : vector<8x8xf32>
    %cst_142 = arith.constant dense<0.000000e+00> : vector<8x8xf32>
    %375 = tpu.matmul %374, %357, %cst_142 {dimension_numbers = #tpu.dot_dimension_numbers<[1], [0], [0], [1], [0, 0, 1, 1], [], []>} : vector<8x8xf32>, vector<8x8xf32>, vector<8x8xf32> -> vector<8x8xf32>
    %376 = vector.extract_strided_slice %345 {offsets = [0, 0], sizes = [8, 32], strides = [1, 1]} : vector<32x32xf32> to vector<8x32xf32>
    %cst_143 = arith.constant dense<0.000000e+00> : vector<8x32xf32>
    %377 = tpu.matmul %375, %376, %cst_143 {dimension_numbers = #tpu.dot_dimension_numbers<[1], [0], [0], [1], [0, 0, 1, 1], [], []>} : vector<8x8xf32>, vector<8x32xf32>, vector<8x32xf32> -> vector<8x32xf32>
    %378 = arith.addf %354, %377 : vector<8x32xf32>
    %379 = vector.extract_strided_slice %346 {offsets = [0, 8], sizes = [8, 8], strides = [1, 1]} : vector<8x32xf32> to vector<8x8xf32>
    %380 = vector.extract_strided_slice %347 {offsets = [0, 8], sizes = [8, 8], strides = [1, 1]} : vector<8x32xf32> to vector<8x8xf32>
    %381 = vector.extract_strided_slice %348 {offsets = [0, 8], sizes = [8, 8], strides = [1, 1]} : vector<8x32xf32> to vector<8x8xf32>
    %cst_144 = arith.constant dense<0.000000e+00> : vector<8x8xf32>
    %382 = tpu.matmul %379, %380, %cst_144 {dimension_numbers = #tpu.dot_dimension_numbers<[1], [1], [0], [0], [0, 0, 1, 0], [], []>} : vector<8x8xf32>, vector<8x8xf32>, vector<8x8xf32> -> vector<8x8xf32>
    %cst_145 = arith.constant 0.353553385 : f32
    %383 = vector.broadcast %cst_145 : f32 to vector<8x8xf32>
    %384 = arith.mulf %382, %383 : vector<8x8xf32>
    %cst_146 = arith.constant -1.000000e+09 : f32
    %385 = vector.broadcast %cst_146 : f32 to vector<8x8xf32>
    %386 = arith.select %20, %384, %385 : vector<8x8xi1>, vector<8x8xf32>
    %387 = vector.broadcast %353 : vector<1x8xf32> to vector<8x8xf32>
    %388 = arith.addf %386, %387 : vector<8x8xf32>
    %cst_147 = arith.constant dense<0xFF800000> : vector<8xf32>
    %389 = vector.multi_reduction <maximumf>, %388, %cst_147 [1] : vector<8x8xf32> to vector<8xf32>
    %390 = vector.shape_cast %389 : vector<8xf32> to vector<8x1xf32>
    %391 = vector.broadcast %390 : vector<8x1xf32> to vector<8x8xf32>
    %392 = arith.subf %388, %391 : vector<8x8xf32>
    %393 = math.exp %392 : vector<8x8xf32>
    %cst_148 = arith.constant dense<0.000000e+00> : vector<8xf32>
    %394 = vector.multi_reduction <add>, %393, %cst_148 [1] : vector<8x8xf32> to vector<8xf32>
    %395 = vector.shape_cast %394 : vector<8xf32> to vector<8x1xf32>
    %396 = tpu.reciprocal %395 {approx = true} : vector<8x1xf32> -> vector<8x1xf32>
    %397 = vector.broadcast %396 : vector<8x1xf32> to vector<8x8xf32>
    %398 = arith.mulf %393, %397 : vector<8x8xf32>
    %cst_149 = arith.constant dense<0.000000e+00> : vector<8x8xf32>
    %399 = tpu.matmul %398, %381, %cst_149 {dimension_numbers = #tpu.dot_dimension_numbers<[1], [0], [0], [1], [0, 0, 1, 1], [], []>} : vector<8x8xf32>, vector<8x8xf32>, vector<8x8xf32> -> vector<8x8xf32>
    %400 = vector.extract_strided_slice %345 {offsets = [8, 0], sizes = [8, 32], strides = [1, 1]} : vector<32x32xf32> to vector<8x32xf32>
    %cst_150 = arith.constant dense<0.000000e+00> : vector<8x32xf32>
    %401 = tpu.matmul %399, %400, %cst_150 {dimension_numbers = #tpu.dot_dimension_numbers<[1], [0], [0], [1], [0, 0, 1, 1], [], []>} : vector<8x8xf32>, vector<8x32xf32>, vector<8x32xf32> -> vector<8x32xf32>
    %402 = arith.addf %378, %401 : vector<8x32xf32>
    %403 = vector.extract_strided_slice %346 {offsets = [0, 16], sizes = [8, 8], strides = [1, 1]} : vector<8x32xf32> to vector<8x8xf32>
    %404 = vector.extract_strided_slice %347 {offsets = [0, 16], sizes = [8, 8], strides = [1, 1]} : vector<8x32xf32> to vector<8x8xf32>
    %405 = vector.extract_strided_slice %348 {offsets = [0, 16], sizes = [8, 8], strides = [1, 1]} : vector<8x32xf32> to vector<8x8xf32>
    %cst_151 = arith.constant dense<0.000000e+00> : vector<8x8xf32>
    %406 = tpu.matmul %403, %404, %cst_151 {dimension_numbers = #tpu.dot_dimension_numbers<[1], [1], [0], [0], [0, 0, 1, 0], [], []>} : vector<8x8xf32>, vector<8x8xf32>, vector<8x8xf32> -> vector<8x8xf32>
    %cst_152 = arith.constant 0.353553385 : f32
    %407 = vector.broadcast %cst_152 : f32 to vector<8x8xf32>
    %408 = arith.mulf %406, %407 : vector<8x8xf32>
    %cst_153 = arith.constant -1.000000e+09 : f32
    %409 = vector.broadcast %cst_153 : f32 to vector<8x8xf32>
    %410 = arith.select %20, %408, %409 : vector<8x8xi1>, vector<8x8xf32>
    %411 = vector.broadcast %353 : vector<1x8xf32> to vector<8x8xf32>
    %412 = arith.addf %410, %411 : vector<8x8xf32>
    %cst_154 = arith.constant dense<0xFF800000> : vector<8xf32>
    %413 = vector.multi_reduction <maximumf>, %412, %cst_154 [1] : vector<8x8xf32> to vector<8xf32>
    %414 = vector.shape_cast %413 : vector<8xf32> to vector<8x1xf32>
    %415 = vector.broadcast %414 : vector<8x1xf32> to vector<8x8xf32>
    %416 = arith.subf %412, %415 : vector<8x8xf32>
    %417 = math.exp %416 : vector<8x8xf32>
    %cst_155 = arith.constant dense<0.000000e+00> : vector<8xf32>
    %418 = vector.multi_reduction <add>, %417, %cst_155 [1] : vector<8x8xf32> to vector<8xf32>
    %419 = vector.shape_cast %418 : vector<8xf32> to vector<8x1xf32>
    %420 = tpu.reciprocal %419 {approx = true} : vector<8x1xf32> -> vector<8x1xf32>
    %421 = vector.broadcast %420 : vector<8x1xf32> to vector<8x8xf32>
    %422 = arith.mulf %417, %421 : vector<8x8xf32>
    %cst_156 = arith.constant dense<0.000000e+00> : vector<8x8xf32>
    %423 = tpu.matmul %422, %405, %cst_156 {dimension_numbers = #tpu.dot_dimension_numbers<[1], [0], [0], [1], [0, 0, 1, 1], [], []>} : vector<8x8xf32>, vector<8x8xf32>, vector<8x8xf32> -> vector<8x8xf32>
    %424 = vector.extract_strided_slice %345 {offsets = [16, 0], sizes = [8, 32], strides = [1, 1]} : vector<32x32xf32> to vector<8x32xf32>
    %cst_157 = arith.constant dense<0.000000e+00> : vector<8x32xf32>
    %425 = tpu.matmul %423, %424, %cst_157 {dimension_numbers = #tpu.dot_dimension_numbers<[1], [0], [0], [1], [0, 0, 1, 1], [], []>} : vector<8x8xf32>, vector<8x32xf32>, vector<8x32xf32> -> vector<8x32xf32>
    %426 = arith.addf %402, %425 : vector<8x32xf32>
    %427 = vector.extract_strided_slice %346 {offsets = [0, 24], sizes = [8, 8], strides = [1, 1]} : vector<8x32xf32> to vector<8x8xf32>
    %428 = vector.extract_strided_slice %347 {offsets = [0, 24], sizes = [8, 8], strides = [1, 1]} : vector<8x32xf32> to vector<8x8xf32>
    %429 = vector.extract_strided_slice %348 {offsets = [0, 24], sizes = [8, 8], strides = [1, 1]} : vector<8x32xf32> to vector<8x8xf32>
    %cst_158 = arith.constant dense<0.000000e+00> : vector<8x8xf32>
    %430 = tpu.matmul %427, %428, %cst_158 {dimension_numbers = #tpu.dot_dimension_numbers<[1], [1], [0], [0], [0, 0, 1, 0], [], []>} : vector<8x8xf32>, vector<8x8xf32>, vector<8x8xf32> -> vector<8x8xf32>
    %cst_159 = arith.constant 0.353553385 : f32
    %431 = vector.broadcast %cst_159 : f32 to vector<8x8xf32>
    %432 = arith.mulf %430, %431 : vector<8x8xf32>
    %cst_160 = arith.constant -1.000000e+09 : f32
    %433 = vector.broadcast %cst_160 : f32 to vector<8x8xf32>
    %434 = arith.select %20, %432, %433 : vector<8x8xi1>, vector<8x8xf32>
    %435 = vector.broadcast %353 : vector<1x8xf32> to vector<8x8xf32>
    %436 = arith.addf %434, %435 : vector<8x8xf32>
    %cst_161 = arith.constant dense<0xFF800000> : vector<8xf32>
    %437 = vector.multi_reduction <maximumf>, %436, %cst_161 [1] : vector<8x8xf32> to vector<8xf32>
    %438 = vector.shape_cast %437 : vector<8xf32> to vector<8x1xf32>
    %439 = vector.broadcast %438 : vector<8x1xf32> to vector<8x8xf32>
    %440 = arith.subf %436, %439 : vector<8x8xf32>
    %441 = math.exp %440 : vector<8x8xf32>
    %cst_162 = arith.constant dense<0.000000e+00> : vector<8xf32>
    %442 = vector.multi_reduction <add>, %441, %cst_162 [1] : vector<8x8xf32> to vector<8xf32>
    %443 = vector.shape_cast %442 : vector<8xf32> to vector<8x1xf32>
    %444 = tpu.reciprocal %443 {approx = true} : vector<8x1xf32> -> vector<8x1xf32>
    %445 = vector.broadcast %444 : vector<8x1xf32> to vector<8x8xf32>
    %446 = arith.mulf %441, %445 : vector<8x8xf32>
    %cst_163 = arith.constant dense<0.000000e+00> : vector<8x8xf32>
    %447 = tpu.matmul %446, %429, %cst_163 {dimension_numbers = #tpu.dot_dimension_numbers<[1], [0], [0], [1], [0, 0, 1, 1], [], []>} : vector<8x8xf32>, vector<8x8xf32>, vector<8x8xf32> -> vector<8x8xf32>
    %448 = vector.extract_strided_slice %345 {offsets = [24, 0], sizes = [8, 32], strides = [1, 1]} : vector<32x32xf32> to vector<8x32xf32>
    %cst_164 = arith.constant dense<0.000000e+00> : vector<8x32xf32>
    %449 = tpu.matmul %447, %448, %cst_164 {dimension_numbers = #tpu.dot_dimension_numbers<[1], [0], [0], [1], [0, 0, 1, 1], [], []>} : vector<8x8xf32>, vector<8x32xf32>, vector<8x32xf32> -> vector<8x32xf32>
    %450 = arith.addf %426, %449 : vector<8x32xf32>
    %c0_165 = arith.constant 0 : index
    %c0_166 = arith.constant 0 : index
    %451 = vector.load %arg33[%c0_165, %c0_166] : memref<16x32xf32, #tpu.memory_space<vmem>>, vector<8x32xf32>
    tpu.vector_store %arg33[%c0_165, %c0_166], %450 {strides = array<i32>} : memref<16x32xf32, #tpu.memory_space<vmem>>, vector<8x32xf32>,
    %452 = vector.extract_strided_slice %342 {offsets = [8, 0], sizes = [8, 32], strides = [1, 1]} : vector<16x32xf32> to vector<8x32xf32>
    %453 = vector.extract_strided_slice %343 {offsets = [8, 0], sizes = [8, 32], strides = [1, 1]} : vector<16x32xf32> to vector<8x32xf32>
    %454 = vector.extract_strided_slice %344 {offsets = [8, 0], sizes = [8, 32], strides = [1, 1]} : vector<16x32xf32> to vector<8x32xf32>
    %455 = vector.extract_strided_slice %17 {offsets = [1, 0], sizes = [1, 8], strides = [1, 1]} : vector<2x8xf32> to vector<1x8xf32>
    %cst_167 = arith.constant 1.000000e+00 : f32
    %456 = vector.broadcast %cst_167 : f32 to vector<1x8xf32>
    %457 = arith.subf %455, %456 : vector<1x8xf32>
    %cst_168 = arith.constant 1.000000e+09 : f32
    %458 = vector.broadcast %cst_168 : f32 to vector<1x8xf32>
    %459 = arith.mulf %457, %458 : vector<1x8xf32>
    %cst_169 = arith.constant 0.000000e+00 : f32
    %460 = vector.broadcast %cst_169 : f32 to vector<8x32xf32>
    %461 = vector.extract_strided_slice %452 {offsets = [0, 0], sizes = [8, 8], strides = [1, 1]} : vector<8x32xf32> to vector<8x8xf32>
    %462 = vector.extract_strided_slice %453 {offsets = [0, 0], sizes = [8, 8], strides = [1, 1]} : vector<8x32xf32> to vector<8x8xf32>
    %463 = vector.extract_strided_slice %454 {offsets = [0, 0], sizes = [8, 8], strides = [1, 1]} : vector<8x32xf32> to vector<8x8xf32>
    %cst_170 = arith.constant dense<0.000000e+00> : vector<8x8xf32>
    %464 = tpu.matmul %461, %462, %cst_170 {dimension_numbers = #tpu.dot_dimension_numbers<[1], [1], [0], [0], [0, 0, 1, 0], [], []>} : vector<8x8xf32>, vector<8x8xf32>, vector<8x8xf32> -> vector<8x8xf32>
    %cst_171 = arith.constant 0.353553385 : f32
    %465 = vector.broadcast %cst_171 : f32 to vector<8x8xf32>
    %466 = arith.mulf %464, %465 : vector<8x8xf32>
    %cst_172 = arith.constant -1.000000e+09 : f32
    %467 = vector.broadcast %cst_172 : f32 to vector<8x8xf32>
    %468 = arith.select %20, %466, %467 : vector<8x8xi1>, vector<8x8xf32>
    %469 = vector.broadcast %459 : vector<1x8xf32> to vector<8x8xf32>
    %470 = arith.addf %468, %469 : vector<8x8xf32>
    %cst_173 = arith.constant dense<0xFF800000> : vector<8xf32>
    %471 = vector.multi_reduction <maximumf>, %470, %cst_173 [1] : vector<8x8xf32> to vector<8xf32>
    %472 = vector.shape_cast %471 : vector<8xf32> to vector<8x1xf32>
    %473 = vector.broadcast %472 : vector<8x1xf32> to vector<8x8xf32>
    %474 = arith.subf %470, %473 : vector<8x8xf32>
    %475 = math.exp %474 : vector<8x8xf32>
    %cst_174 = arith.constant dense<0.000000e+00> : vector<8xf32>
    %476 = vector.multi_reduction <add>, %475, %cst_174 [1] : vector<8x8xf32> to vector<8xf32>
    %477 = vector.shape_cast %476 : vector<8xf32> to vector<8x1xf32>
    %478 = tpu.reciprocal %477 {approx = true} : vector<8x1xf32> -> vector<8x1xf32>
    %479 = vector.broadcast %478 : vector<8x1xf32> to vector<8x8xf32>
    %480 = arith.mulf %475, %479 : vector<8x8xf32>
    %cst_175 = arith.constant dense<0.000000e+00> : vector<8x8xf32>
    %481 = tpu.matmul %480, %463, %cst_175 {dimension_numbers = #tpu.dot_dimension_numbers<[1], [0], [0], [1], [0, 0, 1, 1], [], []>} : vector<8x8xf32>, vector<8x8xf32>, vector<8x8xf32> -> vector<8x8xf32>
    %482 = vector.extract_strided_slice %345 {offsets = [0, 0], sizes = [8, 32], strides = [1, 1]} : vector<32x32xf32> to vector<8x32xf32>
    %cst_176 = arith.constant dense<0.000000e+00> : vector<8x32xf32>
    %483 = tpu.matmul %481, %482, %cst_176 {dimension_numbers = #tpu.dot_dimension_numbers<[1], [0], [0], [1], [0, 0, 1, 1], [], []>} : vector<8x8xf32>, vector<8x32xf32>, vector<8x32xf32> -> vector<8x32xf32>
    %484 = arith.addf %460, %483 : vector<8x32xf32>
    %485 = vector.extract_strided_slice %452 {offsets = [0, 8], sizes = [8, 8], strides = [1, 1]} : vector<8x32xf32> to vector<8x8xf32>
    %486 = vector.extract_strided_slice %453 {offsets = [0, 8], sizes = [8, 8], strides = [1, 1]} : vector<8x32xf32> to vector<8x8xf32>
    %487 = vector.extract_strided_slice %454 {offsets = [0, 8], sizes = [8, 8], strides = [1, 1]} : vector<8x32xf32> to vector<8x8xf32>
    %cst_177 = arith.constant dense<0.000000e+00> : vector<8x8xf32>
    %488 = tpu.matmul %485, %486, %cst_177 {dimension_numbers = #tpu.dot_dimension_numbers<[1], [1], [0], [0], [0, 0, 1, 0], [], []>} : vector<8x8xf32>, vector<8x8xf32>, vector<8x8xf32> -> vector<8x8xf32>
    %cst_178 = arith.constant 0.353553385 : f32
    %489 = vector.broadcast %cst_178 : f32 to vector<8x8xf32>
    %490 = arith.mulf %488, %489 : vector<8x8xf32>
    %cst_179 = arith.constant -1.000000e+09 : f32
    %491 = vector.broadcast %cst_179 : f32 to vector<8x8xf32>
    %492 = arith.select %20, %490, %491 : vector<8x8xi1>, vector<8x8xf32>
    %493 = vector.broadcast %459 : vector<1x8xf32> to vector<8x8xf32>
    %494 = arith.addf %492, %493 : vector<8x8xf32>
    %cst_180 = arith.constant dense<0xFF800000> : vector<8xf32>
    %495 = vector.multi_reduction <maximumf>, %494, %cst_180 [1] : vector<8x8xf32> to vector<8xf32>
    %496 = vector.shape_cast %495 : vector<8xf32> to vector<8x1xf32>
    %497 = vector.broadcast %496 : vector<8x1xf32> to vector<8x8xf32>
    %498 = arith.subf %494, %497 : vector<8x8xf32>
    %499 = math.exp %498 : vector<8x8xf32>
    %cst_181 = arith.constant dense<0.000000e+00> : vector<8xf32>
    %500 = vector.multi_reduction <add>, %499, %cst_181 [1] : vector<8x8xf32> to vector<8xf32>
    %501 = vector.shape_cast %500 : vector<8xf32> to vector<8x1xf32>
    %502 = tpu.reciprocal %501 {approx = true} : vector<8x1xf32> -> vector<8x1xf32>
    %503 = vector.broadcast %502 : vector<8x1xf32> to vector<8x8xf32>
    %504 = arith.mulf %499, %503 : vector<8x8xf32>
    %cst_182 = arith.constant dense<0.000000e+00> : vector<8x8xf32>
    %505 = tpu.matmul %504, %487, %cst_182 {dimension_numbers = #tpu.dot_dimension_numbers<[1], [0], [0], [1], [0, 0, 1, 1], [], []>} : vector<8x8xf32>, vector<8x8xf32>, vector<8x8xf32> -> vector<8x8xf32>
    %506 = vector.extract_strided_slice %345 {offsets = [8, 0], sizes = [8, 32], strides = [1, 1]} : vector<32x32xf32> to vector<8x32xf32>
    %cst_183 = arith.constant dense<0.000000e+00> : vector<8x32xf32>
    %507 = tpu.matmul %505, %506, %cst_183 {dimension_numbers = #tpu.dot_dimension_numbers<[1], [0], [0], [1], [0, 0, 1, 1], [], []>} : vector<8x8xf32>, vector<8x32xf32>, vector<8x32xf32> -> vector<8x32xf32>
    %508 = arith.addf %484, %507 : vector<8x32xf32>
    %509 = vector.extract_strided_slice %452 {offsets = [0, 16], sizes = [8, 8], strides = [1, 1]} : vector<8x32xf32> to vector<8x8xf32>
    %510 = vector.extract_strided_slice %453 {offsets = [0, 16], sizes = [8, 8], strides = [1, 1]} : vector<8x32xf32> to vector<8x8xf32>
    %511 = vector.extract_strided_slice %454 {offsets = [0, 16], sizes = [8, 8], strides = [1, 1]} : vector<8x32xf32> to vector<8x8xf32>
    %cst_184 = arith.constant dense<0.000000e+00> : vector<8x8xf32>
    %512 = tpu.matmul %509, %510, %cst_184 {dimension_numbers = #tpu.dot_dimension_numbers<[1], [1], [0], [0], [0, 0, 1, 0], [], []>} : vector<8x8xf32>, vector<8x8xf32>, vector<8x8xf32> -> vector<8x8xf32>
    %cst_185 = arith.constant 0.353553385 : f32
    %513 = vector.broadcast %cst_185 : f32 to vector<8x8xf32>
    %514 = arith.mulf %512, %513 : vector<8x8xf32>
    %cst_186 = arith.constant -1.000000e+09 : f32
    %515 = vector.broadcast %cst_186 : f32 to vector<8x8xf32>
    %516 = arith.select %20, %514, %515 : vector<8x8xi1>, vector<8x8xf32>
    %517 = vector.broadcast %459 : vector<1x8xf32> to vector<8x8xf32>
    %518 = arith.addf %516, %517 : vector<8x8xf32>
    %cst_187 = arith.constant dense<0xFF800000> : vector<8xf32>
    %519 = vector.multi_reduction <maximumf>, %518, %cst_187 [1] : vector<8x8xf32> to vector<8xf32>
    %520 = vector.shape_cast %519 : vector<8xf32> to vector<8x1xf32>
    %521 = vector.broadcast %520 : vector<8x1xf32> to vector<8x8xf32>
    %522 = arith.subf %518, %521 : vector<8x8xf32>
    %523 = math.exp %522 : vector<8x8xf32>
    %cst_188 = arith.constant dense<0.000000e+00> : vector<8xf32>
    %524 = vector.multi_reduction <add>, %523, %cst_188 [1] : vector<8x8xf32> to vector<8xf32>
    %525 = vector.shape_cast %524 : vector<8xf32> to vector<8x1xf32>
    %526 = tpu.reciprocal %525 {approx = true} : vector<8x1xf32> -> vector<8x1xf32>
    %527 = vector.broadcast %526 : vector<8x1xf32> to vector<8x8xf32>
    %528 = arith.mulf %523, %527 : vector<8x8xf32>
    %cst_189 = arith.constant dense<0.000000e+00> : vector<8x8xf32>
    %529 = tpu.matmul %528, %511, %cst_189 {dimension_numbers = #tpu.dot_dimension_numbers<[1], [0], [0], [1], [0, 0, 1, 1], [], []>} : vector<8x8xf32>, vector<8x8xf32>, vector<8x8xf32> -> vector<8x8xf32>
    %530 = vector.extract_strided_slice %345 {offsets = [16, 0], sizes = [8, 32], strides = [1, 1]} : vector<32x32xf32> to vector<8x32xf32>
    %cst_190 = arith.constant dense<0.000000e+00> : vector<8x32xf32>
    %531 = tpu.matmul %529, %530, %cst_190 {dimension_numbers = #tpu.dot_dimension_numbers<[1], [0], [0], [1], [0, 0, 1, 1], [], []>} : vector<8x8xf32>, vector<8x32xf32>, vector<8x32xf32> -> vector<8x32xf32>
    %532 = arith.addf %508, %531 : vector<8x32xf32>
    %533 = vector.extract_strided_slice %452 {offsets = [0, 24], sizes = [8, 8], strides = [1, 1]} : vector<8x32xf32> to vector<8x8xf32>
    %534 = vector.extract_strided_slice %453 {offsets = [0, 24], sizes = [8, 8], strides = [1, 1]} : vector<8x32xf32> to vector<8x8xf32>
    %535 = vector.extract_strided_slice %454 {offsets = [0, 24], sizes = [8, 8], strides = [1, 1]} : vector<8x32xf32> to vector<8x8xf32>
    %cst_191 = arith.constant dense<0.000000e+00> : vector<8x8xf32>
    %536 = tpu.matmul %533, %534, %cst_191 {dimension_numbers = #tpu.dot_dimension_numbers<[1], [1], [0], [0], [0, 0, 1, 0], [], []>} : vector<8x8xf32>, vector<8x8xf32>, vector<8x8xf32> -> vector<8x8xf32>
    %cst_192 = arith.constant 0.353553385 : f32
    %537 = vector.broadcast %cst_192 : f32 to vector<8x8xf32>
    %538 = arith.mulf %536, %537 : vector<8x8xf32>
    %cst_193 = arith.constant -1.000000e+09 : f32
    %539 = vector.broadcast %cst_193 : f32 to vector<8x8xf32>
    %540 = arith.select %20, %538, %539 : vector<8x8xi1>, vector<8x8xf32>
    %541 = vector.broadcast %459 : vector<1x8xf32> to vector<8x8xf32>
    %542 = arith.addf %540, %541 : vector<8x8xf32>
    %cst_194 = arith.constant dense<0xFF800000> : vector<8xf32>
    %543 = vector.multi_reduction <maximumf>, %542, %cst_194 [1] : vector<8x8xf32> to vector<8xf32>
    %544 = vector.shape_cast %543 : vector<8xf32> to vector<8x1xf32>
    %545 = vector.broadcast %544 : vector<8x1xf32> to vector<8x8xf32>
    %546 = arith.subf %542, %545 : vector<8x8xf32>
    %547 = math.exp %546 : vector<8x8xf32>
    %cst_195 = arith.constant dense<0.000000e+00> : vector<8xf32>
    %548 = vector.multi_reduction <add>, %547, %cst_195 [1] : vector<8x8xf32> to vector<8xf32>
    %549 = vector.shape_cast %548 : vector<8xf32> to vector<8x1xf32>
    %550 = tpu.reciprocal %549 {approx = true} : vector<8x1xf32> -> vector<8x1xf32>
    %551 = vector.broadcast %550 : vector<8x1xf32> to vector<8x8xf32>
    %552 = arith.mulf %547, %551 : vector<8x8xf32>
    %cst_196 = arith.constant dense<0.000000e+00> : vector<8x8xf32>
    %553 = tpu.matmul %552, %535, %cst_196 {dimension_numbers = #tpu.dot_dimension_numbers<[1], [0], [0], [1], [0, 0, 1, 1], [], []>} : vector<8x8xf32>, vector<8x8xf32>, vector<8x8xf32> -> vector<8x8xf32>
    %554 = vector.extract_strided_slice %345 {offsets = [24, 0], sizes = [8, 32], strides = [1, 1]} : vector<32x32xf32> to vector<8x32xf32>
    %cst_197 = arith.constant dense<0.000000e+00> : vector<8x32xf32>
    %555 = tpu.matmul %553, %554, %cst_197 {dimension_numbers = #tpu.dot_dimension_numbers<[1], [0], [0], [1], [0, 0, 1, 1], [], []>} : vector<8x8xf32>, vector<8x32xf32>, vector<8x32xf32> -> vector<8x32xf32>
    %556 = arith.addf %532, %555 : vector<8x32xf32>
    %c8_198 = arith.constant 8 : index
    %c0_199 = arith.constant 0 : index
    %557 = vector.load %arg33[%c8_198, %c0_199] : memref<16x32xf32, #tpu.memory_space<vmem>>, vector<8x32xf32>
    tpu.vector_store %arg33[%c8_198, %c0_199], %556 {strides = array<i32>} : memref<16x32xf32, #tpu.memory_space<vmem>>, vector<8x32xf32>,
    %c0_200 = arith.constant 0 : index
    %c0_201 = arith.constant 0 : index
    %558 = vector.load %arg33[%c0_200, %c0_201] : memref<16x32xf32, #tpu.memory_space<vmem>>, vector<16x32xf32>
    %559 = arith.addf %314, %558 : vector<16x32xf32>
    %c0_202 = arith.constant 0 : index
    %c0_203 = arith.constant 0 : index
    %560 = vector.load %arg25[%c0_202, %c0_203] : memref<1x32xf32, #tpu.memory_space<vmem>>, vector<1x32xf32>
    %561 = vector.broadcast %560 : vector<1x32xf32> to vector<16x32xf32>
    %562 = arith.addf %559, %561 : vector<16x32xf32>
    %c0_204 = arith.constant 0 : index
    %c0_205 = arith.constant 0 : index
    %563 = vector.load %arg26[%c0_204, %c0_205] : memref<1x32xf32, #tpu.memory_space<vmem>>, vector<1x32xf32>
    %c0_206 = arith.constant 0 : index
    %c0_207 = arith.constant 0 : index
    %564 = vector.load %arg27[%c0_206, %c0_207] : memref<1x32xf32, #tpu.memory_space<vmem>>, vector<1x32xf32>
    %cst_208 = arith.constant dense<0.000000e+00> : vector<16xf32>
    %565 = vector.multi_reduction <add>, %562, %cst_208 [1] : vector<16x32xf32> to vector<16xf32>
    %566 = vector.shape_cast %565 : vector<16xf32> to vector<16x1xf32>
    %cst_209 = arith.constant 3.200000e+01 : f32
    %567 = vector.broadcast %cst_209 : f32 to vector<16x1xf32>
    %568 = arith.divf %566, %567 : vector<16x1xf32>
    %569 = vector.broadcast %568 : vector<16x1xf32> to vector<16x32xf32>
    %570 = arith.subf %562, %569 : vector<16x32xf32>
    %571 = arith.mulf %570, %570 : vector<16x32xf32>
    %cst_210 = arith.constant dense<0.000000e+00> : vector<16xf32>
    %572 = vector.multi_reduction <add>, %571, %cst_210 [1] : vector<16x32xf32> to vector<16xf32>
    %573 = vector.shape_cast %572 : vector<16xf32> to vector<16x1xf32>
    %cst_211 = arith.constant 3.200000e+01 : f32
    %574 = vector.broadcast %cst_211 : f32 to vector<16x1xf32>
    %575 = arith.divf %573, %574 : vector<16x1xf32>
    %cst_212 = arith.constant 9.99999974E-6 : f32
    %576 = vector.broadcast %cst_212 : f32 to vector<16x1xf32>
    %577 = arith.addf %575, %576 : vector<16x1xf32>
    %578 = math.rsqrt %577 : vector<16x1xf32>
    %579 = vector.broadcast %578 : vector<16x1xf32> to vector<16x32xf32>
    %580 = arith.mulf %570, %579 : vector<16x32xf32>
    %581 = vector.broadcast %563 : vector<1x32xf32> to vector<16x32xf32>
    %582 = arith.mulf %580, %581 : vector<16x32xf32>
    %583 = vector.broadcast %564 : vector<1x32xf32> to vector<16x32xf32>
    %584 = arith.addf %582, %583 : vector<16x32xf32>
    %c0_213 = arith.constant 0 : index
    %c0_214 = arith.constant 0 : index
    %585 = vector.load %arg28[%c0_213, %c0_214] : memref<32x128xf32, #tpu.memory_space<vmem>>, vector<32x128xf32>
    %cst_215 = arith.constant dense<0.000000e+00> : vector<16x128xf32>
    %586 = tpu.matmul %584, %585, %cst_215 {dimension_numbers = #tpu.dot_dimension_numbers<[1], [0], [0], [1], [0, 0, 1, 1], [], []>} : vector<16x32xf32>, vector<32x128xf32>, vector<16x128xf32> -> vector<16x128xf32>
    %c0_216 = arith.constant 0 : index
    %c0_217 = arith.constant 0 : index
    %587 = vector.load %arg29[%c0_216, %c0_217] : memref<1x128xf32, #tpu.memory_space<vmem>>, vector<1x128xf32>
    %588 = vector.broadcast %587 : vector<1x128xf32> to vector<16x128xf32>
    %589 = arith.addf %586, %588 : vector<16x128xf32>
    %cst_218 = arith.constant 5.000000e-01 : f32
    %590 = vector.broadcast %cst_218 : f32 to vector<16x128xf32>
    %591 = arith.mulf %590, %589 : vector<16x128xf32>
    %cst_219 = arith.constant 4.471500e-02 : f32
    %592 = vector.broadcast %cst_219 : f32 to vector<16x128xf32>
    %593 = arith.mulf %592, %589 : vector<16x128xf32>
    %594 = arith.mulf %593, %589 : vector<16x128xf32>
    %595 = arith.mulf %594, %589 : vector<16x128xf32>
    %596 = arith.addf %589, %595 : vector<16x128xf32>
    %cst_220 = arith.constant 0.797884583 : f32
    %597 = vector.broadcast %cst_220 : f32 to vector<16x128xf32>
    %598 = arith.mulf %597, %596 : vector<16x128xf32>
    %599 = math.tanh %598 : vector<16x128xf32>
    %cst_221 = arith.constant 1.000000e+00 : f32
    %600 = vector.broadcast %cst_221 : f32 to vector<16x128xf32>
    %601 = arith.addf %600, %599 : vector<16x128xf32>
    %602 = arith.mulf %591, %601 : vector<16x128xf32>
    %c0_222 = arith.constant 0 : index
    %c0_223 = arith.constant 0 : index
    %603 = vector.load %arg30[%c0_222, %c0_223] : memref<128x32xf32, #tpu.memory_space<vmem>>, vector<128x32xf32>
    %cst_224 = arith.constant dense<0.000000e+00> : vector<16x32xf32>
    %604 = tpu.matmul %602, %603, %cst_224 {dimension_numbers = #tpu.dot_dimension_numbers<[1], [0], [0], [1], [0, 0, 1, 1], [], []>} : vector<16x128xf32>, vector<128x32xf32>, vector<16x32xf32> -> vector<16x32xf32>
    %c0_225 = arith.constant 0 : index
    %c0_226 = arith.constant 0 : index
    %605 = vector.load %arg31[%c0_225, %c0_226] : memref<1x32xf32, #tpu.memory_space<vmem>>, vector<1x32xf32>
    %606 = vector.broadcast %605 : vector<1x32xf32> to vector<16x32xf32>
    %607 = arith.addf %604, %606 : vector<16x32xf32>
    %608 = arith.addf %562, %607 : vector<16x32xf32>
    %c0_227 = arith.constant 0 : index
    %c0_228 = arith.constant 0 : index
    %609 = vector.load %arg6[%c0_227, %c0_228] : memref<1x32xf32, #tpu.memory_space<vmem>>, vector<1x32xf32>
    %c0_229 = arith.constant 0 : index
    %c0_230 = arith.constant 0 : index
    %610 = vector.load %arg7[%c0_229, %c0_230] : memref<1x32xf32, #tpu.memory_space<vmem>>, vector<1x32xf32>
    %cst_231 = arith.constant dense<0.000000e+00> : vector<16xf32>
    %611 = vector.multi_reduction <add>, %608, %cst_231 [1] : vector<16x32xf32> to vector<16xf32>
    %612 = vector.shape_cast %611 : vector<16xf32> to vector<16x1xf32>
    %cst_232 = arith.constant 3.200000e+01 : f32
    %613 = vector.broadcast %cst_232 : f32 to vector<16x1xf32>
    %614 = arith.divf %612, %613 : vector<16x1xf32>
    %615 = vector.broadcast %614 : vector<16x1xf32> to vector<16x32xf32>
    %616 = arith.subf %608, %615 : vector<16x32xf32>
    %617 = arith.mulf %616, %616 : vector<16x32xf32>
    %cst_233 = arith.constant dense<0.000000e+00> : vector<16xf32>
    %618 = vector.multi_reduction <add>, %617, %cst_233 [1] : vector<16x32xf32> to vector<16xf32>
    %619 = vector.shape_cast %618 : vector<16xf32> to vector<16x1xf32>
    %cst_234 = arith.constant 3.200000e+01 : f32
    %620 = vector.broadcast %cst_234 : f32 to vector<16x1xf32>
    %621 = arith.divf %619, %620 : vector<16x1xf32>
    %cst_235 = arith.constant 9.99999974E-6 : f32
    %622 = vector.broadcast %cst_235 : f32 to vector<16x1xf32>
    %623 = arith.addf %621, %622 : vector<16x1xf32>
    %624 = math.rsqrt %623 : vector<16x1xf32>
    %625 = vector.broadcast %624 : vector<16x1xf32> to vector<16x32xf32>
    %626 = arith.mulf %616, %625 : vector<16x32xf32>
    %627 = vector.broadcast %609 : vector<1x32xf32> to vector<16x32xf32>
    %628 = arith.mulf %626, %627 : vector<16x32xf32>
    %629 = vector.broadcast %610 : vector<1x32xf32> to vector<16x32xf32>
    %630 = arith.addf %628, %629 : vector<16x32xf32>
    %cst_236 = arith.constant dense<0.000000e+00> : vector<16x64xf32>
    %631 = tpu.matmul %630, %12, %cst_236 {dimension_numbers = #tpu.dot_dimension_numbers<[1], [1], [0], [0], [0, 0, 1, 0], [], []>} : vector<16x32xf32>, vector<64x32xf32>, vector<16x64xf32> -> vector<16x64xf32>
    %c0_237 = arith.constant 0 : index
    %c0_238 = arith.constant 0 : index
    %632 = vector.load %arg3[%c0_237, %c0_238] : memref<16x1xi32, #tpu.memory_space<vmem>>, vector<16x1xi32>
    %cst_239 = arith.constant dense<0xFF800000> : vector<16xf32>
    %633 = vector.multi_reduction <maximumf>, %631, %cst_239 [1] : vector<16x64xf32> to vector<16xf32>
    %634 = vector.shape_cast %633 : vector<16xf32> to vector<16x1xf32>
    %635 = vector.broadcast %634 : vector<16x1xf32> to vector<16x64xf32>
    %636 = arith.subf %631, %635 : vector<16x64xf32>
    %637 = math.exp %636 : vector<16x64xf32>
    %cst_240 = arith.constant dense<0.000000e+00> : vector<16xf32>
    %638 = vector.multi_reduction <add>, %637, %cst_240 [1] : vector<16x64xf32> to vector<16xf32>
    %639 = vector.shape_cast %638 : vector<16xf32> to vector<16x1xf32>
    %640 = math.log %639 : vector<16x1xf32>
    %641 = arith.addf %640, %634 : vector<16x1xf32>
    %c-100_i32 = arith.constant -100 : i32
    %642 = vector.broadcast %c-100_i32 : i32 to vector<16x1xi32>
    %643 = arith.cmpi eq, %632, %642 : vector<16x1xi32>
    %c0_i32 = arith.constant 0 : i32
    %644 = vector.broadcast %c0_i32 : i32 to vector<16x1xi32>
    %645 = arith.select %643, %644, %632 : vector<16x1xi1>, vector<16x1xi32>
    %646 = vector.broadcast %645 : vector<16x1xi32> to vector<16x64xi32>
    %647 = arith.cmpi eq, %2, %646 : vector<16x64xi32>
    %648 = arith.extui %647 : vector<16x64xi1> to vector<16x64xi32>
    %649 = arith.sitofp %648 : vector<16x64xi32> to vector<16x64xf32>
    %650 = arith.mulf %631, %649 : vector<16x64xf32>
    %cst_241 = arith.constant dense<0.000000e+00> : vector<16xf32>
    %651 = vector.multi_reduction <add>, %650, %cst_241 [1] : vector<16x64xf32> to vector<16xf32>
    %652 = vector.shape_cast %651 : vector<16xf32> to vector<16x1xf32>
    %c-100_i32_242 = arith.constant -100 : i32
    %653 = vector.broadcast %c-100_i32_242 : i32 to vector<16x1xi32>
    %654 = arith.cmpi ne, %632, %653 : vector<16x1xi32>
    %655 = arith.extui %654 : vector<16x1xi1> to vector<16x1xi32>
    %656 = arith.sitofp %655 : vector<16x1xi32> to vector<16x1xf32>
    %657 = arith.subf %641, %652 : vector<16x1xf32>
    %658 = arith.mulf %657, %656 : vector<16x1xf32>
    %659 = vector.shape_cast %658 : vector<16x1xf32> to vector<1x16x1xf32>
    %cst_243 = arith.constant dense<0.000000e+00> : vector<1xf32>
    %660 = vector.multi_reduction <add>, %659, %cst_243 [1, 2] : vector<1x16x1xf32> to vector<1xf32>
    %661 = vector.shape_cast %660 : vector<1xf32> to vector<1x1x1xf32>
    %662 = vector.extract %661[0, 0, 0] : f32 from vector<1x1x1xf32>
    %663 = vector.shape_cast %656 : vector<16x1xf32> to vector<1x16x1xf32>
    %cst_244 = arith.constant dense<0.000000e+00> : vector<1xf32>
    %664 = vector.multi_reduction <add>, %663, %cst_244 [1, 2] : vector<1x16x1xf32> to vector<1xf32>
    %665 = vector.shape_cast %664 : vector<1xf32> to vector<1x1x1xf32>
    %666 = vector.extract %665[0, 0, 0] : f32 from vector<1x1x1xf32>
    %cst_245 = arith.constant 1.000000e+00 : f32
    %667 = arith.maximumf %666, %cst_245 : f32
    %668 = arith.divf %662, %667 : f32
    %669 = vector.broadcast %668 : f32 to vector<1x1xf32>
    %c0_246 = arith.constant 0 : index
    %c0_247 = arith.constant 0 : index
    %670 = vector.load %arg32[%c0_246, %c0_247] : memref<1x1xf32, #tpu.memory_space<vmem>>, vector<1x1xf32>
    tpu.vector_store %arg32[%c0_246, %c0_247], %669 {strides = array<i32>} : memref<1x1xf32, #tpu.memory_space<vmem>>, vector<1x1xf32>,
    return
  }
}

</mosaic_0001>

<bundles_post_ra>
// kernel: gpt2_translation_loss.1
= control target key start
LH: loop header
LB: loop body
LE: loop exit
PB: predicated region body
PF: predicated region fallthrough
CT: control target
= control target key end

     0   :  { %s6362_s6 = smov 1   ;;  %s6363_s10 = smov 2   ;;  %s7245_s0 = inlined_call_operand.smem [shape: u32[33], index: -1, kind: input, shape index: {}] }
   0x1   :  { %s6418_s5 = sld [smem:[%s7245_s0]]   ;;  %s6364_s14 = smov 3  }
   0x2   :  { %s6423_s9 = sld [smem:[%s7245_s0 + %s6362_s6]]   ;;  %s6365_s18 = smov 4  }
   0x3   :  { %s6428_s13 = sld [smem:[%s7245_s0 + %s6363_s10]]   ;;  %s6366_s22 = smov 5  }
   0x4   :  { %s6433_s17 = sld [smem:[%s7245_s0 + %s6364_s14]]   ;;  %s6367_s26 = smov 6  }
   0x5   :  { %s6438_s21 = sld [smem:[%s7245_s0 + %s6365_s18]]   ;;  %s6368_s30 = smov 7  }
   0x6   :  { %s6443_s25 = sld [smem:[%s7245_s0 + %s6366_s22]]   ;;  %s6369_s4 = smov 8  }
   0x7   :  { %s6448_s29 = sld [smem:[%s7245_s0 + %s6367_s26]]   ;;  %s6370_s10 = smov 9  }
   0x8   :  { %s6453_s3 = sld [smem:[%s7245_s0 + %s6368_s30]]   ;;  %s6371_s15 = smov 10  }
   0x9   :  { %s6458_s8 = sld [smem:[%s7245_s0 + %s6369_s4]]   ;;  %s6372_s20 = smov 11  }
   0xa   :  { %7251 = sst [smem:[#allocation6_spill]] %s6433_s17  ;;  %s6373_s26 = smov 12  }
   0xb   :  { %s6463_s14 = sld [smem:[%s7245_s0 + %s6370_s10]]   ;;  %s6374_s1 = smov 13  }
   0xc   :  { %s6468_s19 = sld [smem:[%s7245_s0 + %s6371_s15]]   ;;  %s6375_s7 = smov 14  }
   0xd   :  { %7252 = sst [smem:[#allocation7_spill]] %s6448_s29  ;;  %s6376_s15 = smov 15  }
   0xe   :  { %7253 = sst [smem:[#allocation8_spill]] %s6453_s3  ;;  %s6377_s22 = smov 16  }
   0xf   :  { %s6473_s24 = sld [smem:[%s7245_s0 + %s6372_s20]]   ;;  %s6378_s28 = smov 17  }
  0x10   :  { %s6478_s30 = sld [smem:[%s7245_s0 + %s6373_s26]]  }
  0x11   :  { %s6483_s6 = sld [smem:[%s7245_s0 + %s6374_s1]]  }
  0x12   :  { %s6488_s12 = sld [smem:[%s7245_s0 + %s6375_s7]]   ;;  %s6379_s7 = smov 18  }
  0x13   :  { %s6493_s20 = sld [smem:[%s7245_s0 + %s6376_s15]]   ;;  %s6380_s15 = smov 19  }
  0x14   :  { %s6498_s27 = sld [smem:[%s7245_s0 + %s6377_s22]]   ;;  %s6381_s22 = smov 20  }
  0x15   :  { %s6503_s4 = sld [smem:[%s7245_s0 + %s6378_s28]]   ;;  %s6382_s28 = smov 21  }
  0x16   :  { %s6508_s3 = sld [smem:[%s7245_s0 + %s6379_s7]]   ;;  %s6383_s7 = smov 22  }
  0x17   :  { %s6513_s29 = sld [smem:[%s7245_s0 + %s6380_s15]]   ;;  %s6384_s15 = smov 23  }
  0x18   :  { %s6518_s17 = sld [smem:[%s7245_s0 + %s6381_s22]]   ;;  %s6385_s22 = smov 24  }
  0x1b   :  { %7254 = sst [smem:[#allocation9_spill]] %s6503_s4 }
  0x1c   :  { %7255 = sst [smem:[#allocation10_spill]] %s6508_s3 }
  0x1d   :  { %7256 = sst [smem:[#allocation11_spill]] %s6513_s29 }
  0x1e   :  { %7257 = sst [smem:[#allocation12_spill]] %s6518_s17 }
  0x1f   :  { %s6523_s4 = sld [smem:[%s7245_s0 + %s6382_s28]]   ;;  %s6386_s28 = smov 25  }
  0x20   :  { %s6528_s3 = sld [smem:[%s7245_s0 + %s6383_s7]]   ;;  %s6387_s7 = smov 26  }
  0x21   :  { %s6533_s29 = sld [smem:[%s7245_s0 + %s6384_s15]]   ;;  %s6388_s15 = smov 27  }
  0x22   :  { %s6538_s17 = sld [smem:[%s7245_s0 + %s6385_s22]]   ;;  %s6389_s22 = smov 28  }
  0x25   :  { %7258 = sst [smem:[#allocation13_spill]] %s6523_s4 }
  0x26   :  { %7259 = sst [smem:[#allocation14_spill]] %s6528_s3 }
  0x27   :  { %7260 = sst [smem:[#allocation15_spill]] %s6533_s29 }
  0x28   :  { %7261 = sst [smem:[#allocation16_spill]] %s6538_s17 }
  0x29   :  { %s6543_s4 = sld [smem:[%s7245_s0 + %s6386_s28]]   ;;  %s6390_s28 = smov 29  }
  0x2a   :  { %s6548_s3 = sld [smem:[%s7245_s0 + %s6387_s7]]   ;;  %s6391_s7 = smov 30  }
  0x2b   :  { %s6553_s29 = sld [smem:[%s7245_s0 + %s6388_s15]]   ;;  %s6392_s15 = smov 31  }
  0x2c   :  { %s6558_s17 = sld [smem:[%s7245_s0 + %s6389_s22]]   ;;  %s6393_s22 = smov 32  }
  0x2f   :  { %7262 = sst [smem:[#allocation17_spill]] %s6543_s4 }
  0x30   :  { %7263 = sst [smem:[#allocation18_spill]] %s6548_s3 }
  0x31   :  { %7264 = sst [smem:[#allocation19_spill]] %s6553_s29 }
  0x32   :  { %7265 = sst [smem:[#allocation20_spill]] %s6558_s17 }
  0x33   :  { %s6563_s4 = sld [smem:[%s7245_s0 + %s6390_s28]]  }
  0x34   :  { %s6568_s3 = sld [smem:[%s7245_s0 + %s6391_s7]]  }
  0x35   :  { %s6573_s29 = sld [smem:[%s7245_s0 + %s6392_s15]]  }
  0x36   :  { %s6578_s17 = sld [smem:[%s7245_s0 + %s6393_s22]]  }
  0x37   :  { %v137_v0 = vld [vmem:[%s6423_s9] sm:$0xff]  ;;  %v6394_v2 = vmov 0   ;;  %v174_v4 = vld [vmem:[%s6443_s25 + $0x8] sm:$0xff] }
  0x38   :  { %v135_v1 = vld [vmem:[%s6418_s5] sm:$0xff]  ;;  %6234 = vset.pattern.permute.xlu0 %v6394_v2  ;;  %6235 = vset.pattern.permute.xlu1 %v6394_v2 }
  0x39   :  { %v173_v3 = vld [vmem:[%s6443_s25] sm:$0xff]  ;;  %154 = vperm.xlu0 %6234, %v137_v0   ;;  %142 = vperm.xlu1 %6235, %v135_v1  }
  0x3a   :  { %v6014_v5 = vpack.c.bf16 %v174_v4, %v173_v3 }
  0x3b   :  { %70 = vsyncpa [#allocation4], 0  ;;  %v138_v6 = vld [vmem:[%s6423_s9 + $0x8] sm:$0xff]  ;;  %v165_v8 = vld [vmem:[%s6438_s21] sm:$0xff]  ;;  %v139_v11 = vlaneseq  ;;  %vm175_vm0 = vcmask 130048   ;;  %v6395_v15 = vmov 0.0  }
  0x3c   :  { %v136_v7 = vld [vmem:[%s6418_s5 + $0x8] sm:$0xff]  ;;  %6015 = vmatprep.subr.bf16.mxu0 %v6014_v5  ;;  %v167_v17 = vld [vmem:[%s6438_s21 + $0x10] sm:$0xff]  ;;  %v168_v18 = vld [vmem:[%s6438_s21 + $0x18] sm:$0xff]  ;;  %vm257_vm4 = vcmask 523264   ;;  %vm345_vm6 = vcmask 261120   ;;  %vm6396_vm7 = vmmov 0  }
  0x3d   :  { %v166_v9 = vld [vmem:[%s6438_s21 + $0x8] sm:$0xff]  ;;  %6017 = vmatpush3.bf16.msra.mxu0 %v6014_v5  ;;  %157 = vperm.xlu0 %6234, %v138_v6   ;;  %v6592_v12 = vand.u32 127, %v139_v11  ;;  %v6601_v20 = vpack.c.bf16 %v168_v18, %v167_v17  ;;  %v169_v23 = vld [vmem:[%s6438_s21 + $0x20] sm:$0xff]  ;;  %v171_v26 = vld [vmem:[%s6438_s21 + $0x30] sm:$0xff]  ;;  %s6397_s0 = smov 96   ;;  %s6398_s5 = smov 88  }
  0x3e   :  { %v6588_v10 = vpack.c.bf16 %v166_v9, %v165_v8  ;;  %145 = vperm.xlu1 %6235, %v136_v7   ;;  %v170_v24 = vld [vmem:[%s6438_s21 + $0x28] sm:$0xff]  ;;  %v172_v27 = vld [vmem:[%s6438_s21 + $0x38] sm:$0xff]  ;;  %v389_v45 = vld [vmem:[%s6468_s19] sm:$0xff]  ;;  %s6399_s9 = smov 120   ;;  %vm490_vm8 = vcmask 64512   ;;  %s6401_s21 = smov 56  }
  0x3f   :  { %v6611_v25 = vpack.c.bf16 %v170_v24, %v169_v23  ;;  %v6617_v28 = vpack.c.bf16 %v172_v27, %v171_v26  ;;  %v390_v46 = vld [vmem:[%s6468_s19 + $0x8] sm:$0xff]  ;;  %v391_v47 = vld [vmem:[%s6468_s19 + $0x10] sm:$0xff]  ;;  %v392_v49 = vld [vmem:[%s6468_s19 + $0x18] sm:$0xff]  ;;  %s6402_s25 = smov 112   ;;  %s6405_s19 = smov 104  }
  0x40   :  { %6019 = vmatprep.subr.bf16.mxu0 %v6588_v10  ;;  %v6034_v48 = vpack.c.bf16 %v390_v46, %v389_v45  ;;  %v6038_v50 = vpack.c.bf16 %v392_v49, %v391_v47  ;;  %v5330_v58 = vld [vmem:[%s6458_s8] ss:$0 sm:$0xff]  ;;  %s6403_s8 = smov 80   ;;  %s6407_s28 = smov 40   ;;  %vm6131_vm10 = vmpackc.low %vm345_vm6, %vm345_vm6 }
  0x41   :  { %v5331_v60 = vld [vmem:[%s6463_s14] ss:$0 sm:$0xff]  ;;  %s6404_s14 = smov 72   ;;  %s7273_s1 = sld [smem:[#allocation13_spill]] }
  0x42   :  { %6035 = vmatprep.subr.bf16.mxu1 %v6034_v48  ;;  %v5332_v3 = vld [vmem:[%s6473_s24] ss:$0 sm:$0xff]  ;;  %s6406_s24 = smov 48   ;;  %s7274_s2 = sld [smem:[#allocation15_spill]] }
  0x43   :  { %6037 = vmatpush3.bf16.msra.mxu1 %v6034_v48  ;;  %v339_v9 = vld [vmem:[%s6428_s13] sm:$0x3]  ;;  %s6400_s13 = smov 64   ;;  %s7275_s7 = sld [smem:[#allocation16_spill]] }
  0x44   :  { %6039 = vmatprep.subr.bf16.mxu1 %v6038_v50  ;;  %s7276_s10 = sld [smem:[#allocation17_spill]]  ;;  %s7277_s11 = sld [smem:[#allocation18_spill]] }
  0x45   :  { %s7278_s15 = sld [smem:[#allocation19_spill]]  ;;  %s7279_s16 = sld [smem:[#allocation20_spill]] }
  0x46   :  { %s6408_s23 = smov 1.0  }
  0x47   :  { %6041 = vmatpush3.bf16.msra.mxu1 %v6038_v50 }
  0x48   :  { %5652 = vmatprep.subr.mxu1 %v6395_v15 }
  0xb8   :  { %v155_v13 = vpop.permute.xlu0 %154  ;;  %v143_v14 = vpop.permute.xlu1 %142 }
  0xb9   :  { %vm159_vm1 = vcmp.eq.s32.totalorder %v6592_v12, %v155_v13  ;;  %vm147_vm2 = vcmp.eq.s32.totalorder %v6592_v12, %v143_v14  ;;  %v6670_v13 = vshrl.u32 %v139_v11, 7  ;;  %v5335_v14 = vadd.f32 -1.0, %v339_v9 }
  0xba   :  { %v5324_v16 = vsel %vm159_vm1, 1.0, %v6395_v15  ;;  %v5322_v21 = vsel %vm147_vm2, 1.0, %v6395_v15  ;;  %vm5243_vm1 = vcmask 7168   ;;  %vm5274_vm2 = vcmask 0  }
  0xbb   :  { %5619 = vmatprep.mubr.msk.f32.mxu0 %vm175_vm0, %v5324_v16  ;;  %v569_v16 = vsub.s32 0, %v6670_v13  ;;  %v6673_v17 = vmul.f32 1e+09, %v5335_v14  ;;  %vm6677_vm9 = vcmp.le.s32.totalorder %v6592_v12, %v6670_v13 }
  0xbc   :  { %v158_v19 = vpop.permute.xlu0 %157 }
  0xbd   :  { %vm160_vm3 = vcmp.eq.s32.totalorder %v6592_v12, %v158_v19  ;;  %v146_v29 = vpop.permute.xlu1 %145 }
  0xbe   :  { %v5325_v22 = vsel %vm160_vm3, 1.0, %v6395_v15  ;;  %vm148_vm5 = vcmp.eq.s32.totalorder %v6592_v12, %v146_v29 }
  0xbf   :  { %5620 = vmatmul.mubr.msk.f32.vlgmr.msra.gmra.mrb[0].mxu0 %vm175_vm0, %v5325_v22  ;;  %v5323_v30 = vsel %vm148_vm5, 1.0, %v6395_v15 }
  0xc0   :  { %6021 = vmatpush3.bf16.msra.mxu0 %v6588_v10  ;;  %5638 = vmatprep.mubr.msk.f32.mxu0 %vm257_vm4, %v5322_v21  ;;  %v6682_v21 = vrot.slane %v6673_v17, %v569_v16 }
  0xc1   :  { %6023 = vmatprep.subr.bf16.mxu0 %v6601_v20 }
  0xc4   :  { %6025 = vmatpush3.bf16.msra.mxu0 %v6601_v20 }
  0xc5   :  { %6027 = vmatprep.subr.bf16.mxu0 %v6611_v25 }
  0xc8   :  { %6029 = vmatpush3.bf16.msra.mxu0 %v6611_v25 }
  0xc9   :  { %6031 = vmatprep.subr.bf16.mxu0 %v6617_v28 }
  0xcc   :  { %6033 = vmatpush3.bf16.msra.mxu0 %v6617_v28 }
  0xcd   :  { %5667 = vmatprep.subr.mxu0 %v6395_v15 }
  0xcf   :  { %5639 = vmatmul.mubr.msk.f32.vlgmr.msra.gmra.mrb[0].mxu0 %vm257_vm4, %v5323_v30 }
  0xd0   :  { %5669 = vmatprep.mubr.msk.f32.mxu0 %vm6396_vm7, %v6395_v15 }
 0x1a2   :  { %v6626_v31 = vpop.f32.mrb[0].mxu0 }
 0x1a3   :  { %v6628_v32 = vpop.f32.mrb[1].mxu0  ;;  %v349_v33 = vsel %vm345_vm6, %v6626_v31, 0.0 }
 0x1a4   :  { %350 = vadd.xlane.f32.xlu1 %v349_v33  ;;  %v346_v34 = vsel %vm345_vm6, %v6628_v32, 0.0 }
 0x1a5   :  { %347 = vadd.xlane.f32.xlu0 %v346_v34 }
 0x231   :  { %v351_v35 = vpop.xlane.xlu1 %350 }
 0x232   :  { %v354_v36 = vmul.f32 0.03125, %v351_v35  ;;  %v348_v37 = vpop.xlane.xlu0 %347 }
 0x233   :  { %v353_v38 = vmul.f32 0.03125, %v348_v37 }
 0x234   :  { %v356_v39 = vsub.f32 %v6626_v31, %v354_v36 }
 0x235   :  { %v355_v40 = vsub.f32 %v6628_v32, %v353_v38 }
 0x236   :  { %v358_v43 = vmul.f32 %v356_v39, %v356_v39 }
 0x237   :  { %v357_v41 = vmul.f32 %v355_v40, %v355_v40 }
 0x238   :  { %v362_v44 = vsel %vm345_vm6, %v358_v43, 0.0 }
 0x239   :  { %v359_v42 = vsel %vm345_vm6, %v357_v41, 0.0 }
 0x23a   :  { %360 = vadd.xlane.f32.xlu0 %v359_v42 }
 0x23e   :  { %363 = vadd.xlane.f32.xlu0 %v362_v44 }
 0x2c7   :  { %v361_v51 = vpop.xlane.xlu0 %360 }
 0x2c8   :  { %v365_v52 = vmul.f32 0.03125, %v361_v51 }
 0x2ca   :  { %v367_v53 = vadd.f32 1e-05, %v365_v52 }
 0x2cb   :  { %v364_v54 = vpop.xlane.xlu0 %363 }
 0x2cc   :  { %6236 = vrsqrt.f32 %v367_v53  ;;  %v366_v55 = vmul.f32 0.03125, %v364_v54 }
 0x2ce   :  { %v368_v56 = vadd.f32 1e-05, %v366_v55 }
 0x2d0   :  { %6238 = vrsqrt.f32 %v368_v56 }
 0x2d6   :  { %v6237_v57 = vpop.eup %6236 }
 0x2d7   :  { %v371_v59 = vmul.f32 %v6237_v57, %v355_v40 }
 0x2d9   :  { %v379_v61 = vmul.f32 %v5330_v58, %v371_v59 }
 0x2da   :  { %v6239_v62 = vpop.eup %6238 }
 0x2db   :  { %v372_v63 = vmul.f32 %v6239_v62, %v356_v39  ;;  %v387_v0 = vadd.f32 %v5331_v60, %v379_v61  ;;  %v6726_v61 = vld [vmem:[%s6478_s30] sm:$0xff] }
 0x2dd   :  { %v380_v1 = vmul.f32 %v5330_v58, %v372_v63  ;;  %5649 = vmatprep.mubr.msk.f32.mxu1 %vm345_vm6, %v387_v0 }
 0x2df   :  { %v388_v2 = vadd.f32 %v5331_v60, %v380_v1  ;;  %v6721_v60 = vld [vmem:[%s6478_s30 + $0x8] sm:$0xff] }
 0x2e1   :  { %5650 = vmatmul.mubr.msk.f32.vlgmr.msra.gmra.mrb[0].mxu1 %vm345_vm6, %v388_v2 }
 0x2e2   :  { %5654 = vmatprep.mubr.msk.f32.mxu1 %vm6396_vm7, %v6395_v15 }
 0x3b4   :  { %v5651_v4 = vpop.f32.mrb[0].mxu1 }
 0x3b5   :  { %v6652_v5 = vadd.f32 %v5651_v4, %v5332_v3  ;;  %v472_v6 = vpop.f32.mrb[1].mxu1 }
 0x3b6   :  { %v6654_v7 = vadd.f32 %v5332_v3, %v472_v6 }
 0x3b8   :  { %488 = vrot.lane.b32.xlu1 %v6654_v7, %s6397_s0 }
 0x3bc   :  { %661 = vrot.lane.b32.xlu1 %v6654_v7, %s6398_s5 }
 0x3c0   :  { %659 = vrot.lane.b32.xlu1 %v6654_v7, %s6399_s9 }
 0x42a   :  { %v489_v8 = vpop.permute.xlu1 %488 }
 0x42b   :  { %5653 = vmatpush3.xpose.msk.msra.mxu1 %vm490_vm8, %v489_v8 }
 0x42c   :  { %5657 = vmatprep.subr.mxu1 %v6395_v15 }
 0x42e   :  { %5655 = vmatmul.mubr.msk.f32.vlgmr.msra.gmra.mrb[2].mxu1 %vm490_vm8, %v6654_v7  ;;  %v662_v38 = vpop.permute.xlu1 %661 }
 0x42f   :  { %5659 = vmatprep.mubr.msk.f32.mxu1 %vm6396_vm7, %v6395_v15 }
 0x432   :  { %v660_v40 = vpop.permute.xlu1 %659 }
 0x501   :  { %v561_v19 = vpop.f32.mrb[2].mxu1 }
 0x502   :  { %v565_v22 = vmul.f32 0.35355338, %v561_v19  ;;  %v5656_v23 = vpop.f32.mrb[3].mxu1 }
 0x504   :  { %v566_v11 = vsel %vm6677_vm9, %v565_v22, -1e+09 }
 0x505   :  { %v571_v24 = vadd.f32 %v6682_v21, %v566_v11 }
 0x507   :  { %v572_v26 = vsel %vm490_vm8, %v571_v24, -inf }
 0x508   :  { %573 = vmax.xlane.f32.xlu0 %v572_v26 }
 0x595   :  { %v574_v27 = vpop.xlane.xlu0 %573 }
 0x596   :  { %v575_v29 = vsub.f32 %v571_v24, %v574_v27 }
 0x598   :  { %v576_v30 = vmul.f32 1.442695, %v575_v29  ;;  %v6757_v29 = vld [vmem:[%s6478_s30 + $0x10] sm:$0xff] }
 0x59a   :  { %6240 = vpow2.f32 %v576_v30 }
 0x5a4   :  { %v6241_v33 = vpop.eup %6240 }
 0x5a5   :  { %v578_v34 = vsel %vm490_vm8, %v6241_v33, 0.0 }
 0x5a6   :  { %579 = vadd.xlane.f32.xlu0 %v578_v34 }
 0x5bc   :  { %583 = vrot.lane.b32.xlu0 %v6654_v7, %s6400_s13 }
 0x633   :  { %v580_v35 = vpop.xlane.xlu0 %579 }
 0x634   :  { %6242 = vrcp.f32 %v580_v35 }
 0x637   :  { %v584_v36 = vpop.permute.xlu0 %583 }
 0x638   :  { %5658 = vmatpush3.msra.mxu1 %v584_v36 }
 0x639   :  { %5662 = vmatprep.subr.mxu1 %v6395_v15 }
 0x63e   :  { %v6243_v37 = vpop.eup %6242 }
 0x63f   :  { %v582_v39 = vmul.f32 %v6243_v37, %v6241_v33 }
 0x641   :  { %5660 = vmatmul.mubr.msk.f32.vlgmr.msra.gmra.mrb[4].mxu1 %vm490_vm8, %v582_v39 }
 0x642   :  { %5663 = vmatpush3.xpose.msk.msra.mxu1 %vm490_vm8, %v662_v38  ;;  %5664 = vmatprep.mubr.msk.f32.mxu1 %vm6396_vm7, %v6395_v15 }
 0x643   :  { %5672 = vmatprep.subr.mxu1 %v6395_v15 }
 0x645   :  { %5665 = vmatmul.mubr.msk.f32.vlgmr.msra.gmra.mrb[6].mxu1 %vm490_vm8, %v660_v40 }
 0x646   :  { %5674 = vmatprep.mubr.msk.f32.mxu1 %vm6396_vm7, %v6395_v15  ;;  %5673 = vmatpush3.msra.mxu1 %v6721_v60 }
 0x647   :  { %5677 = vmatprep.subr.mxu1 %v6395_v15 }
 0x714   :  { %v655_v41 = vpop.f32.mrb[4].mxu1 }
 0x715   :  { %v5661_v42 = vpop.f32.mrb[5].mxu1 }
 0x718   :  { %v733_v43 = vpop.f32.mrb[6].mxu1 }
 0x719   :  { %v737_v44 = vmul.f32 0.35355338, %v733_v43  ;;  %v5666_v45 = vpop.f32.mrb[7].mxu1 }
 0x71b   :  { %v738_v46 = vsel %vm6677_vm9, %v737_v44, -1e+09 }
 0x71c   :  { %v739_v47 = vadd.f32 %v738_v46, %v6682_v21 }
 0x71e   :  { %v740_v48 = vsel %vm490_vm8, %v739_v47, -inf }
 0x71f   :  { %741 = vmax.xlane.f32.xlu1 %v740_v48 }
 0x730   :  { %751 = vrot.lane.b32.xlu1 %v6654_v7, %s6401_s21 }
 0x734   :  { %973 = vrot.lane.b32.xlu1 %v6654_v7, %s6402_s25 }
 0x7ac   :  { %v742_v49 = vpop.xlane.xlu1 %741 }
 0x7ad   :  { %v743_v50 = vsub.f32 %v739_v47, %v742_v49  ;;  %v6785_v49 = vld [vmem:[%s6478_s30 + $0x18] sm:$0xff]  ;;  %s7268_s30 = sld [smem:[#allocation10_spill]] }
 0x7af   :  { %v744_v51 = vmul.f32 1.442695, %v743_v50  ;;  %v1539_v50 = vsub.s32 1, %v6670_v13 }
 0x7b0   :  { %v752_v52 = vpop.permute.xlu1 %751 }
 0x7b1   :  { %6244 = vpow2.f32 %v744_v51  ;;  %5668 = vmatpush3.msra.mxu0 %v752_v52  ;;  %v6794_v52 = vrot.slane %v6673_v17, %v1539_v50 }
 0x7b2   :  { %5682 = vmatprep.subr.mxu0 %v6395_v15 }
 0x7b4   :  { %v974_v59 = vpop.permute.xlu1 %973 }
 0x7bb   :  { %v6245_v53 = vpop.eup %6244 }
 0x7bc   :  { %v746_v54 = vsel %vm490_vm8, %v6245_v53, 0.0 }
 0x7bd   :  { %747 = vadd.xlane.f32.xlu0 %v746_v54 }
 0x7d3   :  { %975 = vrot.lane.b32.xlu0 %v6654_v7, %s6403_s8 }
 0x84a   :  { %v748_v55 = vpop.xlane.xlu0 %747 }
 0x84b   :  { %6246 = vrcp.f32 %v748_v55 }
 0x84e   :  { %v976_v58 = vpop.permute.xlu0 %975 }
 0x855   :  { %v6247_v56 = vpop.eup %6246 }
 0x856   :  { %v750_v57 = vmul.f32 %v6247_v56, %v6245_v53 }
 0x858   :  { %5670 = vmatmul.mubr.msk.f32.vlgmr.msra.gmra.mrb[2].mxu0 %vm490_vm8, %v750_v57 }
 0x859   :  { %5683 = vmatpush3.xpose.msk.msra.mxu0 %vm490_vm8, %v976_v58  ;;  %5684 = vmatprep.mubr.msk.f32.mxu0 %vm6396_vm7, %v6395_v15 }
 0x85a   :  { %5687 = vmatprep.subr.mxu0 %v6395_v15 }
 0x85c   :  { %5685 = vmatmul.mubr.msk.f32.vlgmr.msra.gmra.mrb[4].mxu0 %vm490_vm8, %v974_v59 }
 0x85d   :  { %5689 = vmatprep.mubr.msk.f32.mxu0 %vm6396_vm7, %v6395_v15 }
 0x92b   :  { %v823_v62 = vpop.f32.mrb[2].mxu0 }
 0x92c   :  { %v5671_v63 = vpop.f32.mrb[3].mxu0  ;;  %5675 = vmatmul.mubr.msk.f32.vlgmr.msra.gmra.mrb[8].mxu1 %vm490_vm8, %v823_v62 }
 0x92d   :  { %5678 = vmatpush3.msra.mxu1 %v6726_v61  ;;  %5679 = vmatprep.mubr.msk.f32.mxu1 %vm6396_vm7, %v6395_v15 }
 0x92e   :  { %5692 = vmatprep.subr.mxu1 %v6395_v15 }
 0x92f   :  { %v1047_v0 = vpop.f32.mrb[4].mxu0 }
 0x930   :  { %v1051_v1 = vmul.f32 0.35355338, %v1047_v0  ;;  %v5686_v2 = vpop.f32.mrb[5].mxu0 }
 0x932   :  { %v1052_v3 = vsel %vm6677_vm9, %v1051_v1, -1e+09 }
 0x933   :  { %v1053_v4 = vadd.f32 %v1052_v3, %v6682_v21 }
 0x934   :  { %5680 = vmatmul.mubr.msk.f32.vlgmr.msra.gmra.mrb[8].mxu1 %vm490_vm8, %v655_v41 }
 0x935   :  { %v1054_v6 = vsel %vm490_vm8, %v1053_v4, -inf  ;;  %5694 = vmatprep.mubr.msk.f32.mxu1 %vm6396_vm7, %v6395_v15  ;;  %5693 = vmatpush3.msra.mxu1 %v6757_v29 }
 0x936   :  { %1055 = vmax.xlane.f32.xlu1 %v1054_v6  ;;  %5702 = vmatprep.subr.mxu1 %v6395_v15 }
 0x947   :  { %1217 = vrot.lane.b32.xlu1 %v6654_v7, %s6404_s14 }
 0x94b   :  { %1215 = vrot.lane.b32.xlu1 %v6654_v7, %s6405_s19 }
 0x9c3   :  { %v1056_v8 = vpop.xlane.xlu1 %1055 }
 0x9c4   :  { %v1057_v9 = vsub.f32 %v1053_v4, %v1056_v8 }
 0x9c6   :  { %v1058_v14 = vmul.f32 1.442695, %v1057_v9 }
 0x9c7   :  { %v1218_v24 = vpop.permute.xlu1 %1217 }
 0x9c8   :  { %6248 = vpow2.f32 %v1058_v14 }
 0x9cb   :  { %v1216_v27 = vpop.permute.xlu1 %1215 }
 0x9d2   :  { %v6249_v16 = vpop.eup %6248 }
 0x9d3   :  { %v1060_v19 = vsel %vm490_vm8, %v6249_v16, 0.0 }
 0x9d4   :  { %1061 = vadd.xlane.f32.xlu0 %v1060_v19 }
 0x9ea   :  { %1065 = vrot.lane.b32.xlu0 %v6654_v7, %s6406_s24 }
 0xa61   :  { %v1062_v22 = vpop.xlane.xlu0 %1061 }
 0xa62   :  { %6250 = vrcp.f32 %v1062_v22 }
 0xa65   :  { %v1066_v23 = vpop.permute.xlu0 %1065 }
 0xa66   :  { %5688 = vmatpush3.msra.mxu0 %v1066_v23 }
 0xa67   :  { %5697 = vmatprep.subr.mxu0 %v6395_v15 }
 0xa6c   :  { %v6251_v11 = vpop.eup %6250 }
 0xa6d   :  { %v1064_v26 = vmul.f32 %v6251_v11, %v6249_v16 }
 0xa6f   :  { %5690 = vmatmul.mubr.msk.f32.vlgmr.msra.gmra.mrb[6].mxu0 %vm490_vm8, %v1064_v26 }
 0xa70   :  { %5698 = vmatpush3.xpose.msk.msra.mxu0 %vm490_vm8, %v1218_v24  ;;  %5699 = vmatprep.mubr.msk.f32.mxu0 %vm6396_vm7, %v6395_v15 }
 0xa71   :  { %5712 = vmatprep.subr.mxu0 %v6395_v15 }
 0xa73   :  { %5700 = vmatmul.mubr.msk.f32.vlgmr.msra.gmra.mrb[8].mxu0 %vm490_vm8, %v1216_v27 }
 0xa74   :  { %5714 = vmatprep.mubr.msk.f32.mxu0 %vm6396_vm7, %v6395_v15 }
 0xb42   :  { %v1137_v30 = vpop.f32.mrb[6].mxu0 }
 0xb43   :  { %v5691_v33 = vpop.f32.mrb[7].mxu0  ;;  %5695 = vmatmul.mubr.msk.f32.vlgmr.msra.gmra.mrb[8].mxu1 %vm490_vm8, %v1137_v30 }
 0xb44   :  { %5704 = vmatprep.mubr.msk.f32.mxu1 %vm6396_vm7, %v6395_v15 }
 0xb46   :  { %v1289_v34 = vpop.f32.mrb[8].mxu0 }
 0xb47   :  { %v1293_v35 = vmul.f32 0.35355338, %v1289_v34  ;;  %v5701_v36 = vpop.f32.mrb[9].mxu0 }
 0xb49   :  { %v1294_v37 = vsel %vm6677_vm9, %v1293_v35, -1e+09 }
 0xb4a   :  { %v1295_v38 = vadd.f32 %v1294_v37, %v6682_v21 }
 0xb4c   :  { %v1296_v39 = vsel %vm490_vm8, %v1295_v38, -inf }
 0xb4d   :  { %1297 = vmax.xlane.f32.xlu0 %v1296_v39 }
 0xb63   :  { %1307 = vrot.lane.b32.xlu0 %v6654_v7, %s6407_s28 }
 0xb67   :  { %1631 = vrot.lane.b32.xlu0 %v6652_v5, %s6398_s5 }
 0xbda   :  { %v1298_v40 = vpop.xlane.xlu0 %1297 }
 0xbdb   :  { %v1299_v41 = vsub.f32 %v1295_v38, %v1298_v40 }
 0xbdd   :  { %v1300_v42 = vmul.f32 1.442695, %v1299_v41 }
 0xbde   :  { %v1308_v43 = vpop.permute.xlu0 %1307 }
 0xbdf   :  { %6252 = vpow2.f32 %v1300_v42  ;;  %5703 = vmatpush3.msra.mxu1 %v1308_v43 }
 0xbe0   :  { %5707 = vmatprep.subr.mxu1 %v6395_v15 }
 0xbe2   :  { %v1632_v59 = vpop.permute.xlu0 %1631 }
 0xbe9   :  { %v6253_v44 = vpop.eup %6252 }
 0xbea   :  { %v1302_v45 = vsel %vm490_vm8, %v6253_v44, 0.0 }
 0xbeb   :  { %1303 = vadd.xlane.f32.xlu1 %v1302_v45 }
 0xbfc   :  { %1459 = vrot.lane.b32.xlu1 %v6652_v5, %s6397_s0 }
 0xc00   :  { %1629 = vrot.lane.b32.xlu1 %v6652_v5, %s6399_s9 }
 0xc78   :  { %v1304_v7 = vpop.xlane.xlu1 %1303 }
 0xc79   :  { %6254 = vrcp.f32 %v1304_v7 }
 0xc7c   :  { %v1460_v46 = vpop.permute.xlu1 %1459 }
 0xc7d   :  { %5713 = vmatpush3.xpose.msk.msra.mxu0 %vm490_vm8, %v1460_v46 }
 0xc7e   :  { %5717 = vmatprep.subr.mxu0 %v6395_v15 }
 0xc80   :  { %5715 = vmatmul.mubr.msk.f32.vlgmr.msra.gmra.mrb[10].mxu0 %vm490_vm8, %v6652_v5  ;;  %v1630_v13 = vpop.permute.xlu1 %1629 }
 0xc81   :  { %5719 = vmatprep.mubr.msk.f32.mxu0 %vm6396_vm7, %v6395_v15 }
 0xc83   :  { %v6255_v47 = vpop.eup %6254 }
 0xc84   :  { %v1306_v48 = vmul.f32 %v6255_v47, %v6253_v44 }
 0xc86   :  { %5705 = vmatmul.mubr.msk.f32.vlgmr.msra.gmra.mrb[10].mxu1 %vm490_vm8, %v1306_v48 }
 0xc87   :  { %5708 = vmatpush3.msra.mxu1 %v6785_v49  ;;  %5709 = vmatprep.mubr.msk.f32.mxu1 %vm6396_vm7, %v6395_v15 }
 0xc88   :  { %5722 = vmatprep.subr.mxu1 %v6395_v15 }
 0xd53   :  { %v1531_v51 = vpop.f32.mrb[10].mxu0 }
 0xd54   :  { %v1535_v53 = vmul.f32 0.35355338, %v1531_v51  ;;  %v5716_v54 = vpop.f32.mrb[11].mxu0 }
 0xd56   :  { %v1536_v55 = vsel %vm6677_vm9, %v1535_v53, -1e+09 }
 0xd57   :  { %v1541_v56 = vadd.f32 %v6794_v52, %v1536_v55 }
 0xd59   :  { %v1379_v57 = vpop.f32.mrb[10].mxu1  ;;  %v1542_v58 = vsel %vm490_vm8, %v1541_v56, -inf }
 0xd5a   :  { %1543 = vmax.xlane.f32.xlu0 %v1542_v58  ;;  %v5706_v62 = vpop.f32.mrb[11].mxu1  ;;  %5710 = vmatmul.mubr.msk.f32.vlgmr.msra.gmra.mrb[8].mxu1 %vm490_vm8, %v1379_v57 }
 0xd5b   :  { %5723 = vmatpush3.xpose.msk.msra.mxu1 %vm490_vm8, %v1632_v59  ;;  %5724 = vmatprep.mubr.msk.f32.mxu1 %vm6396_vm7, %v6395_v15 }
 0xd5c   :  { %5732 = vmatprep.subr.mxu1 %v6395_v15 }
 0xd5e   :  { %5725 = vmatmul.mubr.msk.f32.vlgmr.msra.gmra.mrb[12].mxu1 %vm490_vm8, %v1630_v13 }
 0xd5f   :  { %5733 = vmatpush3.msra.mxu1 %v6721_v60  ;;  %5734 = vmatprep.mubr.msk.f32.mxu1 %vm6396_vm7, %v6395_v15 }
 0xd60   :  { %5737 = vmatprep.subr.mxu1 %v6395_v15 }
 0xde7   :  { %v1544_v17 = vpop.xlane.xlu0 %1543 }
 0xde8   :  { %v1545_v63 = vsub.f32 %v1541_v56, %v1544_v17 }
 0xdea   :  { %v1546_v0 = vmul.f32 1.442695, %v1545_v63 }
 0xdec   :  { %6256 = vpow2.f32 %v1546_v0 }
 0xdf6   :  { %v6257_v1 = vpop.eup %6256 }
 0xdf7   :  { %v1548_v2 = vsel %vm490_vm8, %v6257_v1, 0.0 }
 0xdf8   :  { %1549 = vadd.xlane.f32.xlu0 %v1548_v2 }
 0xe2d   :  { %v1452_v3 = vpop.f32.mrb[8].mxu1 }
 0xe2e   :  { %1457 = vst.msk [vmem:[#allocation2] sm:$0xff] %vm345_vm6, %v1452_v3  ;;  %v5711_v4 = vpop.f32.mrb[9].mxu1 }
 0xe2f   :  { %v5368_v4 = vld [vmem:[%s6483_s6] ss:$0 sm:$0xff]  ;;  %s7269_s6 = sld [smem:[#allocation9_spill]] }
 0xe31   :  { %v1703_v6 = vpop.f32.mrb[12].mxu1 }
 0xe32   :  { %v1707_v8 = vmul.f32 0.35355338, %v1703_v6  ;;  %v5726_v60 = vpop.f32.mrb[13].mxu1 }
 0xe34   :  { %v1708_v9 = vsel %vm6677_vm9, %v1707_v8, -1e+09 }
 0xe35   :  { %v1709_v14 = vadd.f32 %v1708_v9, %v6794_v52  ;;  %v2428_v17 = vld [vmem:[#allocation2] sm:$0xff] }
 0xe36   :  { %v2430_v2 = vadd.f32 %v2428_v17, %v6628_v32 }
 0xe37   :  { %v1710_v16 = vsel %vm490_vm8, %v1709_v14, -inf }
 0xe38   :  { %1711 = vmax.xlane.f32.xlu1 %v1710_v16  ;;  %v6874_v60 = vadd.f32 %v5368_v4, %v2430_v2 }
 0xe3a   :  { %v2443_v9 = vsel %vm345_vm6, %v6874_v60, 0.0 }
 0xe49   :  { %1553 = vrot.lane.b32.xlu1 %v6652_v5, %s6400_s13 }
 0xe4d   :  { %1945 = vrot.lane.b32.xlu1 %v6652_v5, %s6403_s8 }
 0xe51   :  { %1943 = vrot.lane.b32.xlu1 %v6652_v5, %s6402_s25 }
 0xe85   :  { %v1550_v19 = vpop.xlane.xlu0 %1549 }
 0xe86   :  { %6258 = vrcp.f32 %v1550_v19 }
 0xe90   :  { %v6259_v23 = vpop.eup %6258 }
 0xe91   :  { %v1552_v26 = vmul.f32 %v6259_v23, %v6257_v1 }
 0xec5   :  { %v1712_v22 = vpop.xlane.xlu1 %1711 }
 0xec6   :  { %v1713_v11 = vsub.f32 %v1709_v14, %v1712_v22 }
 0xec8   :  { %v1714_v24 = vmul.f32 1.442695, %v1713_v11 }
 0xec9   :  { %v1554_v27 = vpop.permute.xlu1 %1553 }
 0xeca   :  { %6260 = vpow2.f32 %v1714_v24  ;;  %5718 = vmatpush3.msra.mxu0 %v1554_v27 }
 0xecb   :  { %5720 = vmatmul.mubr.msk.f32.vlgmr.msra.gmra.mrb[12].mxu0 %vm490_vm8, %v1552_v26  ;;  %5727 = vmatprep.subr.mxu0 %v6395_v15 }
 0xecc   :  { %5729 = vmatprep.mubr.msk.f32.mxu0 %vm6396_vm7, %v6395_v15 }
 0xecd   :  { %v1946_v37 = vpop.permute.xlu1 %1945 }
 0xed1   :  { %v1944_v39 = vpop.permute.xlu1 %1943 }
 0xed4   :  { %v6261_v30 = vpop.eup %6260 }
 0xed5   :  { %v1716_v33 = vsel %vm490_vm8, %v6261_v30, 0.0 }
 0xed6   :  { %1717 = vadd.xlane.f32.xlu0 %v1716_v33 }
 0xeec   :  { %1721 = vrot.lane.b32.xlu0 %v6652_v5, %s6401_s21 }
 0xf63   :  { %v1718_v34 = vpop.xlane.xlu0 %1717 }
 0xf64   :  { %6262 = vrcp.f32 %v1718_v34 }
 0xf67   :  { %v1722_v35 = vpop.permute.xlu0 %1721 }
 0xf68   :  { %5728 = vmatpush3.msra.mxu0 %v1722_v35 }
 0xf69   :  { %5742 = vmatprep.subr.mxu0 %v6395_v15 }
 0xf6e   :  { %v6263_v36 = vpop.eup %6262 }
 0xf6f   :  { %v1720_v38 = vmul.f32 %v6263_v36, %v6261_v30 }
 0xf71   :  { %5730 = vmatmul.mubr.msk.f32.vlgmr.msra.gmra.mrb[14].mxu0 %vm490_vm8, %v1720_v38 }
 0xf72   :  { %5743 = vmatpush3.xpose.msk.msra.mxu0 %vm490_vm8, %v1946_v37  ;;  %5744 = vmatprep.mubr.msk.f32.mxu0 %vm6396_vm7, %v6395_v15 }
 0xf73   :  { %5747 = vmatprep.subr.mxu0 %v6395_v15 }
 0xf75   :  { %5745 = vmatmul.mubr.msk.f32.vlgmr.msra.gmra.mrb[16].mxu0 %vm490_vm8, %v1944_v39 }
 0xf76   :  { %5749 = vmatprep.mubr.msk.f32.mxu0 %vm6396_vm7, %v6395_v15 }
 0xf9e   :  { %v1625_v40 = vpop.f32.mrb[12].mxu0 }
 0xf9f   :  { %v5721_v41 = vpop.f32.mrb[13].mxu0 }
0x1044   :  { %v1793_v42 = vpop.f32.mrb[14].mxu0 }
0x1045   :  { %v5731_v43 = vpop.f32.mrb[15].mxu0  ;;  %5735 = vmatmul.mubr.msk.f32.vlgmr.msra.gmra.mrb[14].mxu1 %vm490_vm8, %v1793_v42 }
0x1046   :  { %5738 = vmatpush3.msra.mxu1 %v6726_v61  ;;  %5739 = vmatprep.mubr.msk.f32.mxu1 %vm6396_vm7, %v6395_v15 }
0x1047   :  { %5752 = vmatprep.subr.mxu1 %v6395_v15 }
0x1048   :  { %v2017_v44 = vpop.f32.mrb[16].mxu0 }
0x1049   :  { %v2021_v45 = vmul.f32 0.35355338, %v2017_v44  ;;  %v5746_v7 = vpop.f32.mrb[17].mxu0 }
0x104b   :  { %v2022_v46 = vsel %vm6677_vm9, %v2021_v45, -1e+09 }
0x104c   :  { %v2023_v47 = vadd.f32 %v2022_v46, %v6794_v52 }
0x104d   :  { %5740 = vmatmul.mubr.msk.f32.vlgmr.msra.gmra.mrb[14].mxu1 %vm490_vm8, %v1625_v40 }
0x104e   :  { %v2024_v48 = vsel %vm490_vm8, %v2023_v47, -inf  ;;  %5753 = vmatpush3.msra.mxu1 %v6757_v29  ;;  %5754 = vmatprep.mubr.msk.f32.mxu1 %vm6396_vm7, %v6395_v15 }
0x104f   :  { %2025 = vmax.xlane.f32.xlu0 %v2024_v48  ;;  %5762 = vmatprep.subr.mxu1 %v6395_v15 }
0x1065   :  { %2035 = vrot.lane.b32.xlu0 %v6652_v5, %s6406_s24 }
0x1069   :  { %2185 = vrot.lane.b32.xlu0 %v6652_v5, %s6405_s19 }
0x10dc   :  { %v2026_v61 = vpop.xlane.xlu0 %2025 }
0x10dd   :  { %v2027_v50 = vsub.f32 %v2023_v47, %v2026_v61  ;;  %v5369_v61 = vld [vmem:[%s6488_s12] ss:$0 sm:$0xff]  ;;  %s7270_s12 = sld [smem:[#allocation11_spill]] }
0x10df   :  { %v2028_v51 = vmul.f32 1.442695, %v2027_v50 }
0x10e0   :  { %v2036_v53 = vpop.permute.xlu0 %2035 }
0x10e1   :  { %6264 = vpow2.f32 %v2028_v51  ;;  %5748 = vmatpush3.msra.mxu0 %v2036_v53  ;;  %v5370_v51 = vld [vmem:[%s6493_s20] ss:$0 sm:$0xff]  ;;  %s7271_s20 = sld [smem:[#allocation14_spill]] }
0x10e2   :  { %5757 = vmatprep.subr.mxu0 %v6395_v15 }
0x10e4   :  { %v2186_v59 = vpop.permute.xlu0 %2185 }
0x10eb   :  { %v6265_v29 = vpop.eup %6264 }
0x10ec   :  { %v2030_v54 = vsel %vm490_vm8, %v6265_v29, 0.0 }
0x10ed   :  { %2031 = vadd.xlane.f32.xlu1 %v2030_v54  ;;  %v2485_v54 = vld [vmem:[%s6498_s27] sm:$0xff] }
0x10fe   :  { %2187 = vrot.lane.b32.xlu1 %v6652_v5, %s6404_s14 }
0x117a   :  { %v2032_v55 = vpop.xlane.xlu1 %2031 }
0x117b   :  { %6266 = vrcp.f32 %v2032_v55  ;;  %v2486_v55 = vld [vmem:[%s6498_s27 + $0x8] sm:$0xff] }
0x117e   :  { %v2188_v58 = vpop.permute.xlu1 %2187 }
0x1185   :  { %v6267_v56 = vpop.eup %6266 }
0x1186   :  { %v2034_v57 = vmul.f32 %v6267_v56, %v6265_v29  ;;  %v6042_v56 = vpack.c.bf16 %v2486_v55, %v2485_v54 }
0x1188   :  { %5750 = vmatmul.mubr.msk.f32.vlgmr.msra.gmra.mrb[18].mxu0 %vm490_vm8, %v2034_v57  ;;  %v2487_v57 = vld [vmem:[%s6498_s27 + $0x10] sm:$0xff] }
0x1189   :  { %5758 = vmatpush3.xpose.msk.msra.mxu0 %vm490_vm8, %v2188_v58  ;;  %5759 = vmatprep.mubr.msk.f32.mxu0 %vm6396_vm7, %v6395_v15  ;;  %v2488_v58 = vld [vmem:[%s6498_s27 + $0x18] sm:$0xff]  ;;  %s7272_s27 = sld [smem:[#allocation12_spill]] }
0x118a   :  { %6043 = vmatprep.subr.bf16.mxu0 %v6042_v56 }
0x118c   :  { %5760 = vmatmul.mubr.msk.f32.vlgmr.msra.gmra.mrb[20].mxu0 %vm490_vm8, %v2186_v59  ;;  %v6046_v59 = vpack.c.bf16 %v2488_v58, %v2487_v57 }
0x118d   :  { %6045 = vmatpush3.bf16.msra.mxu0 %v6042_v56 }
0x118e   :  { %6047 = vmatprep.subr.bf16.mxu0 %v6046_v59 }
0x1191   :  { %6049 = vmatpush3.bf16.msra.mxu0 %v6046_v59 }
0x125b   :  { %v2107_v62 = vpop.f32.mrb[18].mxu0 }
0x125c   :  { %v5751_v13 = vpop.f32.mrb[19].mxu0  ;;  %5755 = vmatmul.mubr.msk.f32.vlgmr.msra.gmra.mrb[14].mxu1 %vm490_vm8, %v2107_v62  ;;  %v2595_v62 = vld [vmem:[%s7268_s30] sm:$0xff] }
0x125d   :  { %5764 = vmatprep.mubr.msk.f32.mxu1 %vm6396_vm7, %v6395_v15  ;;  %v2596_v13 = vld [vmem:[%s7268_s30 + $0x8] sm:$0xff] }
0x125e   :  { %v6050_v17 = vpack.c.bf16 %v2596_v13, %v2595_v62  ;;  %v5374_v13 = vld [vmem:[%s7270_s12] ss:$0 sm:$0xff] }
0x125f   :  { %v2259_v63 = vpop.f32.mrb[20].mxu0 }
0x1260   :  { %v2263_v0 = vmul.f32 0.35355338, %v2259_v63  ;;  %v5761_v1 = vpop.f32.mrb[21].mxu0 }
0x1262   :  { %v2264_v3 = vsel %vm6677_vm9, %v2263_v0, -1e+09 }
0x1263   :  { %v2265_v6 = vadd.f32 %v2264_v3, %v6794_v52 }
0x1265   :  { %v2266_v8 = vsel %vm490_vm8, %v2265_v6, -inf }
0x1266   :  { %2267 = vmax.xlane.f32.xlu1 %v2266_v8  ;;  %v2597_v8 = vld [vmem:[%s7268_s30 + $0x10] sm:$0xff] }
0x126a   :  { %2444 = vadd.xlane.f32.xlu1 %v2443_v9  ;;  %v2598_v9 = vld [vmem:[%s7268_s30 + $0x18] sm:$0xff] }
0x12f3   :  { %v2268_v14 = vpop.xlane.xlu1 %2267 }
0x12f4   :  { %v2269_v16 = vsub.f32 %v2265_v6, %v2268_v14  ;;  %v6054_v14 = vpack.c.bf16 %v2598_v9, %v2597_v8 }
0x12f6   :  { %v2270_v19 = vmul.f32 1.442695, %v2269_v16  ;;  %v2599_v16 = vld [vmem:[%s7268_s30 + $0x20] sm:$0xff] }
0x12f7   :  { %v2445_v34 = vpop.xlane.xlu1 %2444 }
0x12f8   :  { %6268 = vpow2.f32 %v2270_v19  ;;  %v2449_v35 = vmul.f32 0.03125, %v2445_v34  ;;  %v2600_v19 = vld [vmem:[%s7268_s30 + $0x28] sm:$0xff]  ;;  %v2607_v34 = vld [vmem:[%s7268_s30 + $0x60] sm:$0xff] }
0x12fa   :  { %v2451_v37 = vsub.f32 %v6874_v60, %v2449_v35  ;;  %v2608_v35 = vld [vmem:[%s7268_s30 + $0x68] sm:$0xff] }
0x12fc   :  { %v2453_v40 = vmul.f32 %v2451_v37, %v2451_v37 }
0x12fe   :  { %v2455_v41 = vsel %vm345_vm6, %v2453_v40, 0.0  ;;  %v5371_v40 = vld [vmem:[%s7269_s6] ss:$0 sm:$0xff] }
0x1302   :  { %v6269_v32 = vpop.eup %6268 }
0x1303   :  { %v2272_v22 = vsel %vm490_vm8, %v6269_v32, 0.0 }
0x1304   :  { %2273 = vadd.xlane.f32.xlu0 %v2272_v22  ;;  %v2601_v22 = vld [vmem:[%s7268_s30 + $0x30] sm:$0xff] }
0x131a   :  { %2277 = vrot.lane.b32.xlu0 %v6652_v5, %s6407_s28 }
0x1391   :  { %v2274_v23 = vpop.xlane.xlu0 %2273 }
0x1392   :  { %6270 = vrcp.f32 %v2274_v23  ;;  %v2602_v23 = vld [vmem:[%s7268_s30 + $0x38] sm:$0xff] }
0x1395   :  { %v2278_v11 = vpop.permute.xlu0 %2277 }
0x1396   :  { %5763 = vmatpush3.msra.mxu1 %v2278_v11  ;;  %v6062_v11 = vpack.c.bf16 %v2602_v23, %v2601_v22 }
0x1397   :  { %5767 = vmatprep.subr.mxu1 %v6395_v15 }
0x139c   :  { %v6271_v24 = vpop.eup %6270 }
0x139d   :  { %v2276_v26 = vmul.f32 %v6271_v24, %v6269_v32  ;;  %v6058_v32 = vpack.c.bf16 %v2600_v19, %v2599_v16  ;;  %v2603_v24 = vld [vmem:[%s7268_s30 + $0x40] sm:$0xff] }
0x139f   :  { %5765 = vmatmul.mubr.msk.f32.vlgmr.msra.gmra.mrb[16].mxu1 %vm490_vm8, %v2276_v26  ;;  %v2604_v26 = vld [vmem:[%s7268_s30 + $0x48] sm:$0xff] }
0x13a0   :  { %5768 = vmatpush3.msra.mxu1 %v6785_v49  ;;  %5769 = vmatprep.mubr.msk.f32.mxu1 %vm6396_vm7, %v6395_v15 }
0x13a1   :  { %6051 = vmatprep.subr.bf16.mxu1 %v6050_v17 }
0x1472   :  { %v2349_v27 = vpop.f32.mrb[16].mxu1 }
0x1473   :  { %v5766_v30 = vpop.f32.mrb[17].mxu1  ;;  %5770 = vmatmul.mubr.msk.f32.vlgmr.msra.gmra.mrb[14].mxu1 %vm490_vm8, %v2349_v27  ;;  %v6066_v27 = vpack.c.bf16 %v2604_v26, %v2603_v24  ;;  %v2740_v24 = vld [vmem:[%s7271_s20 + $0x8] sm:$0xff] }
0x1474   :  { %6053 = vmatpush3.bf16.msra.mxu1 %v6050_v17  ;;  %v2605_v30 = vld [vmem:[%s7268_s30 + $0x50] sm:$0xff] }
0x1475   :  { %6055 = vmatprep.subr.bf16.mxu1 %v6054_v14 }
0x1478   :  { %6057 = vmatpush3.bf16.msra.mxu1 %v6054_v14 }
0x1479   :  { %6059 = vmatprep.subr.bf16.mxu1 %v6058_v32 }
0x147c   :  { %6061 = vmatpush3.bf16.msra.mxu1 %v6058_v32 }
0x147d   :  { %6063 = vmatprep.subr.bf16.mxu1 %v6062_v11 }
0x1480   :  { %6065 = vmatpush3.bf16.msra.mxu1 %v6062_v11  ;;  %v2739_v11 = vld [vmem:[%s7271_s20] sm:$0xff] }
0x1481   :  { %6067 = vmatprep.subr.bf16.mxu1 %v6066_v27  ;;  %v6082_v26 = vpack.c.bf16 %v2740_v24, %v2739_v11 }
0x1483   :  { %6083 = vmatprep.subr.bf16.mxu0 %v6082_v26 }
0x1484   :  { %6069 = vmatpush3.bf16.msra.mxu1 %v6066_v27  ;;  %v2741_v27 = vld [vmem:[%s7271_s20 + $0x10] sm:$0xff] }
0x1546   :  { %v2422_v5 = vpop.f32.mrb[14].mxu1 }
0x1547   :  { %2427 = vst.msk [vmem:[#allocation2 + $0x8] sm:$0xff] %vm345_vm6, %v2422_v5  ;;  %v5771_v33 = vpop.f32.mrb[15].mxu1  ;;  %v2606_v5 = vld [vmem:[%s7268_s30 + $0x58] sm:$0xff] }
0x1548   :  { %v6070_v33 = vpack.c.bf16 %v2606_v5, %v2605_v30  ;;  %v2742_v30 = vld [vmem:[%s7271_s20 + $0x18] sm:$0xff] }
0x1549   :  { %v6086_v5 = vpack.c.bf16 %v2742_v30, %v2741_v27 }
0x154a   :  { %6071 = vmatprep.subr.bf16.mxu1 %v6070_v33 }
0x154b   :  { %6073 = vmatpush3.bf16.msra.mxu1 %v6070_v33 }
0x154e   :  { %v2429_v36 = vld [vmem:[#allocation2 + $0x8] sm:$0xff] }
0x154f   :  { %v2431_v38 = vadd.f32 %v6626_v31, %v2429_v36  ;;  %v6074_v36 = vpack.c.bf16 %v2608_v35, %v2607_v34 }
0x1551   :  { %v6890_v39 = vadd.f32 %v5368_v4, %v2431_v38  ;;  %v2610_v38 = vld [vmem:[%s7268_s30 + $0x78] sm:$0xff]  ;;  %6075 = vmatprep.subr.bf16.mxu1 %v6074_v36 }
0x1552   :  { %6077 = vmatpush3.bf16.msra.mxu1 %v6074_v36 }
0x1553   :  { %v2446_v49 = vsel %vm345_vm6, %v6890_v39, 0.0 }
0x1554   :  { %2447 = vadd.xlane.f32.xlu1 %v2446_v49 }
0x1558   :  { %2456 = vadd.xlane.f32.xlu1 %v2455_v41 }
0x15e1   :  { %v2448_v42 = vpop.xlane.xlu1 %2447 }
0x15e2   :  { %v2450_v43 = vmul.f32 0.03125, %v2448_v42 }
0x15e4   :  { %v2452_v44 = vsub.f32 %v6890_v39, %v2450_v43 }
0x15e5   :  { %v2457_v45 = vpop.xlane.xlu1 %2456 }
0x15e6   :  { %v2461_v31 = vmul.f32 0.03125, %v2457_v45  ;;  %v2454_v7 = vmul.f32 %v2452_v44, %v2452_v44 }
0x15e8   :  { %v2463_v46 = vadd.f32 1e-05, %v2461_v31  ;;  %v2458_v47 = vsel %vm345_vm6, %v2454_v7, 0.0 }
0x15e9   :  { %2459 = vadd.xlane.f32.xlu1 %v2458_v47 }
0x15ea   :  { %6272 = vrsqrt.f32 %v2463_v46 }
0x15f4   :  { %v6273_v48 = vpop.eup %6272 }
0x15f5   :  { %v2467_v50 = vmul.f32 %v6273_v48, %v2451_v37  ;;  %v2609_v37 = vld [vmem:[%s7268_s30 + $0x70] sm:$0xff] }
0x15f6   :  { %v6078_v49 = vpack.c.bf16 %v2610_v38, %v2609_v37 }
0x15f7   :  { %v2475_v53 = vmul.f32 %v5369_v61, %v2467_v50 }
0x15f8   :  { %6079 = vmatprep.subr.bf16.mxu1 %v6078_v49 }
0x15f9   :  { %v2483_v29 = vadd.f32 %v5370_v51, %v2475_v53  ;;  %6081 = vmatpush3.bf16.msra.mxu1 %v6078_v49 }
0x15fa   :  { %5859 = vmatprep.subr.mxu1 %v6395_v15 }
0x15fb   :  { %5780 = vmatprep.mubr.msk.f32.mxu0 %vm345_vm6, %v2483_v29 }
0x1676   :  { %v2460_v63 = vpop.xlane.xlu1 %2459 }
0x1677   :  { %v2462_v0 = vmul.f32 0.03125, %v2460_v63 }
0x1679   :  { %v2464_v1 = vadd.f32 1e-05, %v2462_v0 }
0x167b   :  { %6274 = vrsqrt.f32 %v2464_v1 }
0x1685   :  { %v6275_v2 = vpop.eup %6274 }
0x1686   :  { %v2468_v3 = vmul.f32 %v6275_v2, %v2452_v44 }
0x1688   :  { %v2476_v4 = vmul.f32 %v5369_v61, %v2468_v3 }
0x168a   :  { %v2484_v6 = vadd.f32 %v5370_v51, %v2476_v4 }
0x168c   :  { %5781 = vmatmul.mubr.msk.f32.vlgmr.msra.gmra.mrb[22].mxu0 %vm345_vm6, %v2484_v6 }
0x168d   :  { %6085 = vmatpush3.bf16.msra.mxu0 %v6082_v26 }
0x168e   :  { %6087 = vmatprep.subr.bf16.mxu0 %v6086_v5 }
0x1691   :  { %6089 = vmatpush3.bf16.msra.mxu0 %v6086_v5 }
0x1692   :  { %5829 = vmatprep.subr.mxu0 %v6395_v15 }
0x175f   :  { %v5782_v41 = vpop.f32.mrb[22].mxu0 }
0x1760   :  { %v2574_v42 = vadd.f32 %v5782_v41, %v5371_v40  ;;  %v2568_v43 = vpop.f32.mrb[23].mxu0 }
0x1761   :  { %v2569_v44 = vadd.f32 %v5371_v40, %v2568_v43  ;;  %v5375_v40 = vld [vmem:[%s7272_s27] ss:$0 sm:$0xff] }
0x1762   :  { %v2580_v45 = vmul.f32 0.044715, %v2574_v42  ;;  %v2578_v58 = vmul.f32 0.5, %v2574_v42 }
0x1763   :  { %v2579_v31 = vmul.f32 0.044715, %v2569_v44  ;;  %v2577_v56 = vmul.f32 0.5, %v2569_v44 }
0x1764   :  { %v2582_v7 = vmul.f32 %v2580_v45, %v2574_v42 }
0x1765   :  { %v2581_v46 = vmul.f32 %v2579_v31, %v2569_v44 }
0x1766   :  { %v2584_v47 = vmul.f32 %v2582_v7, %v2574_v42 }
0x1767   :  { %v2583_v48 = vmul.f32 %v2581_v46, %v2569_v44 }
0x1768   :  { %v2586_v61 = vadd.f32 %v2584_v47, %v2574_v42  ;;  %v5376_v42 = vld [vmem:[%s7273_s1] ss:$0 sm:$0xff] }
0x1769   :  { %v2585_v50 = vadd.f32 %v2583_v48, %v2569_v44  ;;  %v5377_v47 = vld [vmem:[%s7274_s2] ss:$0 sm:$0xff] }
0x176a   :  { %v2588_v51 = vmul.f32 0.7978846, %v2586_v61 }
0x176b   :  { %v2587_v53 = vmul.f32 0.7978846, %v2585_v50 }
0x176c   :  { %6276 = vtanh.f32 %v2588_v51 }
0x176d   :  { %6278 = vtanh.f32 %v2587_v53 }
0x1776   :  { %v6277_v29 = vpop.eup %6276 }
0x1777   :  { %v6279_v54 = vpop.eup %6278  ;;  %v2592_v55 = vadd.f32 1.0, %v6277_v29 }
0x1778   :  { %v2591_v57 = vadd.f32 1.0, %v6279_v54 }
0x1779   :  { %v2594_v62 = vmul.f32 %v2592_v55, %v2578_v58 }
0x177a   :  { %v2593_v59 = vmul.f32 %v2591_v57, %v2577_v56 }
0x177c   :  { %5815 = vmatprep.mubr.f32.mxu1 %v2593_v59 }
0x177d   :  { %5816 = vmatmul.mubr.f32.vlgmr.msra.gmra.mrb[18].mxu1 %v2594_v62 }
0x177e   :  { %5861 = vmatprep.mubr.msk.f32.mxu1 %vm6396_vm7, %v6395_v15 }
0x1850   :  { %v5817_v17 = vpop.f32.mrb[18].mxu1 }
0x1851   :  { %v2684_v63 = vpop.f32.mrb[19].mxu1  ;;  %v2690_v0 = vadd.f32 %v5817_v17, %v5374_v13 }
0x1852   :  { %v2685_v1 = vadd.f32 %v5374_v13, %v2684_v63 }
0x1853   :  { %v6930_v3 = vadd.f32 %v2690_v0, %v6890_v39 }
0x1854   :  { %v6927_v2 = vadd.f32 %v2685_v1, %v6874_v60 }
0x1855   :  { %v2700_v6 = vsel %vm345_vm6, %v6930_v3, 0.0 }
0x1856   :  { %v2697_v4 = vsel %vm345_vm6, %v6927_v2, 0.0 }
0x1857   :  { %2698 = vadd.xlane.f32.xlu1 %v2697_v4 }
0x185b   :  { %2701 = vadd.xlane.f32.xlu1 %v2700_v6 }
0x18e4   :  { %v2699_v8 = vpop.xlane.xlu1 %2698 }
0x18e5   :  { %v2703_v9 = vmul.f32 0.03125, %v2699_v8 }
0x18e7   :  { %v2705_v14 = vsub.f32 %v6927_v2, %v2703_v9 }
0x18e8   :  { %v2702_v60 = vpop.xlane.xlu1 %2701 }
0x18e9   :  { %v2704_v16 = vmul.f32 0.03125, %v2702_v60  ;;  %v2707_v39 = vmul.f32 %v2705_v14, %v2705_v14 }
0x18eb   :  { %v2706_v19 = vsub.f32 %v6930_v3, %v2704_v16  ;;  %v2709_v32 = vsel %vm345_vm6, %v2707_v39, 0.0 }
0x18ec   :  { %2710 = vadd.xlane.f32.xlu0 %v2709_v32 }
0x18ed   :  { %v2708_v22 = vmul.f32 %v2706_v19, %v2706_v19 }
0x18ef   :  { %v2712_v23 = vsel %vm345_vm6, %v2708_v22, 0.0 }
0x18f0   :  { %2713 = vadd.xlane.f32.xlu1 %v2712_v23 }
0x1979   :  { %v2711_v33 = vpop.xlane.xlu0 %2710 }
0x197a   :  { %v2715_v34 = vmul.f32 0.03125, %v2711_v33 }
0x197c   :  { %v2717_v35 = vadd.f32 1e-05, %v2715_v34 }
0x197d   :  { %v2714_v36 = vpop.xlane.xlu1 %2713 }
0x197e   :  { %6280 = vrsqrt.f32 %v2717_v35  ;;  %v2716_v37 = vmul.f32 0.03125, %v2714_v36 }
0x1980   :  { %v2718_v38 = vadd.f32 1e-05, %v2716_v37 }
0x1982   :  { %6282 = vrsqrt.f32 %v2718_v38 }
0x1988   :  { %v6281_v49 = vpop.eup %6280 }
0x1989   :  { %v2721_v41 = vmul.f32 %v6281_v49, %v2705_v14 }
0x198b   :  { %v2729_v43 = vmul.f32 %v5375_v40, %v2721_v41 }
0x198c   :  { %v6283_v44 = vpop.eup %6282 }
0x198d   :  { %v2722_v45 = vmul.f32 %v6283_v44, %v2706_v19  ;;  %v2737_v31 = vadd.f32 %v5376_v42, %v2729_v43 }
0x198f   :  { %v2730_v7 = vmul.f32 %v5375_v40, %v2722_v45  ;;  %5826 = vmatprep.mubr.msk.f32.mxu0 %vm345_vm6, %v2737_v31 }
0x1991   :  { %v2738_v46 = vadd.f32 %v5376_v42, %v2730_v7 }
0x1993   :  { %5827 = vmatmul.mubr.msk.f32.vlgmr.msra.gmra.mrb[24].mxu0 %vm345_vm6, %v2738_v46 }
0x1994   :  { %5831 = vmatprep.mubr.msk.f32.mxu0 %vm6396_vm7, %v6395_v15 }
0x1a66   :  { %v5828_v48 = vpop.f32.mrb[24].mxu0 }
0x1a67   :  { %v6952_v61 = vadd.f32 %v5828_v48, %v5377_v47  ;;  %v2822_v50 = vpop.f32.mrb[25].mxu0 }
0x1a68   :  { %v6954_v51 = vadd.f32 %v5377_v47, %v2822_v50 }
0x1a6a   :  { %2926 = vrot.lane.b32.xlu0 %v6954_v51, %s6400_s13  ;;  %2836 = vrot.lane.b32.xlu1 %v6954_v51, %s6397_s0 }
0x1adc   :  { %v2837_v53 = vpop.permute.xlu1 %2836  ;;  %v2927_v29 = vpop.permute.xlu0 %2926 }
0x1add   :  { %5830 = vmatpush3.xpose.msk.msra.mxu0 %vm490_vm8, %v2837_v53 }
0x1ade   :  { %5834 = vmatprep.subr.mxu0 %v6395_v15 }
0x1ae0   :  { %5832 = vmatmul.mubr.msk.f32.vlgmr.msra.gmra.mrb[26].mxu0 %vm490_vm8, %v6954_v51 }
0x1ae1   :  { %5835 = vmatpush3.msra.mxu0 %v2927_v29  ;;  %5836 = vmatprep.mubr.msk.f32.mxu0 %vm6396_vm7, %v6395_v15 }
0x1ae2   :  { %5839 = vmatprep.subr.mxu0 %v6395_v15 }
0x1bb3   :  { %v2908_v54 = vpop.f32.mrb[26].mxu0 }
0x1bb4   :  { %v2912_v55 = vmul.f32 0.35355338, %v2908_v54  ;;  %v5833_v56 = vpop.f32.mrb[27].mxu0 }
0x1bb6   :  { %v2913_v57 = vsel %vm6677_vm9, %v2912_v55, -1e+09 }
0x1bb7   :  { %v2914_v58 = vadd.f32 %v2913_v57, %v6682_v21 }
0x1bb9   :  { %v2915_v59 = vsel %vm490_vm8, %v2914_v58, -inf }
0x1bba   :  { %2916 = vmax.xlane.f32.xlu1 %v2915_v59 }
0x1bcb   :  { %3002 = vrot.lane.b32.xlu1 %v6954_v51, %s6399_s9 }
0x1c47   :  { %v2917_v62 = vpop.xlane.xlu1 %2916 }
0x1c48   :  { %v2918_v13 = vsub.f32 %v2914_v58, %v2917_v62 }
0x1c4a   :  { %v2919_v17 = vmul.f32 1.442695, %v2918_v13 }
0x1c4b   :  { %v3003_v16 = vpop.permute.xlu1 %3002 }
0x1c4c   :  { %6284 = vpow2.f32 %v2919_v17 }
0x1c56   :  { %v6285_v63 = vpop.eup %6284 }
0x1c57   :  { %v2921_v0 = vsel %vm490_vm8, %v6285_v63, 0.0 }
0x1c58   :  { %2922 = vadd.xlane.f32.xlu0 %v2921_v0 }
0x1c6e   :  { %3004 = vrot.lane.b32.xlu0 %v6954_v51, %s6398_s5 }
0x1c72   :  { %3318 = vrot.lane.b32.xlu0 %v6954_v51, %s6403_s8 }
0x1c76   :  { %3316 = vrot.lane.b32.xlu0 %v6954_v51, %s6402_s25 }
0x1c7a   :  { %3560 = vrot.lane.b32.xlu0 %v6954_v51, %s6404_s14 }
0x1c7e   :  { %3558 = vrot.lane.b32.xlu0 %v6954_v51, %s6405_s19 }
0x1ce5   :  { %v2923_v1 = vpop.xlane.xlu0 %2922 }
0x1ce6   :  { %6286 = vrcp.f32 %v2923_v1 }
0x1ce9   :  { %v3005_v4 = vpop.permute.xlu0 %3004 }
0x1ced   :  { %v3319_v6 = vpop.permute.xlu0 %3318 }
0x1cee   :  { %5860 = vmatpush3.xpose.msk.msra.mxu1 %vm490_vm8, %v3319_v6 }
0x1cef   :  { %5874 = vmatprep.subr.mxu1 %v6395_v15 }
0x1cf0   :  { %v6287_v8 = vpop.eup %6286 }
0x1cf1   :  { %v2925_v9 = vmul.f32 %v6287_v8, %v6285_v63  ;;  %v3317_v14 = vpop.permute.xlu0 %3316  ;;  %v2832_v8 = vld [vmem:[%s7275_s7 + $0x8] sm:$0xff] }
0x1cf2   :  { %5862 = vmatmul.mubr.msk.f32.vlgmr.msra.gmra.mrb[20].mxu1 %vm490_vm8, %v3317_v14  ;;  %v7060_v14 = vld [vmem:[%s7275_s7] sm:$0xff] }
0x1cf3   :  { %5837 = vmatmul.mubr.msk.f32.vlgmr.msra.gmra.mrb[28].mxu0 %vm490_vm8, %v2925_v9  ;;  %5876 = vmatprep.mubr.msk.f32.mxu1 %vm6396_vm7, %v6395_v15 }
0x1cf4   :  { %5840 = vmatpush3.xpose.msk.msra.mxu0 %vm490_vm8, %v3005_v4  ;;  %5841 = vmatprep.mubr.msk.f32.mxu0 %vm6396_vm7, %v6395_v15 }
0x1cf5   :  { %v3561_v60 = vpop.permute.xlu0 %3560  ;;  %5844 = vmatprep.subr.mxu0 %v6395_v15 }
0x1cf6   :  { %5875 = vmatpush3.xpose.msk.msra.mxu1 %vm490_vm8, %v3561_v60 }
0x1cf7   :  { %5842 = vmatmul.mubr.msk.f32.vlgmr.msra.gmra.mrb[30].mxu0 %vm490_vm8, %v3003_v16  ;;  %5879 = vmatprep.subr.mxu1 %v6395_v15 }
0x1cf8   :  { %5846 = vmatprep.mubr.msk.f32.mxu0 %vm6396_vm7, %v6395_v15 }
0x1cf9   :  { %v3559_v39 = vpop.permute.xlu0 %3558 }
0x1cfa   :  { %5877 = vmatmul.mubr.msk.f32.vlgmr.msra.gmra.mrb[22].mxu1 %vm490_vm8, %v3559_v39 }
0x1cfb   :  { %5881 = vmatprep.mubr.msk.f32.mxu1 %vm6396_vm7, %v6395_v15 }
0x1dc5   :  { %v3390_v19 = vpop.f32.mrb[20].mxu1 }
0x1dc6   :  { %v7002_v32 = vpop.f32.mrb[28].mxu0  ;;  %v5863_v22 = vpop.f32.mrb[21].mxu1  ;;  %v3394_v47 = vmul.f32 0.35355338, %v3390_v19 }
0x1dc7   :  { %v5838_v23 = vpop.f32.mrb[29].mxu0 }
0x1dc8   :  { %v3395_v48 = vsel %vm6677_vm9, %v3394_v47, -1e+09  ;;  %v7093_v47 = vld [vmem:[%s7275_s7 + $0x18] sm:$0xff] }
0x1dc9   :  { %v3396_v50 = vadd.f32 %v3395_v48, %v6682_v21 }
0x1dca   :  { %v3076_v11 = vpop.f32.mrb[30].mxu0 }
0x1dcb   :  { %v3080_v24 = vmul.f32 0.35355338, %v3076_v11  ;;  %v5843_v26 = vpop.f32.mrb[31].mxu0  ;;  %v3397_v53 = vsel %vm490_vm8, %v3396_v50, -inf }
0x1dcd   :  { %v3081_v27 = vsel %vm6677_vm9, %v3080_v24, -1e+09  ;;  %v3632_v30 = vpop.f32.mrb[22].mxu1 }
0x1dce   :  { %v3636_v5 = vmul.f32 0.35355338, %v3632_v30  ;;  %v5878_v33 = vpop.f32.mrb[23].mxu1  ;;  %v3082_v34 = vadd.f32 %v3081_v27, %v6682_v21 }
0x1dd0   :  { %v3637_v35 = vsel %vm6677_vm9, %v3636_v5, -1e+09  ;;  %v3083_v36 = vsel %vm490_vm8, %v3082_v34, -inf }
0x1dd1   :  { %3084 = vmax.xlane.f32.xlu0 %v3083_v36  ;;  %v3638_v37 = vadd.f32 %v3637_v35, %v6682_v21 }
0x1dd3   :  { %v3639_v38 = vsel %vm490_vm8, %v3638_v37, -inf }
0x1dd4   :  { %3640 = vmax.xlane.f32.xlu1 %v3639_v38  ;;  %v7084_v38 = vld [vmem:[%s7275_s7 + $0x10] sm:$0xff] }
0x1e5e   :  { %v3085_v49 = vpop.xlane.xlu0 %3084 }
0x1e5f   :  { %v3086_v40 = vsub.f32 %v3082_v34, %v3085_v49 }
0x1e61   :  { %v3087_v41 = vmul.f32 1.442695, %v3086_v40  ;;  %v3641_v42 = vpop.xlane.xlu1 %3640 }
0x1e62   :  { %v3642_v43 = vsub.f32 %v3638_v37, %v3641_v42 }
0x1e63   :  { %6288 = vpow2.f32 %v3087_v41 }
0x1e64   :  { %v3643_v44 = vmul.f32 1.442695, %v3642_v43 }
0x1e66   :  { %6290 = vpow2.f32 %v3643_v44 }
0x1e6d   :  { %v6289_v45 = vpop.eup %6288 }
0x1e6e   :  { %v3089_v31 = vsel %vm490_vm8, %v6289_v45, 0.0 }
0x1e6f   :  { %3090 = vadd.xlane.f32.xlu0 %v3089_v31 }
0x1e70   :  { %v6291_v7 = vpop.eup %6290 }
0x1e71   :  { %v3645_v46 = vsel %vm490_vm8, %v6291_v7, 0.0 }
0x1e72   :  { %3646 = vadd.xlane.f32.xlu1 %v3645_v46 }
0x1e83   :  { %3650 = vrot.lane.b32.xlu1 %v6954_v51, %s6407_s28 }
0x1e85   :  { %3094 = vrot.lane.b32.xlu0 %v6954_v51, %s6401_s21 }
0x1e87   :  { %3970 = vrot.lane.b32.xlu1 %v6952_v61, %s6398_s5 }
0x1e89   :  { %3802 = vrot.lane.b32.xlu0 %v6952_v61, %s6397_s0  ;;  %s6409_s0 = smov [#allocation3]  }
0x1e8a   :  { %s5282_s5 = sshll.u32 %s6409_s0, 4  ;;  %s5283_s5 = int_to_ptr.vmem [resolvable:$true] %s5282_s5 }
0x1e8b   :  { %p6343_p1 = scmp.lt.s32.totalorder %s5283_s5, %s5283_s5 }
0x1e8d   :  { %3968 = vrot.lane.b32.xlu0 %v6952_v61, %s6399_s9 }
0x1eab   :  { %3398 = vmax.xlane.f32.xlu1 %v3397_v53 }
0x1efc   :  { %v3091_v29 = vpop.xlane.xlu0 %3090 }
0x1efd   :  { %6292 = vrcp.f32 %v3091_v29 }
0x1eff   :  { %v3647_v54 = vpop.xlane.xlu1 %3646 }
0x1f00   :  { %6294 = vrcp.f32 %v3647_v54  ;;  %v3095_v55 = vpop.permute.xlu0 %3094 }
0x1f01   :  { %5845 = vmatpush3.msra.mxu0 %v3095_v55 }
0x1f02   :  { %5849 = vmatprep.subr.mxu0 %v6395_v15 }
0x1f03   :  { %v3651_v56 = vpop.permute.xlu1 %3650 }
0x1f04   :  { %5880 = vmatpush3.msra.mxu1 %v3651_v56  ;;  %v3803_v62 = vpop.permute.xlu0 %3802 }
0x1f05   :  { %5889 = vmatprep.subr.mxu1 %v6395_v15 }
0x1f07   :  { %v6293_v57 = vpop.eup %6292  ;;  %v3971_v13 = vpop.permute.xlu1 %3970 }
0x1f08   :  { %v3093_v58 = vmul.f32 %v6293_v57, %v6289_v45  ;;  %v3969_v17 = vpop.permute.xlu0 %3968 }
0x1f0a   :  { %v6295_v59 = vpop.eup %6294  ;;  %5847 = vmatmul.mubr.msk.f32.vlgmr.msra.gmra.mrb[32].mxu0 %vm490_vm8, %v3093_v58 }
0x1f0b   :  { %v3649_v21 = vmul.f32 %v6295_v59, %v6291_v7  ;;  %5851 = vmatprep.mubr.msk.f32.mxu0 %vm6396_vm7, %v6395_v15  ;;  %5850 = vmatpush3.msra.mxu0 %v2832_v8 }
0x1f0c   :  { %5854 = vmatprep.subr.mxu0 %v6395_v15 }
0x1f0d   :  { %5882 = vmatmul.mubr.msk.f32.vlgmr.msra.gmra.mrb[24].mxu1 %vm490_vm8, %v3649_v21 }
0x1f0e   :  { %5890 = vmatpush3.xpose.msk.msra.mxu1 %vm490_vm8, %v3803_v62  ;;  %5891 = vmatprep.mubr.msk.f32.mxu1 %vm6396_vm7, %v6395_v15 }
0x1f0f   :  { %5899 = vmatprep.subr.mxu1 %v6395_v15 }
0x1f11   :  { %5892 = vmatmul.mubr.msk.f32.vlgmr.msra.gmra.mrb[26].mxu1 %vm490_vm8, %v6952_v61 }
0x1f12   :  { %5900 = vmatpush3.xpose.msk.msra.mxu1 %vm490_vm8, %v3971_v13  ;;  %5901 = vmatprep.mubr.msk.f32.mxu1 %vm6396_vm7, %v6395_v15 }
0x1f13   :  { %5909 = vmatprep.subr.mxu1 %v6395_v15 }
0x1f15   :  { %5902 = vmatmul.mubr.msk.f32.vlgmr.msra.gmra.mrb[28].mxu1 %vm490_vm8, %v3969_v17 }
0x1f16   :  { %5911 = vmatprep.mubr.msk.f32.mxu1 %vm6396_vm7, %v6395_v15  ;;  %5910 = vmatpush3.msra.mxu1 %v2832_v8 }
0x1f17   :  { %5914 = vmatprep.subr.mxu1 %v6395_v15 }
0x1f38   :  { %v3399_v63 = vpop.xlane.xlu1 %3398 }
0x1f39   :  { %v3400_v0 = vsub.f32 %v3396_v50, %v3399_v63 }
0x1f3b   :  { %v3401_v1 = vmul.f32 1.442695, %v3400_v0 }
0x1f3d   :  { %6296 = vpow2.f32 %v3401_v1 }
0x1f47   :  { %v6297_v4 = vpop.eup %6296 }
0x1f48   :  { %v3403_v6 = vsel %vm490_vm8, %v6297_v4, 0.0 }
0x1f49   :  { %3404 = vadd.xlane.f32.xlu0 %v3403_v6 }
0x1f5f   :  { %3408 = vrot.lane.b32.xlu0 %v6954_v51, %s6406_s24 }
0x1f63   :  { %4060 = vrot.lane.b32.xlu0 %v6952_v61, %s6401_s21  ;;  %s6338_s21 = scalar_lea.vmem %s5283_s5, 16 }
0x1f64   :  { %p6339_p0 = scmp.ne.s32.totalorder %s5283_s5, %s6338_s21 }
0x1f67   :  { %4284 = vrot.lane.b32.xlu0 %v6952_v61, %s6403_s8 }
0x1f6b   :  { %4282 = vrot.lane.b32.xlu0 %v6952_v61, %s6402_s25  ;;  %s6342_s25 = scalar_lea.vmem %s5283_s5, 32 }
0x1f6c   :  { %p6344_p2 = scmp.lt.s32.totalorder %s6342_s25, %s6338_s21 }
0x1f6e   :  { %p6345_p3 = por %p6344_p2, %p6343_p1 }
0x1f70   :  { %p6346_p4 = pnand %p6345_p3, %p6339_p0 }
0x1fd6   :  { %v3405_v9 = vpop.xlane.xlu0 %3404 }
0x1fd7   :  { %6298 = vrcp.f32 %v3405_v9 }
0x1fda   :  { %v3409_v24 = vpop.permute.xlu0 %3408 }
0x1fdd   :  { %v3166_v60 = vpop.f32.mrb[32].mxu0 }
0x1fde   :  { %v5848_v16 = vpop.f32.mrb[33].mxu0  ;;  %5852 = vmatmul.mubr.msk.f32.vlgmr.msra.gmra.mrb[34].mxu0 %vm490_vm8, %v3166_v60  ;;  %v4061_v56 = vpop.permute.xlu0 %4060 }
0x1fdf   :  { %5855 = vmatpush3.msra.mxu0 %v7060_v14  ;;  %5856 = vmatprep.mubr.msk.f32.mxu0 %vm6396_vm7, %v6395_v15 }
0x1fe0   :  { %v3722_v51 = vpop.f32.mrb[24].mxu1  ;;  %5864 = vmatprep.subr.mxu0 %v6395_v15 }
0x1fe1   :  { %v5883_v39 = vpop.f32.mrb[25].mxu1  ;;  %v6299_v22 = vpop.eup %6298 }
0x1fe2   :  { %v3407_v27 = vmul.f32 %v6299_v22, %v6297_v4  ;;  %v4285_v21 = vpop.permute.xlu0 %4284 }
0x1fe4   :  { %v3874_v19 = vpop.f32.mrb[26].mxu1 }
0x1fe5   :  { %v3878_v23 = vmul.f32 0.35355338, %v3874_v19  ;;  %v5893_v11 = vpop.f32.mrb[27].mxu1 }
0x1fe6   :  { %5857 = vmatmul.mubr.msk.f32.vlgmr.msra.gmra.mrb[34].mxu0 %vm490_vm8, %v7002_v32  ;;  %v4283_v62 = vpop.permute.xlu0 %4282 }
0x1fe7   :  { %v3879_v26 = vsel %vm6677_vm9, %v3878_v23, -1e+09  ;;  %5865 = vmatpush3.msra.mxu0 %v3409_v24  ;;  %5866 = vmatprep.mubr.msk.f32.mxu0 %vm6396_vm7, %v6395_v15 }
0x1fe8   :  { %v4042_v30 = vpop.f32.mrb[28].mxu1  ;;  %v3880_v5 = vadd.f32 %v3879_v26, %v6794_v52  ;;  %5869 = vmatprep.subr.mxu0 %v6395_v15 }
0x1fe9   :  { %v4046_v33 = vmul.f32 0.35355338, %v4042_v30  ;;  %v5903_v34 = vpop.f32.mrb[29].mxu1 }
0x1fea   :  { %5867 = vmatmul.mubr.msk.f32.vlgmr.msra.gmra.mrb[36].mxu0 %vm490_vm8, %v3407_v27  ;;  %v3881_v32 = vsel %vm490_vm8, %v3880_v5, -inf }
0x1feb   :  { %v4047_v35 = vsel %vm6677_vm9, %v4046_v33, -1e+09  ;;  %3882 = vmax.xlane.f32.xlu1 %v3881_v32  ;;  %5871 = vmatprep.mubr.msk.f32.mxu0 %vm6396_vm7, %v6395_v15 }
0x1fec   :  { %v4048_v36 = vadd.f32 %v4047_v35, %v6794_v52  ;;  %5870 = vmatpush3.msra.mxu0 %v7084_v38 }
0x1fed   :  { %5884 = vmatprep.subr.mxu0 %v6395_v15 }
0x1fee   :  { %v4049_v37 = vsel %vm490_vm8, %v4048_v36, -inf }
0x1fef   :  { %4050 = vmax.xlane.f32.xlu1 %v4049_v37 }
0x2078   :  { %v3883_v49 = vpop.xlane.xlu1 %3882 }
0x2079   :  { %v3884_v40 = vsub.f32 %v3880_v5, %v3883_v49 }
0x207b   :  { %v3885_v41 = vmul.f32 1.442695, %v3884_v40  ;;  %v5412_v40 = vld [vmem:[%s7276_s10] ss:$0 sm:$0xff] }
0x207c   :  { %v4051_v42 = vpop.xlane.xlu1 %4050 }
0x207d   :  { %6300 = vpow2.f32 %v3885_v41  ;;  %v4052_v43 = vsub.f32 %v4048_v36, %v4051_v42 }
0x207f   :  { %v4053_v44 = vmul.f32 1.442695, %v4052_v43 }
0x2081   :  { %6302 = vpow2.f32 %v4053_v44 }
0x2087   :  { %v6301_v45 = vpop.eup %6300 }
0x2088   :  { %v3887_v31 = vsel %vm490_vm8, %v6301_v45, 0.0 }
0x2089   :  { %3888 = vadd.xlane.f32.xlu1 %v3887_v31 }
0x208b   :  { %v6303_v7 = vpop.eup %6302 }
0x208c   :  { %v4055_v46 = vsel %vm490_vm8, %v6303_v7, 0.0 }
0x208d   :  { %4056 = vadd.xlane.f32.xlu1 %v4055_v46 }
0x209e   :  { %3892 = vrot.lane.b32.xlu1 %v6952_v61, %s6400_s13 }
0x20bd   :  { %v3480_v48 = vpop.f32.mrb[36].mxu0 }
0x20be   :  { %v5868_v50 = vpop.f32.mrb[37].mxu0  ;;  %5872 = vmatmul.mubr.msk.f32.vlgmr.msra.gmra.mrb[34].mxu0 %vm490_vm8, %v3480_v48 }
0x20bf   :  { %5885 = vmatpush3.msra.mxu0 %v7093_v47  ;;  %5886 = vmatprep.mubr.msk.f32.mxu0 %vm6396_vm7, %v6395_v15 }
0x20c0   :  { %5894 = vmatprep.subr.mxu0 %v6395_v15 }
0x20c6   :  { %5887 = vmatmul.mubr.msk.f32.vlgmr.msra.gmra.mrb[34].mxu0 %vm490_vm8, %v3722_v51 }
0x20c7   :  { %5896 = vmatprep.mubr.msk.f32.mxu0 %vm6396_vm7, %v6395_v15 }
0x2116   :  { %v3889_v53 = vpop.xlane.xlu1 %3888 }
0x2117   :  { %6304 = vrcp.f32 %v3889_v53 }
0x211a   :  { %v4057_v29 = vpop.xlane.xlu1 %4056 }
0x211b   :  { %6306 = vrcp.f32 %v4057_v29 }
0x211e   :  { %v3893_v54 = vpop.permute.xlu1 %3892 }
0x211f   :  { %5895 = vmatpush3.msra.mxu0 %v3893_v54 }
0x2120   :  { %5904 = vmatprep.subr.mxu0 %v6395_v15 }
0x2121   :  { %v6305_v55 = vpop.eup %6304 }
0x2122   :  { %v3891_v57 = vmul.f32 %v6305_v55, %v6301_v45 }
0x2124   :  { %5897 = vmatmul.mubr.msk.f32.vlgmr.msra.gmra.mrb[38].mxu0 %vm490_vm8, %v3891_v57 }
0x2125   :  { %v6307_v58 = vpop.eup %6306  ;;  %5905 = vmatpush3.msra.mxu0 %v4061_v56  ;;  %5906 = vmatprep.mubr.msk.f32.mxu0 %vm6396_vm7, %v6395_v15 }
0x2126   :  { %v4059_v59 = vmul.f32 %v6307_v58, %v6303_v7  ;;  %5919 = vmatprep.subr.mxu0 %v6395_v15 }
0x2128   :  { %5907 = vmatmul.mubr.msk.f32.vlgmr.msra.gmra.mrb[40].mxu0 %vm490_vm8, %v4059_v59 }
0x2129   :  { %5921 = vmatprep.mubr.msk.f32.mxu0 %vm6396_vm7, %v6395_v15 }
0x212c   :  { %5920 = vmatpush3.xpose.msk.msra.mxu0 %vm490_vm8, %v4285_v21 }
0x212d   :  { %5924 = vmatprep.subr.mxu0 %v6395_v15 }
0x212f   :  { %5922 = vmatmul.mubr.msk.f32.vlgmr.msra.gmra.mrb[42].mxu0 %vm490_vm8, %v4283_v62 }
0x2130   :  { %5926 = vmatprep.mubr.msk.f32.mxu0 %vm6396_vm7, %v6395_v15 }
0x2199   :  { %v3795_v13 = vpop.f32.mrb[34].mxu0 }
0x219a   :  { %3800 = vst.msk [vmem:[#allocation2] sm:$0xff] %vm345_vm6, %v3795_v13  ;;  %v5888_v17 = vpop.f32.mrb[35].mxu0 }
0x21a1   :  { %v4767_v32 = vld [vmem:[#allocation2] sm:$0xff] }
0x21f7   :  { %v3964_v63 = vpop.f32.mrb[38].mxu0 }
0x21f8   :  { %v5898_v0 = vpop.f32.mrb[39].mxu0 }
0x21fb   :  { %v4132_v1 = vpop.f32.mrb[40].mxu0 }
0x21fc   :  { %v5908_v4 = vpop.f32.mrb[41].mxu0  ;;  %5912 = vmatmul.mubr.msk.f32.vlgmr.msra.gmra.mrb[30].mxu1 %vm490_vm8, %v4132_v1 }
0x21fd   :  { %5915 = vmatpush3.msra.mxu1 %v7060_v14  ;;  %5916 = vmatprep.mubr.msk.f32.mxu1 %vm6396_vm7, %v6395_v15 }
0x21fe   :  { %5929 = vmatprep.subr.mxu1 %v6395_v15 }
0x2202   :  { %v4356_v6 = vpop.f32.mrb[42].mxu0 }
0x2203   :  { %v4360_v8 = vmul.f32 0.35355338, %v4356_v6  ;;  %v5923_v9 = vpop.f32.mrb[43].mxu0 }
0x2204   :  { %5917 = vmatmul.mubr.msk.f32.vlgmr.msra.gmra.mrb[30].mxu1 %vm490_vm8, %v3964_v63 }
0x2205   :  { %v4361_v60 = vsel %vm6677_vm9, %v4360_v8, -1e+09  ;;  %5930 = vmatpush3.msra.mxu1 %v7084_v38  ;;  %5931 = vmatprep.mubr.msk.f32.mxu1 %vm6396_vm7, %v6395_v15  ;;  %v4769_v38 = vadd.f32 %v4767_v32, %v6927_v2 }
0x2206   :  { %v4362_v14 = vadd.f32 %v4361_v60, %v6794_v52  ;;  %5939 = vmatprep.subr.mxu1 %v6395_v15  ;;  %v5413_v60 = vld [vmem:[%s7277_s11] ss:$0 sm:$0xff] }
0x2207   :  { %v7153_v43 = vadd.f32 %v5412_v40, %v4769_v38 }
0x2208   :  { %v4363_v16 = vsel %vm490_vm8, %v4362_v14, -inf }
0x2209   :  { %4364 = vmax.xlane.f32.xlu0 %v4363_v16  ;;  %v4782_v44 = vsel %vm345_vm6, %v7153_v43, 0.0  ;;  %v5414_v16 = vld [vmem:[%s7278_s15] ss:$0 sm:$0xff] }
0x221f   :  { %4374 = vrot.lane.b32.xlu0 %v6952_v61, %s6406_s24 }
0x2223   :  { %4524 = vrot.lane.b32.xlu0 %v6952_v61, %s6405_s19 }
0x2296   :  { %v4365_v51 = vpop.xlane.xlu0 %4364 }
0x2297   :  { %v4366_v39 = vsub.f32 %v4362_v14, %v4365_v51 }
0x2299   :  { %v4367_v19 = vmul.f32 1.442695, %v4366_v39 }
0x229a   :  { %v4375_v22 = vpop.permute.xlu0 %4374 }
0x229b   :  { %6308 = vpow2.f32 %v4367_v19  ;;  %5925 = vmatpush3.msra.mxu0 %v4375_v22  ;;  %v4824_v19 = vld [vmem:[%s7279_s16] sm:$0xff]  ;;  %v4825_v22 = vld [vmem:[%s7279_s16 + $0x8] sm:$0xff] }
0x229c   :  { %5934 = vmatprep.subr.mxu0 %v6395_v15 }
0x229e   :  { %v4525_v5 = vpop.permute.xlu0 %4524 }
0x22a5   :  { %v6309_v23 = vpop.eup %6308 }
0x22a6   :  { %v4369_v11 = vsel %vm490_vm8, %v6309_v23, 0.0 }
0x22a7   :  { %4370 = vadd.xlane.f32.xlu1 %v4369_v11  ;;  %v4826_v11 = vld [vmem:[%s7279_s16 + $0x10] sm:$0xff] }
0x22b8   :  { %4526 = vrot.lane.b32.xlu1 %v6952_v61, %s6404_s14 }
0x2334   :  { %v4371_v24 = vpop.xlane.xlu1 %4370 }
0x2335   :  { %6310 = vrcp.f32 %v4371_v24  ;;  %v4827_v24 = vld [vmem:[%s7279_s16 + $0x18] sm:$0xff] }
0x2338   :  { %v4527_v30 = vpop.permute.xlu1 %4526 }
0x233f   :  { %v6311_v26 = vpop.eup %6310 }
0x2340   :  { %v4373_v27 = vmul.f32 %v6311_v26, %v6309_v23  ;;  %v6090_v23 = vpack.c.bf16 %v4825_v22, %v4824_v19  ;;  %v6094_v26 = vpack.c.bf16 %v4827_v24, %v4826_v11  ;;  %v5418_v24 = vld [vmem:[%s6573_s29] ss:$0 sm:$0xff]  ;;  %s7280_s29 = sld [smem:[#allocation6_spill]] }
0x2342   :  { %5927 = vmatmul.mubr.msk.f32.vlgmr.msra.gmra.mrb[44].mxu0 %vm490_vm8, %v4373_v27  ;;  %v4934_v27 = vld [vmem:[%s6568_s3] sm:$0xff] }
0x2343   :  { %5935 = vmatpush3.xpose.msk.msra.mxu0 %vm490_vm8, %v4527_v30  ;;  %5936 = vmatprep.mubr.msk.f32.mxu0 %vm6396_vm7, %v6395_v15  ;;  %v4935_v30 = vld [vmem:[%s6568_s3 + $0x8] sm:$0xff] }
0x2344   :  { %6091 = vmatprep.subr.bf16.mxu0 %v6090_v23 }
0x2346   :  { %5937 = vmatmul.mubr.msk.f32.vlgmr.msra.gmra.mrb[46].mxu0 %vm490_vm8, %v4525_v5  ;;  %v6098_v5 = vpack.c.bf16 %v4935_v30, %v4934_v27 }
0x2347   :  { %6093 = vmatpush3.bf16.msra.mxu0 %v6090_v23 }
0x2348   :  { %6095 = vmatprep.subr.bf16.mxu0 %v6094_v26 }
0x234b   :  { %6097 = vmatpush3.bf16.msra.mxu0 %v6094_v26 }
0x234c   :  { %6132 = vmatprep.subr.msk.bf16.mxu0 %vm6131_vm10, %v6588_v10 }
0x2415   :  { %v4446_v33 = vpop.f32.mrb[44].mxu0 }
0x2416   :  { %v5928_v34 = vpop.f32.mrb[45].mxu0  ;;  %5932 = vmatmul.mubr.msk.f32.vlgmr.msra.gmra.mrb[30].mxu1 %vm490_vm8, %v4446_v33 }
0x2417   :  { %5941 = vmatprep.mubr.msk.f32.mxu1 %vm6396_vm7, %v6395_v15 }
0x2419   :  { %v4598_v35 = vpop.f32.mrb[46].mxu0 }
0x241a   :  { %v4602_v36 = vmul.f32 0.35355338, %v4598_v35  ;;  %v5938_v37 = vpop.f32.mrb[47].mxu0 }
0x241c   :  { %v4603_v49 = vsel %vm6677_vm9, %v4602_v36, -1e+09 }
0x241d   :  { %v4604_v41 = vadd.f32 %v4603_v49, %v6794_v52  ;;  %v4936_v49 = vld [vmem:[%s6568_s3 + $0x10] sm:$0xff] }
0x241f   :  { %v4605_v42 = vsel %vm490_vm8, %v4604_v41, -inf }
0x2420   :  { %4606 = vmax.xlane.f32.xlu1 %v4605_v42  ;;  %v4938_v42 = vld [vmem:[%s6568_s3 + $0x20] sm:$0xff] }
0x2424   :  { %4783 = vadd.xlane.f32.xlu1 %v4782_v44  ;;  %v4939_v44 = vld [vmem:[%s6568_s3 + $0x28] sm:$0xff] }
0x24ad   :  { %v4607_v45 = vpop.xlane.xlu1 %4606 }
0x24ae   :  { %v4608_v31 = vsub.f32 %v4604_v41, %v4607_v45  ;;  %v6106_v45 = vpack.c.bf16 %v4939_v44, %v4938_v42 }
0x24b0   :  { %v4609_v7 = vmul.f32 1.442695, %v4608_v31  ;;  %v4940_v31 = vld [vmem:[%s6568_s3 + $0x30] sm:$0xff] }
0x24b1   :  { %v4784_v55 = vpop.xlane.xlu1 %4783 }
0x24b2   :  { %6312 = vpow2.f32 %v4609_v7  ;;  %v4788_v56 = vmul.f32 0.03125, %v4784_v55  ;;  %v4941_v7 = vld [vmem:[%s6568_s3 + $0x38] sm:$0xff]  ;;  %v4948_v55 = vld [vmem:[%s6568_s3 + $0x70] sm:$0xff] }
0x24b4   :  { %v4790_v58 = vsub.f32 %v7153_v43, %v4788_v56  ;;  %v4949_v56 = vld [vmem:[%s6568_s3 + $0x78] sm:$0xff] }
0x24b6   :  { %v4792_v62 = vmul.f32 %v4790_v58, %v4790_v58 }
0x24b8   :  { %v4794_v13 = vsel %vm345_vm6, %v4792_v62, 0.0 }
0x24bc   :  { %v6313_v2 = vpop.eup %6312 }
0x24bd   :  { %v4611_v18 = vsel %vm490_vm8, %v6313_v2, 0.0 }
0x24be   :  { %4612 = vadd.xlane.f32.xlu0 %v4611_v18  ;;  %v4942_v18 = vld [vmem:[%s6568_s3 + $0x40] sm:$0xff] }
0x24d4   :  { %4616 = vrot.lane.b32.xlu0 %v6952_v61, %s6407_s28 }
0x254b   :  { %v4613_v52 = vpop.xlane.xlu0 %4612 }
0x254c   :  { %6314 = vrcp.f32 %v4613_v52  ;;  %v4943_v52 = vld [vmem:[%s6568_s3 + $0x48] sm:$0xff] }
0x254f   :  { %v4617_v46 = vpop.permute.xlu0 %4616 }
0x2550   :  { %5940 = vmatpush3.msra.mxu1 %v4617_v46  ;;  %v6114_v46 = vpack.c.bf16 %v4943_v52, %v4942_v18 }
0x2551   :  { %5944 = vmatprep.subr.mxu1 %v6395_v15 }
0x2556   :  { %v6315_v48 = vpop.eup %6314 }
0x2557   :  { %v4615_v50 = vmul.f32 %v6315_v48, %v6313_v2  ;;  %v6110_v2 = vpack.c.bf16 %v4941_v7, %v4940_v31  ;;  %v4944_v48 = vld [vmem:[%s6568_s3 + $0x50] sm:$0xff] }
0x2559   :  { %5942 = vmatmul.mubr.msk.f32.vlgmr.msra.gmra.mrb[32].mxu1 %vm490_vm8, %v4615_v50  ;;  %v4945_v50 = vld [vmem:[%s6568_s3 + $0x58] sm:$0xff] }
0x255a   :  { %5945 = vmatpush3.msra.mxu1 %v7093_v47  ;;  %5946 = vmatprep.mubr.msk.f32.mxu1 %vm6396_vm7, %v6395_v15 }
0x255b   :  { %6099 = vmatprep.subr.bf16.mxu1 %v6098_v5 }
0x262c   :  { %v4688_v53 = vpop.f32.mrb[32].mxu1 }
0x262d   :  { %v5943_v29 = vpop.f32.mrb[33].mxu1  ;;  %5947 = vmatmul.mubr.msk.f32.vlgmr.msra.gmra.mrb[30].mxu1 %vm490_vm8, %v4688_v53  ;;  %v6118_v53 = vpack.c.bf16 %v4945_v50, %v4944_v48 }
0x262e   :  { %6101 = vmatpush3.bf16.msra.mxu1 %v6098_v5  ;;  %v4946_v29 = vld [vmem:[%s6568_s3 + $0x60] sm:$0xff] }
0x2700   :  { %v4761_v61 = vpop.f32.mrb[30].mxu1 }
0x2701   :  { %4766 = vst.msk [vmem:[#allocation2 + $0x8] sm:$0xff] %vm345_vm6, %v4761_v61  ;;  %v5948_v54 = vpop.f32.mrb[31].mxu1  ;;  %v4947_v61 = vld [vmem:[%s6568_s3 + $0x68] sm:$0xff] }
0x2702   :  { %v6122_v54 = vpack.c.bf16 %v4947_v61, %v4946_v29 }
0x2708   :  { %v4768_v57 = vld [vmem:[#allocation2 + $0x8] sm:$0xff] }
0x2709   :  { %v4770_v59 = vadd.f32 %v4768_v57, %v6930_v3  ;;  %v6126_v57 = vpack.c.bf16 %v4949_v56, %v4948_v55 }
0x270b   :  { %v7169_v21 = vadd.f32 %v5412_v40, %v4770_v59  ;;  %v4937_v40 = vld [vmem:[%s6568_s3 + $0x18] sm:$0xff]  ;;  %s7281_s3 = sld [smem:[#allocation7_spill]] }
0x270c   :  { %v6102_v41 = vpack.c.bf16 %v4937_v40, %v4936_v49 }
0x270d   :  { %v4785_v47 = vsel %vm345_vm6, %v7169_v21, 0.0 }
0x270e   :  { %4786 = vadd.xlane.f32.xlu1 %v4785_v47  ;;  %6103 = vmatprep.subr.bf16.mxu1 %v6102_v41 }
0x270f   :  { %6105 = vmatpush3.bf16.msra.mxu1 %v6102_v41 }
0x2710   :  { %6107 = vmatprep.subr.bf16.mxu1 %v6106_v45 }
0x2711   :  { %v5419_v52 = vld [vmem:[%s7281_s3] ss:$0 sm:$0xff] }
0x2712   :  { %4795 = vadd.xlane.f32.xlu1 %v4794_v13 }
0x2713   :  { %6109 = vmatpush3.bf16.msra.mxu1 %v6106_v45 }
0x2714   :  { %6111 = vmatprep.subr.bf16.mxu1 %v6110_v2 }
0x2717   :  { %6113 = vmatpush3.bf16.msra.mxu1 %v6110_v2 }
0x2718   :  { %6115 = vmatprep.subr.bf16.mxu1 %v6114_v46 }
0x271b   :  { %6117 = vmatpush3.bf16.msra.mxu1 %v6114_v46 }
0x271c   :  { %6119 = vmatprep.subr.bf16.mxu1 %v6118_v53 }
0x271f   :  { %6121 = vmatpush3.bf16.msra.mxu1 %v6118_v53 }
0x2720   :  { %6123 = vmatprep.subr.bf16.mxu1 %v6122_v54 }
0x2723   :  { %6125 = vmatpush3.bf16.msra.mxu1 %v6122_v54 }
0x2724   :  { %6127 = vmatprep.subr.bf16.mxu1 %v6126_v57 }
0x2727   :  { %6129 = vmatpush3.bf16.msra.mxu1 %v6126_v57 }
0x279b   :  { %v4787_v17 = vpop.xlane.xlu1 %4786 }
0x279c   :  { %v4789_v63 = vmul.f32 0.03125, %v4787_v17 }
0x279e   :  { %v4791_v0 = vsub.f32 %v7169_v21, %v4789_v63 }
0x279f   :  { %v4796_v1 = vpop.xlane.xlu1 %4795 }
0x27a0   :  { %v4800_v3 = vmul.f32 0.03125, %v4796_v1  ;;  %v4793_v4 = vmul.f32 %v4791_v0, %v4791_v0 }
0x27a2   :  { %v4802_v6 = vadd.f32 1e-05, %v4800_v3  ;;  %v4797_v8 = vsel %vm345_vm6, %v4793_v4, 0.0 }
0x27a3   :  { %4798 = vadd.xlane.f32.xlu1 %v4797_v8 }
0x27a4   :  { %6316 = vrsqrt.f32 %v4802_v6 }
0x27ae   :  { %v6317_v9 = vpop.eup %6316 }
0x27af   :  { %v4806_v14 = vmul.f32 %v6317_v9, %v4790_v58  ;;  %v5415_v58 = vld [vmem:[%s6563_s4] ss:$0 sm:$0xff]  ;;  %s7282_s4 = sld [smem:[#allocation8_spill]] }
0x27b1   :  { %v4814_v51 = vmul.f32 %v5413_v60, %v4806_v14 }
0x27b3   :  { %v4822_v39 = vadd.f32 %v5414_v16, %v4814_v51 }
0x27b5   :  { %5957 = vmatprep.mubr.msk.f32.mxu0 %vm345_vm6, %v4822_v39  ;;  %v5420_v48 = vld [vmem:[%s7282_s4] ss:$0 sm:$0xff] }
0x2830   :  { %v4799_v33 = vpop.xlane.xlu1 %4798 }
0x2831   :  { %v4801_v34 = vmul.f32 0.03125, %v4799_v33 }
0x2833   :  { %v4803_v32 = vadd.f32 1e-05, %v4801_v34 }
0x2835   :  { %6318 = vrsqrt.f32 %v4803_v32 }
0x283f   :  { %v6319_v35 = vpop.eup %6318 }
0x2840   :  { %v4807_v36 = vmul.f32 %v6319_v35, %v4791_v0 }
0x2842   :  { %v4815_v37 = vmul.f32 %v5413_v60, %v4807_v36 }
0x2844   :  { %v4823_v38 = vadd.f32 %v5414_v16, %v4815_v37 }
0x2846   :  { %5958 = vmatmul.mubr.msk.f32.vlgmr.msra.gmra.mrb[48].mxu0 %vm345_vm6, %v4823_v38 }
0x2847   :  { %6135 = vmatpush3.bf16.xpose.msk.msra.mxu0 %vm6131_vm10, %v6588_v10 }
0x2848   :  { %6138 = vmatprep.subr.msk.bf16.mxu0 %vm6131_vm10, %v6601_v20 }
0x284f   :  { %6141 = vmatpush3.bf16.xpose.msk.msra.mxu0 %vm6131_vm10, %v6601_v20 }
0x2850   :  { %6144 = vmatprep.subr.msk.bf16.mxu0 %vm6131_vm10, %v6611_v25 }
0x2857   :  { %6147 = vmatpush3.bf16.xpose.msk.msra.mxu0 %vm6131_vm10, %v6611_v25  ;;  %v7219_v25 = vld [vmem:[%s7280_s29 + $0x8] sm:$0xff] }
0x2858   :  { %6150 = vmatprep.subr.msk.bf16.mxu0 %vm6131_vm10, %v6617_v28  ;;  %vm5210_vm11 = vcmp.eq.s32.totalorder %v7219_v25, 4294967196  ;;  %vm5234_vm15 = vcmp.ne.s32.totalorder %v7219_v25, 4294967196 }
0x285f   :  { %6153 = vmatpush3.bf16.xpose.msk.msra.mxu0 %vm6131_vm10, %v6617_v28  ;;  %v5212_v28 = vsel %vm5210_vm11, 0, %v7219_v25 }
0x2919   :  { %v5959_v59 = vpop.f32.mrb[48].mxu0 }
0x291a   :  { %v4913_v47 = vadd.f32 %v5959_v59, %v5415_v58  ;;  %v4907_v62 = vpop.f32.mrb[49].mxu0 }
0x291b   :  { %v4908_v13 = vadd.f32 %v5415_v58, %v4907_v62 }
0x291c   :  { %v4919_v17 = vmul.f32 0.044715, %v4913_v47  ;;  %v4917_v22 = vmul.f32 0.5, %v4913_v47 }
0x291d   :  { %v4918_v63 = vmul.f32 0.044715, %v4908_v13  ;;  %v4916_v39 = vmul.f32 0.5, %v4908_v13 }
0x291e   :  { %v4921_v0 = vmul.f32 %v4919_v17, %v4913_v47 }
0x291f   :  { %v4920_v1 = vmul.f32 %v4918_v63, %v4908_v13 }
0x2920   :  { %v4923_v3 = vmul.f32 %v4921_v0, %v4913_v47 }
0x2921   :  { %v4922_v4 = vmul.f32 %v4920_v1, %v4908_v13 }
0x2922   :  { %v4925_v6 = vadd.f32 %v4923_v3, %v4913_v47  ;;  %v5183_v47 = vld [vmem:[%s7280_s29] sm:$0xff] }
0x2923   :  { %v4924_v8 = vadd.f32 %v4922_v4, %v4908_v13  ;;  %vm5209_vm12 = vcmp.eq.s32.totalorder %v5183_v47, 4294967196  ;;  %vm5233_vm0 = vcmp.ne.s32.totalorder %v5183_v47, 4294967196 }
0x2924   :  { %v4927_v9 = vmul.f32 0.7978846, %v4925_v6  ;;  %v5211_v62 = vsel %vm5209_vm12, 0, %v5183_v47 }
0x2925   :  { %v4926_v60 = vmul.f32 0.7978846, %v4924_v8 }
0x2926   :  { %6320 = vtanh.f32 %v4927_v9 }
0x2927   :  { %6322 = vtanh.f32 %v4926_v60 }
0x2930   :  { %v6321_v14 = vpop.eup %6320 }
0x2931   :  { %v6323_v16 = vpop.eup %6322  ;;  %v4931_v51 = vadd.f32 1.0, %v6321_v14 }
0x2932   :  { %v4930_v19 = vadd.f32 1.0, %v6323_v16 }
0x2933   :  { %v4933_v11 = vmul.f32 %v4931_v51, %v4917_v22 }
0x2934   :  { %v4932_v23 = vmul.f32 %v4930_v19, %v4916_v39 }
0x2936   :  { %5992 = vmatprep.mubr.f32.mxu1 %v4932_v23 }
0x2937   :  { %5993 = vmatmul.mubr.f32.vlgmr.msra.gmra.mrb[34].mxu1 %v4933_v11 }
0x2a0a   :  { %v5994_v26 = vpop.f32.mrb[34].mxu1 }
0x2a0b   :  { %v5023_v27 = vpop.f32.mrb[35].mxu1  ;;  %v5029_v30 = vadd.f32 %v5994_v26, %v5418_v24 }
0x2a0c   :  { %v5024_v5 = vadd.f32 %v5418_v24, %v5023_v27 }
0x2a0d   :  { %v5033_v34 = vadd.f32 %v5029_v30, %v7169_v21 }
0x2a0e   :  { %v5032_v33 = vadd.f32 %v5024_v5, %v7153_v43 }
0x2a0f   :  { %v5039_v35 = vsel %vm345_vm6, %v5033_v34, 0.0 }
0x2a10   :  { %v5036_v32 = vsel %vm345_vm6, %v5032_v33, 0.0 }
0x2a11   :  { %5037 = vadd.xlane.f32.xlu1 %v5036_v32 }
0x2a15   :  { %5040 = vadd.xlane.f32.xlu1 %v5039_v35  ;;  %v5434_v35 = vsel %vm5234_vm15, 1.0, %v6395_v15 }
0x2a9e   :  { %v5038_v43 = vpop.xlane.xlu1 %5037 }
0x2a9f   :  { %v5042_v21 = vmul.f32 0.03125, %v5038_v43 }
0x2aa1   :  { %v5044_v36 = vsub.f32 %v5032_v33, %v5042_v21  ;;  %v5433_v21 = vsel %vm5233_vm0, 1.0, %v6395_v15 }
0x2aa2   :  { %v5041_v37 = vpop.xlane.xlu1 %5040 }
0x2aa3   :  { %v5043_v38 = vmul.f32 0.03125, %v5041_v37  ;;  %v5046_v49 = vmul.f32 %v5044_v36, %v5044_v36 }
0x2aa5   :  { %v5045_v10 = vsub.f32 %v5033_v34, %v5043_v38  ;;  %v5048_v40 = vsel %vm345_vm6, %v5046_v49, 0.0  ;;  %v5256_v49 = vsel %vm5243_vm1, %v5433_v21, 0.0 }
0x2aa6   :  { %5049 = vadd.xlane.f32.xlu0 %v5048_v40  ;;  %v5257_v40 = vsel %vm5243_vm1, %v5434_v35, 0.0 }
0x2aa7   :  { %v5047_v20 = vmul.f32 %v5045_v10, %v5045_v10  ;;  %v5258_v25 = vadd.f32 %v5257_v40, %v5256_v49 }
0x2aa9   :  { %v5051_v41 = vsel %vm345_vm6, %v5047_v20, 0.0 }
0x2aaa   :  { %5052 = vadd.xlane.f32.xlu1 %v5051_v41 }
0x2abc   :  { %5217 = vperm.xlu0 %6234, %v5212_v28  }
0x2b33   :  { %v5050_v42 = vpop.xlane.xlu0 %5049 }
0x2b34   :  { %v5054_v44 = vmul.f32 0.03125, %v5050_v42 }
0x2b36   :  { %v5056_v45 = vadd.f32 1e-05, %v5054_v44 }
0x2b37   :  { %v5053_v31 = vpop.xlane.xlu1 %5052 }
0x2b38   :  { %6324 = vrsqrt.f32 %v5056_v45  ;;  %v5055_v7 = vmul.f32 0.03125, %v5053_v31 }
0x2b3a   :  { %v5057_v2 = vadd.f32 1e-05, %v5055_v7 }
0x2b3b   :  { %v5218_v9 = vpop.permute.xlu0 %5217 }
0x2b3c   :  { %6326 = vrsqrt.f32 %v5057_v2  ;;  %vm5220_vm14 = vcmp.eq.s32.totalorder %v6592_v12, %v5218_v9 }
0x2b3d   :  { %v5432_v39 = vsel %vm5220_vm14, 1.0, %v6395_v15 }
0x2b42   :  { %v6325_v18 = vpop.eup %6324 }
0x2b43   :  { %v5060_v46 = vmul.f32 %v6325_v18, %v5044_v36 }
0x2b45   :  { %v5068_v50 = vmul.f32 %v5419_v52, %v5060_v46 }
0x2b46   :  { %v6327_v53 = vpop.eup %6326 }
0x2b47   :  { %v5061_v29 = vmul.f32 %v6327_v53, %v5045_v10  ;;  %v5076_v61 = vadd.f32 %v5420_v48, %v5068_v50 }
0x2b49   :  { %v5069_v54 = vmul.f32 %v5419_v52, %v5061_v29  ;;  %6011 = vmatprep.mubr.msk.f32.mxu0 %vm345_vm6, %v5076_v61 }
0x2b4b   :  { %v5077_v55 = vadd.f32 %v5420_v48, %v5069_v54 }
0x2b4d   :  { %6012 = vmatmul.mubr.msk.f32.vlgmr.msra.gmra.mrb[50].mxu0 %vm345_vm6, %v5077_v55 }
0x2c20   :  { %v6013_v56 = vpop.f32.mrb[50].mxu0 }
0x2c21   :  { %v5174_v57 = vpop.f32.mrb[51].mxu0  ;;  %v5188_v58 = vsel %vm257_vm4, %v6013_v56, -inf  ;;  %v5226_v19 = vmul.f32 %v6013_v56, %v5432_v39 }
0x2c22   :  { %5189 = vmax.xlane.f32.xlu1 %v5188_v58  ;;  %v5185_v59 = vsel %vm257_vm4, %v5174_v57, -inf }
0x2c23   :  { %v5230_v23 = vsel %vm257_vm4, %v5226_v19, 0.0 }
0x2c26   :  { %5186 = vmax.xlane.f32.xlu1 %v5185_v59 }
0x2c37   :  { %5214 = vperm.xlu1 %6235, %v5211_v62  }
0x2caf   :  { %v5190_v13 = vpop.xlane.xlu1 %5189 }
0x2cb0   :  { %v5192_v17 = vsub.f32 %v6013_v56, %v5190_v13 }
0x2cb2   :  { %v5195_v63 = vmul.f32 1.442695, %v5192_v17 }
0x2cb3   :  { %v5187_v0 = vpop.xlane.xlu1 %5186 }
0x2cb4   :  { %6328 = vpow2.f32 %v5195_v63  ;;  %v5191_v1 = vsub.f32 %v5174_v57, %v5187_v0 }
0x2cb6   :  { %v5193_v3 = vmul.f32 1.442695, %v5191_v1 }
0x2cb7   :  { %v5215_v4 = vpop.permute.xlu1 %5214 }
0x2cb8   :  { %6330 = vpow2.f32 %v5193_v3  ;;  %vm5219_vm13 = vcmp.eq.s32.totalorder %v6592_v12, %v5215_v4 }
0x2cb9   :  { %v5431_v60 = vsel %vm5219_vm13, 1.0, %v6395_v15 }
0x2cba   :  { %v5225_v16 = vmul.f32 %v5431_v60, %v5174_v57 }
0x2cbc   :  { %v5227_v22 = vsel %vm257_vm4, %v5225_v16, 0.0 }
0x2cbe   :  { %v6329_v6 = vpop.eup %6328 }
0x2cbf   :  { %v5200_v8 = vsel %vm257_vm4, %v6329_v6, 0.0 }
0x2cc0   :  { %5201 = vadd.xlane.f32.xlu0 %v5200_v8 }
0x2cc2   :  { %v6331_v14 = vpop.eup %6330 }
0x2cc3   :  { %v5197_v51 = vsel %vm257_vm4, %v6331_v14, 0.0 }
0x2cc4   :  { %5198 = vadd.xlane.f32.xlu1 %v5197_v51 }
0x2cc8   :  { %5228 = vadd.xlane.f32.xlu1 %v5227_v22 }
0x2ccc   :  { %5231 = vadd.xlane.f32.xlu1 %v5230_v23 }
0x2d4d   :  { %v5202_v11 = vpop.xlane.xlu0 %5201 }
0x2d4e   :  { %6332 = vlog2.f32 %v5202_v11 }
0x2d51   :  { %v5199_v24 = vpop.xlane.xlu1 %5198 }
0x2d52   :  { %6334 = vlog2.f32 %v5199_v24 }
0x2d55   :  { %v5229_v26 = vpop.xlane.xlu1 %5228 }
0x2d58   :  { %v6333_v27 = vpop.eup %6332 }
0x2d59   :  { %v5206_v12 = vmul.f32 0.6931472, %v6333_v27  ;;  %v5232_v33 = vpop.xlane.xlu1 %5231 }
0x2d5b   :  { %v5208_v30 = vadd.f32 %v5206_v12, %v5190_v13 }
0x2d5c   :  { %v6335_v5 = vpop.eup %6334 }
0x2d5d   :  { %v5204_v34 = vmul.f32 0.6931472, %v6335_v5  ;;  %v5240_v32 = vsub.f32 %v5208_v30, %v5232_v33 }
0x2d5f   :  { %v5207_v43 = vadd.f32 %v5204_v34, %v5187_v0  ;;  %v5242_v37 = vmul.f32 %v5434_v35, %v5240_v32 }
0x2d61   :  { %v5239_v36 = vsub.f32 %v5207_v43, %v5229_v26  ;;  %v5245_v20 = vsel %vm5243_vm1, %v5242_v37, 0.0 }
0x2d63   :  { %v5241_v38 = vmul.f32 %v5433_v21, %v5239_v36 }
0x2d65   :  { %v5244_v10 = vsel %vm5243_vm1, %v5241_v38, 0.0 }
0x2d66   :  { %v5246_v41 = vadd.f32 %v5245_v20, %v5244_v10 }
0x2d68   :  { %5247 = vadd.xlane.f32.xlu1 %v5246_v41 }
0x2d6c   :  { %5259 = vadd.xlane.f32.xlu1 %v5258_v25 }
0x2df5   :  { %v5248_v28 = vpop.xlane.xlu1 %5247 }
0x2df6   :  { %v5249_v42 = vrot.slane %v5248_v28, 4 }
0x2df8   :  { %v5250_v44 = vadd.f32 %v5249_v42, %v5248_v28 }
0x2df9   :  { %v5260_v45 = vpop.xlane.xlu1 %5259 }
0x2dfa   :  { %v5251_v31 = vrot.slane %v5250_v44, 2  ;;  %v5261_v7 = vrot.slane %v5260_v45, 4 }
0x2dfc   :  { %v5262_v2 = vadd.f32 %v5261_v7, %v5260_v45  ;;  %v5252_v15 = vadd.f32 %v5251_v31, %v5250_v44 }
0x2dfe   :  { %v5263_v18 = vrot.slane %v5262_v2, 2  ;;  %v5253_v52 = vrot.slane %v5252_v15, 1 }
0x2e00   :  { %v5264_v46 = vadd.f32 %v5263_v18, %v5262_v2  ;;  %v5254_v48 = vadd.f32 %v5253_v52, %v5252_v15 }
0x2e02   :  { %6180 = vpush %v5254_v48  ;;  %v5265_v50 = vrot.slane %v5264_v46, 1 }
0x2e04   :  { %v5266_v53 = vadd.f32 %v5265_v50, %v5264_v46 }
0x2e06   :  { %6182 = vpush %v5266_v53 }
0x2e33   :  { %s6181_s18 = spop %6180 }
0x2e37   :  { %s6183_s22 = spop %6182 }
0x2e38   :  { %s5268_s26 = smax.f32 %s6408_s23, %s6183_s22 }
0x2e39   :  { %v5269_v29 = vstv %s5268_s26 }
0x2e3a   :  { %6336 = vrcp.f32 %v5269_v29 }
0x2e44   :  { %v6337_v61 = vpop.eup %6336 }
0x2e45   :  { %6184 = vpush %v6337_v61 }
0x2e76   :  { %s6185_s9 = spop %6184 }
0x2e77   :  { %s5272_s13 = smul.f32 %s6185_s9, %s6181_s18 }
0x2e79   :  { %v5273_v54 = vstv %s5272_s13 }
0x2e7a   :  { %5275 = vst.msk [vmem:[#allocation3] sm:$0x1] %vm5274_vm2, %v5273_v54 }
0x2e7b   :  { %6349 = shalt.err (!%p6346_p4)
}
0x2e7c   :  { %s6350_s8 = scalar_lea.hbm %s6578_s17, 16 }
0x2e7d   :  { %p6351_p5 = scmp.ne.s32.totalorder %s6578_s17, %s6350_s8  ;;  %p6354_p6 = scmp.lt.u32.totalorder %s6350_s8, %s6578_s17 }
0x2e7f   :  { %p6356_p7 = pnand %p6354_p6, %p6351_p5 }
0x2e81   :  { %6359 = shalt.err (!%p6356_p7)
}
0x2e82   :  { %5285 = dma.vmem_to_hbm [thread:$0]  %s5283_s5, 16, %s6578_s17, [#allocation4]  }
0x2e83   :  { %6360 = dma.done.wait [#allocation4], 16  }
0x2e84   :  { %6361 = vsyncadd [#allocation4], 4294967280 }
0x2e85   :  { %5289 = vsyncpa [#allocation4], 1 }

</bundles_post_ra>
